<compile_context>
chip_gen: v5e
topology: v5e:2x2
jax: 0.10.0
libtpu: 0.0.40
codegen_flags: <defaults>
</compile_context>

<pallas_src>
import jax
import jax.numpy as jnp
from jax import lax
from jax.experimental import pallas as pl
from jax.experimental.pallas import tpu as pltpu

EPS = 1e-5
_VMEM_LIMIT = 32 * 1024 * 1024  # TODO(synk): raise toward 64-96 MiB on v6e for realistic shapes.


def _nt_dot(w, p):
    # (C_out, C_in) x (pixels, C_in) -> (C_out, pixels), contracting C_in (NT matmul, MXU).
    return lax.dot_general(w, p, (((1,), (1,)), ((), ())),
                           preferred_element_type=jnp.float32)


# ---------------------------------------------------------------------------
# Pass 1: fused (nearest depth-upsample x2 + 3x3x3 conv, stride 1, pad 1), channels
# last, MXU contraction, plus per-(n) per-channel BN sum / sum-of-squares partials.
# Grid: (n, m) where m in [0, D+1] walks the zero-padded source depth axis; the two
# output depths {2(m-2), 2(m-2)+1} are produced once slices m-2, m-1, m are available
# (slices m-2 / m-1 live in a 2-slot VMEM carry, slice m is the current input block).
# ---------------------------------------------------------------------------
def _conv_stats_kernel(wc_ref, x_ref, y_ref, sum_ref, ssq_ref, carry_ref):
    m = pl.program_id(1)

    _, _, c_out, pix = y_ref.shape
    _, hp, wp, c_in = carry_ref.shape
    h2, w2 = hp - 2, wp - 2

    @pl.when(m == 0)
    def _init_stats():
        sum_ref[...] = jnp.zeros_like(sum_ref)
        ssq_ref[...] = jnp.zeros_like(ssq_ref)

    @pl.when(m >= 2)
    def _compute():
        acc_e = jnp.zeros((c_out, pix), jnp.float32)   # output depth 2d (even parity)
        acc_o = jnp.zeros((c_out, pix), jnp.float32)   # output depth 2d+1 (odd parity)
        for kh in range(3):
            for kw in range(3):
                # Shifted (H2, W2, C_in) windows of the three consecutive source depth
                # slices, flattened to (pixels, C_in).  W2 is a multiple of 8 so the
                # reshape is layout-preserving (lane dim C_in untouched).
                p0 = carry_ref[0, kh:kh + h2, kw:kw + w2, :].reshape(pix, c_in)
                p1 = carry_ref[1, kh:kh + h2, kw:kw + w2, :].reshape(pix, c_in)
                p2 = x_ref[0, 0, kh:kh + h2, kw:kw + w2, :].reshape(pix, c_in)
                # Parity-combined depth weights were prepared in the wrapper:
                #   role 0: even-lo, 1: even-hi, 2: odd-lo, 3: odd-hi.
                acc_e = (acc_e + _nt_dot(wc_ref[0, kh, kw], p0)
                               + _nt_dot(wc_ref[1, kh, kw], p1))
                acc_o = (acc_o + _nt_dot(wc_ref[2, kh, kw], p1)
                               + _nt_dot(wc_ref[3, kh, kw], p2))

        y_ref[0, 0] = acc_e.astype(y_ref.dtype)
        y_ref[0, 1] = acc_o.astype(y_ref.dtype)
        # Per-channel partial sums (lane reduction over pixels -> (C_out, 1) block).
        # TODO(synk): E[x^2]-mean^2 in f32 can cancel for very large counts; move to
        # shifted/two-pass statistics before scaling up.
        sum_ref[0] += (jnp.sum(acc_e, axis=1, keepdims=True)
                       + jnp.sum(acc_o, axis=1, keepdims=True))
        ssq_ref[0] += (jnp.sum(acc_e * acc_e, axis=1, keepdims=True)
                       + jnp.sum(acc_o * acc_o, axis=1, keepdims=True))

    # Advance the depth carry: slot0 <- slot1 <- current source slice (static indices).
    carry_ref[0] = carry_ref[1]
    carry_ref[1] = x_ref[0, 0]


# ---------------------------------------------------------------------------
# Pass 2: y -> relu(y * scale[c] + shift[c])  with lane-dense (C_out, H2*W2) tiles.
# ---------------------------------------------------------------------------
def _bn_relu_kernel(scale_ref, shift_ref, y_ref, o_ref):
    # y block: (1, D2_blk, C_out, P); scale/shift blocks: (C_out, 1) -> broadcast.
    o_ref[...] = jnp.maximum(y_ref[...] * scale_ref[...] + shift_ref[...], 0.0)


def up_conv(x, params, eps=EPS):
    """Forward pass of `up_conv`: Upsample(x2, nearest) -> Conv3d(3,1,pad=1) ->
    BatchNorm3d (training-mode batch statistics) -> ReLU.  x is NCDHW."""
    w = params["weight"]                      # (C_out, C_in, 3, 3, 3), PyTorch OIDHW
    gamma = params["gamma"]                   # (C_out,)
    beta = params["beta"]                     # (C_out,)
    # NOTE: params["bias"] is intentionally unused - a conv bias immediately followed
    # by training-mode BatchNorm is cancelled exactly by the mean subtraction.

    N, C_in, D, H, W = x.shape
    C_out = w.shape[0]
    assert w.shape[1] == C_in and w.shape[2:] == (3, 3, 3), (
        "only kernel_size=3, stride=1 (padding=1) is implemented")
    # TODO(synk): generalize to other kernel_size/stride configurations of up_conv.

    D2, H2, W2 = 2 * D, 2 * H, 2 * W
    Hp, Wp = H2 + 2, W2 + 2                   # tight +1 halo (pad *after* upsampling)
    P = H2 * W2                               # lane axis of the conv output / pass 2

    # ---- wrapper-side prep (small tensors) -----------------------------------------
    # H/W nearest-upsample on the 1/8-sized input, single-voxel halo, channels-last so
    # C_in sits on the lane axis of the MXU contraction.  Depth upsampling is folded
    # into the kernel and never materialized in HBM.
    # TODO(synk): fold the H/W upsample into the kernel as well (like depth) to avoid
    # materializing the 4x-inflated input in HBM.
    x_hw = jnp.repeat(jnp.repeat(x.astype(jnp.float32), 2, axis=3), 2, axis=4)
    x_pad = jnp.pad(x_hw, ((0, 0), (0, 0), (1, 1), (1, 1), (1, 1)))
    x_cl = jnp.transpose(x_pad, (0, 2, 3, 4, 1))        # (N, D+2, Hp, Wp, C_in)

    # Depth-parity-combined conv weights, (role, kh, kw, C_out, C_in), VMEM resident.
    wd = jnp.transpose(w.astype(jnp.float32), (2, 3, 4, 0, 1))   # (kd, kh, kw, Co, Ci)
    wcomb = jnp.stack([wd[0],            # even parity, lo slab  (source depth d)
                       wd[1] + wd[2],    # even parity, hi slab  (source depth d+1)
                       wd[0] + wd[1],    # odd  parity, lo slab  (source depth d+1)
                       wd[2]],           # odd  parity, hi slab  (source depth d+2)
                      axis=0)

    # ---- pass 1: conv (+ folded depth upsample) + per-n per-channel BN partials ----
    # TODO(synk): intermediate y could be bf16 to halve its HBM traffic; kept f32 to
    #             stay within the test tolerance.
    y, sum_p, ssq_p = pl.pallas_call(
        _conv_stats_kernel,
        grid=(N, D + 2),
        in_specs=[
            pl.BlockSpec((4, 3, 3, C_out, C_in), lambda n, m: (0, 0, 0, 0, 0)),
            pl.BlockSpec((1, 1, Hp, Wp, C_in), lambda n, m: (n, m, 0, 0, 0)),
        ],
        out_specs=[
            pl.BlockSpec((1, 2, C_out, P),
                         lambda n, m: (n, jnp.maximum(m - 2, 0), 0, 0)),
            pl.BlockSpec((1, C_out, 1), lambda n, m: (n, 0, 0)),
            pl.BlockSpec((1, C_out, 1), lambda n, m: (n, 0, 0)),
        ],
        out_shape=[
            jax.ShapeDtypeStruct((N, D2, C_out, P), jnp.float32),   # pre-BN conv output
            jax.ShapeDtypeStruct((N, C_out, 1), jnp.float32),       # per-n sum
            jax.ShapeDtypeStruct((N, C_out, 1), jnp.float32),       # per-n sum of squares
        ],
        scratch_shapes=[pltpu.VMEM((2, Hp, Wp, C_in), jnp.float32)],  # depth carry
        compiler_params=pltpu.CompilerParams(
            dimension_semantics=("parallel", "arbitrary"),
            vmem_limit_bytes=_VMEM_LIMIT),
    )(wcomb, x_cl)
    # TODO(synk): for realistic D/H/W add an H-tiling grid axis (with halo) so the
    #             carry slices and output blocks stay within v7x's 64 MiB VMEM.

    # Finalize BN statistics and fold into a per-channel scale/shift (tiny XLA math).
    count = N * D2 * H2 * W2
    total_sum = jnp.sum(sum_p[:, :, 0], axis=0)
    total_ssq = jnp.sum(ssq_p[:, :, 0], axis=0)
    mean = total_sum / count
    var = total_ssq / count - mean * mean            # biased variance (BN training mode)
    scale = gamma.astype(jnp.float32) * lax.rsqrt(var + eps)
    shift = beta.astype(jnp.float32) - mean * scale
    # TODO(synk): PyTorch also updates running_mean/running_var buffers here (side
    # effect not reproduced; it does not affect the returned tensor).

    # ---- pass 2: normalize + ReLU, lane-dense big blocks, fully parallel, in-place ----
    d2_blk = D2
    while d2_blk % 2 == 0 and d2_blk * C_out * P * 4 > (2 << 20):
        d2_blk //= 2

    out4 = pl.pallas_call(
        _bn_relu_kernel,
        grid=(N, D2 // d2_blk),
        in_specs=[
            pl.BlockSpec((C_out, 1), lambda n, d: (0, 0)),
            pl.BlockSpec((C_out, 1), lambda n, d: (0, 0)),
            pl.BlockSpec((1, d2_blk, C_out, P), lambda n, d: (n, d, 0, 0)),
        ],
        out_specs=pl.BlockSpec((1, d2_blk, C_out, P), lambda n, d: (n, d, 0, 0)),
        out_shape=jax.ShapeDtypeStruct((N, D2, C_out, P), jnp.float32),
        input_output_aliases={2: 0},               # BN+ReLU in place over the pre-BN y
        compiler_params=pltpu.CompilerParams(
            dimension_semantics=("parallel", "parallel"),
            vmem_limit_bytes=_VMEM_LIMIT),
    )(scale.reshape(C_out, 1), shift.reshape(C_out, 1), y)

    # (N, D2, C_out, H2*W2) -> NCDHW.
    # TODO(synk): when composing with other converted layers, keep the channels-last
    # layout downstream and drop this final relayout.
    return jnp.transpose(out4.reshape(N, D2, C_out, H2, W2), (0, 2, 1, 3, 4))


def up_conv_ref(x, params, eps=EPS):
    """Pure-JAX reference with the exact PyTorch math (including the conv bias)."""
    w, b = params["weight"], params["bias"]
    gamma, beta = params["gamma"], params["beta"]
    xu = x
    for ax in (2, 3, 4):
        xu = jnp.repeat(xu, 2, axis=ax)       # nn.Upsample(scale_factor=2), nearest
    y = jax.lax.conv_general_dilated(
        xu, w, window_strides=(1, 1, 1),
        padding=((1, 1), (1, 1), (1, 1)),
        dimension_numbers=("NCDHW", "OIDHW", "NCDHW"),
        precision=jax.lax.Precision.HIGHEST)
    y = y + b[None, :, None, None, None]
    mean = jnp.mean(y, axis=(0, 2, 3, 4), keepdims=True)
    var = jnp.mean((y - mean) ** 2, axis=(0, 2, 3, 4), keepdims=True)
    y = ((y - mean) * jax.lax.rsqrt(var + eps) * gamma[None, :, None, None, None]
         + beta[None, :, None, None, None])
    return jnp.maximum(y, 0.0)


if __name__ == "__main__":
    key = jax.random.PRNGKey(0)
    k_x, k_w, k_b = jax.random.split(key, 3)

    N, C_in, C_out = 2, 4, 8
    D = H = W = 8                              # output: (2, 8, 16, 16, 16)

    x = jax.random.normal(k_x, (N, C_in, D, H, W), jnp.float32)
    params = {
        "weight": jax.random.normal(k_w, (C_out, C_in, 3, 3, 3), jnp.float32) * 0.1,
        "bias": jax.random.normal(k_b, (C_out,), jnp.float32) * 0.1,  # cancelled by BN
        "gamma": jnp.ones((C_out,), jnp.float32),                     # fresh BatchNorm3d
        "beta": jnp.zeros((C_out,), jnp.float32),
    }

    out = jax.block_until_ready(jax.jit(up_conv)(x, params))
    ref = jax.block_until_ready(up_conv_ref(x, params))

    assert out.shape == (N, C_out, 2 * D, 2 * H, 2 * W), out.shape
    err = float(jnp.max(jnp.abs(out - ref)))
    # Tolerance covers the MXU's default f32 contraction precision (bf16 passes) vs.
    # the Precision.HIGHEST pure-JAX reference; BN-normalized outputs are O(1).
    assert jnp.allclose(out, ref, atol=2e-2, rtol=2e-2), f"mismatch vs reference: {err}"
    print("KERNEL_OK")
</pallas_src>

<mosaic_0001>
module attributes {stable_mosaic.version = 11 : i64} {
  func.func @_conv_stats_kernel(%arg0: i32, %arg1: i32, %arg2: memref<4x3x3x8x4xf32, #tpu.memory_space<vmem>>, %arg3: memref<1x1x18x18x4xf32, #tpu.memory_space<vmem>>, %arg4: memref<1x2x8x256xf32, #tpu.memory_space<vmem>>, %arg5: memref<1x8x1xf32, #tpu.memory_space<vmem>>, %arg6: memref<1x8x1xf32, #tpu.memory_space<vmem>>, %arg7: memref<2x18x18x4xf32, #tpu.memory_space<vmem>>) attributes {dimension_semantics = [#tpu.dimension_semantics<parallel>, #tpu.dimension_semantics<arbitrary>], iteration_bounds = array<i64: 2, 10>, scalar_prefetch = 0 : i64, scratch_operands = 1 : i64, tpu.core_type = #tpu.core_type<tc>, window_params = [{pipeline_mode = #tpu.pipeline_mode<synchronous>, transform_indices = @transform_0, window_bounds = array<i64: 4, 3, 3, 8, 4>}, {transform_indices = @transform_1, window_bounds = array<i64: 1, 1, 18, 18, 4>}, {transform_indices = @transform_2, window_bounds = array<i64: 1, 2, 8, 256>}, {transform_indices = @transform_3, window_bounds = array<i64: 1, 8, 1>}, {transform_indices = @transform_4, window_bounds = array<i64: 1, 8, 1>}]} {
    %c0_i32 = arith.constant 0 : i32
    %0 = arith.cmpi eq, %arg1, %c0_i32 : i32
    %1 = arith.extui %0 : i1 to i32
    %c0_i32_0 = arith.constant 0 : i32
    %2 = arith.cmpi ne, %1, %c0_i32_0 : i32
    scf.if %2 {
      %cst = arith.constant 0.000000e+00 : f32
      %16 = vector.broadcast %cst : f32 to vector<1x8x1xf32>
      %c0_17 = arith.constant 0 : index
      %c0_18 = arith.constant 0 : index
      %c0_19 = arith.constant 0 : index
      %17 = vector.load %arg5[%c0_17, %c0_18, %c0_19] : memref<1x8x1xf32, #tpu.memory_space<vmem>>, vector<1x8x1xf32>
      tpu.vector_store %arg5[%c0_17, %c0_18, %c0_19], %16 {strides = array<i32>} : memref<1x8x1xf32, #tpu.memory_space<vmem>>, vector<1x8x1xf32>,
      %cst_20 = arith.constant 0.000000e+00 : f32
      %18 = vector.broadcast %cst_20 : f32 to vector<1x8x1xf32>
      %c0_21 = arith.constant 0 : index
      %c0_22 = arith.constant 0 : index
      %c0_23 = arith.constant 0 : index
      %19 = vector.load %arg6[%c0_21, %c0_22, %c0_23] : memref<1x8x1xf32, #tpu.memory_space<vmem>>, vector<1x8x1xf32>
      tpu.vector_store %arg6[%c0_21, %c0_22, %c0_23], %18 {strides = array<i32>} : memref<1x8x1xf32, #tpu.memory_space<vmem>>, vector<1x8x1xf32>,
    } else {
    }
    %c2_i32 = arith.constant 2 : i32
    %3 = arith.cmpi sge, %arg1, %c2_i32 : i32
    %4 = arith.extui %3 : i1 to i32
    %c0_i32_1 = arith.constant 0 : i32
    %5 = arith.cmpi ne, %4, %c0_i32_1 : i32
    scf.if %5 {
      %cst = arith.constant 0.000000e+00 : f32
      %16 = vector.broadcast %cst : f32 to vector<8x256xf32>
      %cst_17 = arith.constant 0.000000e+00 : f32
      %17 = vector.broadcast %cst_17 : f32 to vector<8x256xf32>
      %c0_18 = arith.constant 0 : index
      %c0_19 = arith.constant 0 : index
      %c0_20 = arith.constant 0 : index
      %c0_21 = arith.constant 0 : index
      %18 = vector.load %arg7[%c0_18, %c0_19, %c0_20, %c0_21] : memref<2x18x18x4xf32, #tpu.memory_space<vmem>>, vector<1x16x16x4xf32>
      %19 = vector.shape_cast %18 : vector<1x16x16x4xf32> to vector<16x16x4xf32>
      %20 = vector.shape_cast %19 : vector<16x16x4xf32> to vector<256x4xf32>
      %c1_22 = arith.constant 1 : index
      %c0_23 = arith.constant 0 : index
      %c0_24 = arith.constant 0 : index
      %c0_25 = arith.constant 0 : index
      %21 = vector.load %arg7[%c1_22, %c0_23, %c0_24, %c0_25] : memref<2x18x18x4xf32, #tpu.memory_space<vmem>>, vector<1x16x16x4xf32>
      %22 = vector.shape_cast %21 : vector<1x16x16x4xf32> to vector<16x16x4xf32>
      %23 = vector.shape_cast %22 : vector<16x16x4xf32> to vector<256x4xf32>
      %c0_26 = arith.constant 0 : index
      %c0_27 = arith.constant 0 : index
      %c0_28 = arith.constant 0 : index
      %c0_29 = arith.constant 0 : index
      %c0_30 = arith.constant 0 : index
      %24 = vector.load %arg3[%c0_26, %c0_27, %c0_28, %c0_29, %c0_30] : memref<1x1x18x18x4xf32, #tpu.memory_space<vmem>>, vector<1x1x16x16x4xf32>
      %25 = vector.shape_cast %24 : vector<1x1x16x16x4xf32> to vector<16x16x4xf32>
      %26 = vector.shape_cast %25 : vector<16x16x4xf32> to vector<256x4xf32>
      %c0_31 = arith.constant 0 : index
      %c0_32 = arith.constant 0 : index
      %c0_33 = arith.constant 0 : index
      %c0_34 = arith.constant 0 : index
      %c0_35 = arith.constant 0 : index
      %27 = vector.load %arg2[%c0_31, %c0_32, %c0_33, %c0_34, %c0_35] : memref<4x3x3x8x4xf32, #tpu.memory_space<vmem>>, vector<1x1x1x8x4xf32>
      %28 = vector.shape_cast %27 : vector<1x1x1x8x4xf32> to vector<8x4xf32>
      %cst_36 = arith.constant dense<0.000000e+00> : vector<8x256xf32>
      %29 = tpu.matmul %28, %20, %cst_36 {dimension_numbers = #tpu.dot_dimension_numbers<[1], [1], [0], [0], [0, 0, 1, 0], [], []>} : vector<8x4xf32>, vector<256x4xf32>, vector<8x256xf32> -> vector<8x256xf32>
      %30 = arith.addf %16, %29 : vector<8x256xf32>
      %c1_37 = arith.constant 1 : index
      %c0_38 = arith.constant 0 : index
      %c0_39 = arith.constant 0 : index
      %c0_40 = arith.constant 0 : index
      %c0_41 = arith.constant 0 : index
      %31 = vector.load %arg2[%c1_37, %c0_38, %c0_39, %c0_40, %c0_41] : memref<4x3x3x8x4xf32, #tpu.memory_space<vmem>>, vector<1x1x1x8x4xf32>
      %32 = vector.shape_cast %31 : vector<1x1x1x8x4xf32> to vector<8x4xf32>
      %cst_42 = arith.constant dense<0.000000e+00> : vector<8x256xf32>
      %33 = tpu.matmul %32, %23, %cst_42 {dimension_numbers = #tpu.dot_dimension_numbers<[1], [1], [0], [0], [0, 0, 1, 0], [], []>} : vector<8x4xf32>, vector<256x4xf32>, vector<8x256xf32> -> vector<8x256xf32>
      %34 = arith.addf %30, %33 : vector<8x256xf32>
      %c2 = arith.constant 2 : index
      %c0_43 = arith.constant 0 : index
      %c0_44 = arith.constant 0 : index
      %c0_45 = arith.constant 0 : index
      %c0_46 = arith.constant 0 : index
      %35 = vector.load %arg2[%c2, %c0_43, %c0_44, %c0_45, %c0_46] : memref<4x3x3x8x4xf32, #tpu.memory_space<vmem>>, vector<1x1x1x8x4xf32>
      %36 = vector.shape_cast %35 : vector<1x1x1x8x4xf32> to vector<8x4xf32>
      %cst_47 = arith.constant dense<0.000000e+00> : vector<8x256xf32>
      %37 = tpu.matmul %36, %23, %cst_47 {dimension_numbers = #tpu.dot_dimension_numbers<[1], [1], [0], [0], [0, 0, 1, 0], [], []>} : vector<8x4xf32>, vector<256x4xf32>, vector<8x256xf32> -> vector<8x256xf32>
      %38 = arith.addf %17, %37 : vector<8x256xf32>
      %c3 = arith.constant 3 : index
      %c0_48 = arith.constant 0 : index
      %c0_49 = arith.constant 0 : index
      %c0_50 = arith.constant 0 : index
      %c0_51 = arith.constant 0 : index
      %39 = vector.load %arg2[%c3, %c0_48, %c0_49, %c0_50, %c0_51] : memref<4x3x3x8x4xf32, #tpu.memory_space<vmem>>, vector<1x1x1x8x4xf32>
      %40 = vector.shape_cast %39 : vector<1x1x1x8x4xf32> to vector<8x4xf32>
      %cst_52 = arith.constant dense<0.000000e+00> : vector<8x256xf32>
      %41 = tpu.matmul %40, %26, %cst_52 {dimension_numbers = #tpu.dot_dimension_numbers<[1], [1], [0], [0], [0, 0, 1, 0], [], []>} : vector<8x4xf32>, vector<256x4xf32>, vector<8x256xf32> -> vector<8x256xf32>
      %42 = arith.addf %38, %41 : vector<8x256xf32>
      %c0_53 = arith.constant 0 : index
      %c0_54 = arith.constant 0 : index
      %c1_55 = arith.constant 1 : index
      %c0_56 = arith.constant 0 : index
      %43 = vector.load %arg7[%c0_53, %c0_54, %c1_55, %c0_56] : memref<2x18x18x4xf32, #tpu.memory_space<vmem>>, vector<1x16x16x4xf32>
      %44 = vector.shape_cast %43 : vector<1x16x16x4xf32> to vector<16x16x4xf32>
      %45 = vector.shape_cast %44 : vector<16x16x4xf32> to vector<256x4xf32>
      %c1_57 = arith.constant 1 : index
      %c0_58 = arith.constant 0 : index
      %c1_59 = arith.constant 1 : index
      %c0_60 = arith.constant 0 : index
      %46 = vector.load %arg7[%c1_57, %c0_58, %c1_59, %c0_60] : memref<2x18x18x4xf32, #tpu.memory_space<vmem>>, vector<1x16x16x4xf32>
      %47 = vector.shape_cast %46 : vector<1x16x16x4xf32> to vector<16x16x4xf32>
      %48 = vector.shape_cast %47 : vector<16x16x4xf32> to vector<256x4xf32>
      %c0_61 = arith.constant 0 : index
      %c0_62 = arith.constant 0 : index
      %c0_63 = arith.constant 0 : index
      %c1_64 = arith.constant 1 : index
      %c0_65 = arith.constant 0 : index
      %49 = vector.load %arg3[%c0_61, %c0_62, %c0_63, %c1_64, %c0_65] : memref<1x1x18x18x4xf32, #tpu.memory_space<vmem>>, vector<1x1x16x16x4xf32>
      %50 = vector.shape_cast %49 : vector<1x1x16x16x4xf32> to vector<16x16x4xf32>
      %51 = vector.shape_cast %50 : vector<16x16x4xf32> to vector<256x4xf32>
      %c0_66 = arith.constant 0 : index
      %c0_67 = arith.constant 0 : index
      %c1_68 = arith.constant 1 : index
      %c0_69 = arith.constant 0 : index
      %c0_70 = arith.constant 0 : index
      %52 = vector.load %arg2[%c0_66, %c0_67, %c1_68, %c0_69, %c0_70] : memref<4x3x3x8x4xf32, #tpu.memory_space<vmem>>, vector<1x1x1x8x4xf32>
      %53 = vector.shape_cast %52 : vector<1x1x1x8x4xf32> to vector<8x4xf32>
      %cst_71 = arith.constant dense<0.000000e+00> : vector<8x256xf32>
      %54 = tpu.matmul %53, %45, %cst_71 {dimension_numbers = #tpu.dot_dimension_numbers<[1], [1], [0], [0], [0, 0, 1, 0], [], []>} : vector<8x4xf32>, vector<256x4xf32>, vector<8x256xf32> -> vector<8x256xf32>
      %55 = arith.addf %34, %54 : vector<8x256xf32>
      %c1_72 = arith.constant 1 : index
      %c0_73 = arith.constant 0 : index
      %c1_74 = arith.constant 1 : index
      %c0_75 = arith.constant 0 : index
      %c0_76 = arith.constant 0 : index
      %56 = vector.load %arg2[%c1_72, %c0_73, %c1_74, %c0_75, %c0_76] : memref<4x3x3x8x4xf32, #tpu.memory_space<vmem>>, vector<1x1x1x8x4xf32>
      %57 = vector.shape_cast %56 : vector<1x1x1x8x4xf32> to vector<8x4xf32>
      %cst_77 = arith.constant dense<0.000000e+00> : vector<8x256xf32>
      %58 = tpu.matmul %57, %48, %cst_77 {dimension_numbers = #tpu.dot_dimension_numbers<[1], [1], [0], [0], [0, 0, 1, 0], [], []>} : vector<8x4xf32>, vector<256x4xf32>, vector<8x256xf32> -> vector<8x256xf32>
      %59 = arith.addf %55, %58 : vector<8x256xf32>
      %c2_78 = arith.constant 2 : index
      %c0_79 = arith.constant 0 : index
      %c1_80 = arith.constant 1 : index
      %c0_81 = arith.constant 0 : index
      %c0_82 = arith.constant 0 : index
      %60 = vector.load %arg2[%c2_78, %c0_79, %c1_80, %c0_81, %c0_82] : memref<4x3x3x8x4xf32, #tpu.memory_space<vmem>>, vector<1x1x1x8x4xf32>
      %61 = vector.shape_cast %60 : vector<1x1x1x8x4xf32> to vector<8x4xf32>
      %cst_83 = arith.constant dense<0.000000e+00> : vector<8x256xf32>
      %62 = tpu.matmul %61, %48, %cst_83 {dimension_numbers = #tpu.dot_dimension_numbers<[1], [1], [0], [0], [0, 0, 1, 0], [], []>} : vector<8x4xf32>, vector<256x4xf32>, vector<8x256xf32> -> vector<8x256xf32>
      %63 = arith.addf %42, %62 : vector<8x256xf32>
      %c3_84 = arith.constant 3 : index
      %c0_85 = arith.constant 0 : index
      %c1_86 = arith.constant 1 : index
      %c0_87 = arith.constant 0 : index
      %c0_88 = arith.constant 0 : index
      %64 = vector.load %arg2[%c3_84, %c0_85, %c1_86, %c0_87, %c0_88] : memref<4x3x3x8x4xf32, #tpu.memory_space<vmem>>, vector<1x1x1x8x4xf32>
      %65 = vector.shape_cast %64 : vector<1x1x1x8x4xf32> to vector<8x4xf32>
      %cst_89 = arith.constant dense<0.000000e+00> : vector<8x256xf32>
      %66 = tpu.matmul %65, %51, %cst_89 {dimension_numbers = #tpu.dot_dimension_numbers<[1], [1], [0], [0], [0, 0, 1, 0], [], []>} : vector<8x4xf32>, vector<256x4xf32>, vector<8x256xf32> -> vector<8x256xf32>
      %67 = arith.addf %63, %66 : vector<8x256xf32>
      %c0_90 = arith.constant 0 : index
      %c0_91 = arith.constant 0 : index
      %c2_92 = arith.constant 2 : index
      %c0_93 = arith.constant 0 : index
      %68 = vector.load %arg7[%c0_90, %c0_91, %c2_92, %c0_93] : memref<2x18x18x4xf32, #tpu.memory_space<vmem>>, vector<1x16x16x4xf32>
      %69 = vector.shape_cast %68 : vector<1x16x16x4xf32> to vector<16x16x4xf32>
      %70 = vector.shape_cast %69 : vector<16x16x4xf32> to vector<256x4xf32>
      %c1_94 = arith.constant 1 : index
      %c0_95 = arith.constant 0 : index
      %c2_96 = arith.constant 2 : index
      %c0_97 = arith.constant 0 : index
      %71 = vector.load %arg7[%c1_94, %c0_95, %c2_96, %c0_97] : memref<2x18x18x4xf32, #tpu.memory_space<vmem>>, vector<1x16x16x4xf32>
      %72 = vector.shape_cast %71 : vector<1x16x16x4xf32> to vector<16x16x4xf32>
      %73 = vector.shape_cast %72 : vector<16x16x4xf32> to vector<256x4xf32>
      %c0_98 = arith.constant 0 : index
      %c0_99 = arith.constant 0 : index
      %c0_100 = arith.constant 0 : index
      %c2_101 = arith.constant 2 : index
      %c0_102 = arith.constant 0 : index
      %74 = vector.load %arg3[%c0_98, %c0_99, %c0_100, %c2_101, %c0_102] : memref<1x1x18x18x4xf32, #tpu.memory_space<vmem>>, vector<1x1x16x16x4xf32>
      %75 = vector.shape_cast %74 : vector<1x1x16x16x4xf32> to vector<16x16x4xf32>
      %76 = vector.shape_cast %75 : vector<16x16x4xf32> to vector<256x4xf32>
      %c0_103 = arith.constant 0 : index
      %c0_104 = arith.constant 0 : index
      %c2_105 = arith.constant 2 : index
      %c0_106 = arith.constant 0 : index
      %c0_107 = arith.constant 0 : index
      %77 = vector.load %arg2[%c0_103, %c0_104, %c2_105, %c0_106, %c0_107] : memref<4x3x3x8x4xf32, #tpu.memory_space<vmem>>, vector<1x1x1x8x4xf32>
      %78 = vector.shape_cast %77 : vector<1x1x1x8x4xf32> to vector<8x4xf32>
      %cst_108 = arith.constant dense<0.000000e+00> : vector<8x256xf32>
      %79 = tpu.matmul %78, %70, %cst_108 {dimension_numbers = #tpu.dot_dimension_numbers<[1], [1], [0], [0], [0, 0, 1, 0], [], []>} : vector<8x4xf32>, vector<256x4xf32>, vector<8x256xf32> -> vector<8x256xf32>
      %80 = arith.addf %59, %79 : vector<8x256xf32>
      %c1_109 = arith.constant 1 : index
      %c0_110 = arith.constant 0 : index
      %c2_111 = arith.constant 2 : index
      %c0_112 = arith.constant 0 : index
      %c0_113 = arith.constant 0 : index
      %81 = vector.load %arg2[%c1_109, %c0_110, %c2_111, %c0_112, %c0_113] : memref<4x3x3x8x4xf32, #tpu.memory_space<vmem>>, vector<1x1x1x8x4xf32>
      %82 = vector.shape_cast %81 : vector<1x1x1x8x4xf32> to vector<8x4xf32>
      %cst_114 = arith.constant dense<0.000000e+00> : vector<8x256xf32>
      %83 = tpu.matmul %82, %73, %cst_114 {dimension_numbers = #tpu.dot_dimension_numbers<[1], [1], [0], [0], [0, 0, 1, 0], [], []>} : vector<8x4xf32>, vector<256x4xf32>, vector<8x256xf32> -> vector<8x256xf32>
      %84 = arith.addf %80, %83 : vector<8x256xf32>
      %c2_115 = arith.constant 2 : index
      %c0_116 = arith.constant 0 : index
      %c2_117 = arith.constant 2 : index
      %c0_118 = arith.constant 0 : index
      %c0_119 = arith.constant 0 : index
      %85 = vector.load %arg2[%c2_115, %c0_116, %c2_117, %c0_118, %c0_119] : memref<4x3x3x8x4xf32, #tpu.memory_space<vmem>>, vector<1x1x1x8x4xf32>
      %86 = vector.shape_cast %85 : vector<1x1x1x8x4xf32> to vector<8x4xf32>
      %cst_120 = arith.constant dense<0.000000e+00> : vector<8x256xf32>
      %87 = tpu.matmul %86, %73, %cst_120 {dimension_numbers = #tpu.dot_dimension_numbers<[1], [1], [0], [0], [0, 0, 1, 0], [], []>} : vector<8x4xf32>, vector<256x4xf32>, vector<8x256xf32> -> vector<8x256xf32>
      %88 = arith.addf %67, %87 : vector<8x256xf32>
      %c3_121 = arith.constant 3 : index
      %c0_122 = arith.constant 0 : index
      %c2_123 = arith.constant 2 : index
      %c0_124 = arith.constant 0 : index
      %c0_125 = arith.constant 0 : index
      %89 = vector.load %arg2[%c3_121, %c0_122, %c2_123, %c0_124, %c0_125] : memref<4x3x3x8x4xf32, #tpu.memory_space<vmem>>, vector<1x1x1x8x4xf32>
      %90 = vector.shape_cast %89 : vector<1x1x1x8x4xf32> to vector<8x4xf32>
      %cst_126 = arith.constant dense<0.000000e+00> : vector<8x256xf32>
      %91 = tpu.matmul %90, %76, %cst_126 {dimension_numbers = #tpu.dot_dimension_numbers<[1], [1], [0], [0], [0, 0, 1, 0], [], []>} : vector<8x4xf32>, vector<256x4xf32>, vector<8x256xf32> -> vector<8x256xf32>
      %92 = arith.addf %88, %91 : vector<8x256xf32>
      %c0_127 = arith.constant 0 : index
      %c1_128 = arith.constant 1 : index
      %c0_129 = arith.constant 0 : index
      %c0_130 = arith.constant 0 : index
      %93 = vector.load %arg7[%c0_127, %c1_128, %c0_129, %c0_130] : memref<2x18x18x4xf32, #tpu.memory_space<vmem>>, vector<1x16x16x4xf32>
      %94 = vector.shape_cast %93 : vector<1x16x16x4xf32> to vector<16x16x4xf32>
      %95 = vector.shape_cast %94 : vector<16x16x4xf32> to vector<256x4xf32>
      %c1_131 = arith.constant 1 : index
      %c1_132 = arith.constant 1 : index
      %c0_133 = arith.constant 0 : index
      %c0_134 = arith.constant 0 : index
      %96 = vector.load %arg7[%c1_131, %c1_132, %c0_133, %c0_134] : memref<2x18x18x4xf32, #tpu.memory_space<vmem>>, vector<1x16x16x4xf32>
      %97 = vector.shape_cast %96 : vector<1x16x16x4xf32> to vector<16x16x4xf32>
      %98 = vector.shape_cast %97 : vector<16x16x4xf32> to vector<256x4xf32>
      %c0_135 = arith.constant 0 : index
      %c0_136 = arith.constant 0 : index
      %c1_137 = arith.constant 1 : index
      %c0_138 = arith.constant 0 : index
      %c0_139 = arith.constant 0 : index
      %99 = vector.load %arg3[%c0_135, %c0_136, %c1_137, %c0_138, %c0_139] : memref<1x1x18x18x4xf32, #tpu.memory_space<vmem>>, vector<1x1x16x16x4xf32>
      %100 = vector.shape_cast %99 : vector<1x1x16x16x4xf32> to vector<16x16x4xf32>
      %101 = vector.shape_cast %100 : vector<16x16x4xf32> to vector<256x4xf32>
      %c0_140 = arith.constant 0 : index
      %c1_141 = arith.constant 1 : index
      %c0_142 = arith.constant 0 : index
      %c0_143 = arith.constant 0 : index
      %c0_144 = arith.constant 0 : index
      %102 = vector.load %arg2[%c0_140, %c1_141, %c0_142, %c0_143, %c0_144] : memref<4x3x3x8x4xf32, #tpu.memory_space<vmem>>, vector<1x1x1x8x4xf32>
      %103 = vector.shape_cast %102 : vector<1x1x1x8x4xf32> to vector<8x4xf32>
      %cst_145 = arith.constant dense<0.000000e+00> : vector<8x256xf32>
      %104 = tpu.matmul %103, %95, %cst_145 {dimension_numbers = #tpu.dot_dimension_numbers<[1], [1], [0], [0], [0, 0, 1, 0], [], []>} : vector<8x4xf32>, vector<256x4xf32>, vector<8x256xf32> -> vector<8x256xf32>
      %105 = arith.addf %84, %104 : vector<8x256xf32>
      %c1_146 = arith.constant 1 : index
      %c1_147 = arith.constant 1 : index
      %c0_148 = arith.constant 0 : index
      %c0_149 = arith.constant 0 : index
      %c0_150 = arith.constant 0 : index
      %106 = vector.load %arg2[%c1_146, %c1_147, %c0_148, %c0_149, %c0_150] : memref<4x3x3x8x4xf32, #tpu.memory_space<vmem>>, vector<1x1x1x8x4xf32>
      %107 = vector.shape_cast %106 : vector<1x1x1x8x4xf32> to vector<8x4xf32>
      %cst_151 = arith.constant dense<0.000000e+00> : vector<8x256xf32>
      %108 = tpu.matmul %107, %98, %cst_151 {dimension_numbers = #tpu.dot_dimension_numbers<[1], [1], [0], [0], [0, 0, 1, 0], [], []>} : vector<8x4xf32>, vector<256x4xf32>, vector<8x256xf32> -> vector<8x256xf32>
      %109 = arith.addf %105, %108 : vector<8x256xf32>
      %c2_152 = arith.constant 2 : index
      %c1_153 = arith.constant 1 : index
      %c0_154 = arith.constant 0 : index
      %c0_155 = arith.constant 0 : index
      %c0_156 = arith.constant 0 : index
      %110 = vector.load %arg2[%c2_152, %c1_153, %c0_154, %c0_155, %c0_156] : memref<4x3x3x8x4xf32, #tpu.memory_space<vmem>>, vector<1x1x1x8x4xf32>
      %111 = vector.shape_cast %110 : vector<1x1x1x8x4xf32> to vector<8x4xf32>
      %cst_157 = arith.constant dense<0.000000e+00> : vector<8x256xf32>
      %112 = tpu.matmul %111, %98, %cst_157 {dimension_numbers = #tpu.dot_dimension_numbers<[1], [1], [0], [0], [0, 0, 1, 0], [], []>} : vector<8x4xf32>, vector<256x4xf32>, vector<8x256xf32> -> vector<8x256xf32>
      %113 = arith.addf %92, %112 : vector<8x256xf32>
      %c3_158 = arith.constant 3 : index
      %c1_159 = arith.constant 1 : index
      %c0_160 = arith.constant 0 : index
      %c0_161 = arith.constant 0 : index
      %c0_162 = arith.constant 0 : index
      %114 = vector.load %arg2[%c3_158, %c1_159, %c0_160, %c0_161, %c0_162] : memref<4x3x3x8x4xf32, #tpu.memory_space<vmem>>, vector<1x1x1x8x4xf32>
      %115 = vector.shape_cast %114 : vector<1x1x1x8x4xf32> to vector<8x4xf32>
      %cst_163 = arith.constant dense<0.000000e+00> : vector<8x256xf32>
      %116 = tpu.matmul %115, %101, %cst_163 {dimension_numbers = #tpu.dot_dimension_numbers<[1], [1], [0], [0], [0, 0, 1, 0], [], []>} : vector<8x4xf32>, vector<256x4xf32>, vector<8x256xf32> -> vector<8x256xf32>
      %117 = arith.addf %113, %116 : vector<8x256xf32>
      %c0_164 = arith.constant 0 : index
      %c1_165 = arith.constant 1 : index
      %c1_166 = arith.constant 1 : index
      %c0_167 = arith.constant 0 : index
      %118 = vector.load %arg7[%c0_164, %c1_165, %c1_166, %c0_167] : memref<2x18x18x4xf32, #tpu.memory_space<vmem>>, vector<1x16x16x4xf32>
      %119 = vector.shape_cast %118 : vector<1x16x16x4xf32> to vector<16x16x4xf32>
      %120 = vector.shape_cast %119 : vector<16x16x4xf32> to vector<256x4xf32>
      %c1_168 = arith.constant 1 : index
      %c1_169 = arith.constant 1 : index
      %c1_170 = arith.constant 1 : index
      %c0_171 = arith.constant 0 : index
      %121 = vector.load %arg7[%c1_168, %c1_169, %c1_170, %c0_171] : memref<2x18x18x4xf32, #tpu.memory_space<vmem>>, vector<1x16x16x4xf32>
      %122 = vector.shape_cast %121 : vector<1x16x16x4xf32> to vector<16x16x4xf32>
      %123 = vector.shape_cast %122 : vector<16x16x4xf32> to vector<256x4xf32>
      %c0_172 = arith.constant 0 : index
      %c0_173 = arith.constant 0 : index
      %c1_174 = arith.constant 1 : index
      %c1_175 = arith.constant 1 : index
      %c0_176 = arith.constant 0 : index
      %124 = vector.load %arg3[%c0_172, %c0_173, %c1_174, %c1_175, %c0_176] : memref<1x1x18x18x4xf32, #tpu.memory_space<vmem>>, vector<1x1x16x16x4xf32>
      %125 = vector.shape_cast %124 : vector<1x1x16x16x4xf32> to vector<16x16x4xf32>
      %126 = vector.shape_cast %125 : vector<16x16x4xf32> to vector<256x4xf32>
      %c0_177 = arith.constant 0 : index
      %c1_178 = arith.constant 1 : index
      %c1_179 = arith.constant 1 : index
      %c0_180 = arith.constant 0 : index
      %c0_181 = arith.constant 0 : index
      %127 = vector.load %arg2[%c0_177, %c1_178, %c1_179, %c0_180, %c0_181] : memref<4x3x3x8x4xf32, #tpu.memory_space<vmem>>, vector<1x1x1x8x4xf32>
      %128 = vector.shape_cast %127 : vector<1x1x1x8x4xf32> to vector<8x4xf32>
      %cst_182 = arith.constant dense<0.000000e+00> : vector<8x256xf32>
      %129 = tpu.matmul %128, %120, %cst_182 {dimension_numbers = #tpu.dot_dimension_numbers<[1], [1], [0], [0], [0, 0, 1, 0], [], []>} : vector<8x4xf32>, vector<256x4xf32>, vector<8x256xf32> -> vector<8x256xf32>
      %130 = arith.addf %109, %129 : vector<8x256xf32>
      %c1_183 = arith.constant 1 : index
      %c1_184 = arith.constant 1 : index
      %c1_185 = arith.constant 1 : index
      %c0_186 = arith.constant 0 : index
      %c0_187 = arith.constant 0 : index
      %131 = vector.load %arg2[%c1_183, %c1_184, %c1_185, %c0_186, %c0_187] : memref<4x3x3x8x4xf32, #tpu.memory_space<vmem>>, vector<1x1x1x8x4xf32>
      %132 = vector.shape_cast %131 : vector<1x1x1x8x4xf32> to vector<8x4xf32>
      %cst_188 = arith.constant dense<0.000000e+00> : vector<8x256xf32>
      %133 = tpu.matmul %132, %123, %cst_188 {dimension_numbers = #tpu.dot_dimension_numbers<[1], [1], [0], [0], [0, 0, 1, 0], [], []>} : vector<8x4xf32>, vector<256x4xf32>, vector<8x256xf32> -> vector<8x256xf32>
      %134 = arith.addf %130, %133 : vector<8x256xf32>
      %c2_189 = arith.constant 2 : index
      %c1_190 = arith.constant 1 : index
      %c1_191 = arith.constant 1 : index
      %c0_192 = arith.constant 0 : index
      %c0_193 = arith.constant 0 : index
      %135 = vector.load %arg2[%c2_189, %c1_190, %c1_191, %c0_192, %c0_193] : memref<4x3x3x8x4xf32, #tpu.memory_space<vmem>>, vector<1x1x1x8x4xf32>
      %136 = vector.shape_cast %135 : vector<1x1x1x8x4xf32> to vector<8x4xf32>
      %cst_194 = arith.constant dense<0.000000e+00> : vector<8x256xf32>
      %137 = tpu.matmul %136, %123, %cst_194 {dimension_numbers = #tpu.dot_dimension_numbers<[1], [1], [0], [0], [0, 0, 1, 0], [], []>} : vector<8x4xf32>, vector<256x4xf32>, vector<8x256xf32> -> vector<8x256xf32>
      %138 = arith.addf %117, %137 : vector<8x256xf32>
      %c3_195 = arith.constant 3 : index
      %c1_196 = arith.constant 1 : index
      %c1_197 = arith.constant 1 : index
      %c0_198 = arith.constant 0 : index
      %c0_199 = arith.constant 0 : index
      %139 = vector.load %arg2[%c3_195, %c1_196, %c1_197, %c0_198, %c0_199] : memref<4x3x3x8x4xf32, #tpu.memory_space<vmem>>, vector<1x1x1x8x4xf32>
      %140 = vector.shape_cast %139 : vector<1x1x1x8x4xf32> to vector<8x4xf32>
      %cst_200 = arith.constant dense<0.000000e+00> : vector<8x256xf32>
      %141 = tpu.matmul %140, %126, %cst_200 {dimension_numbers = #tpu.dot_dimension_numbers<[1], [1], [0], [0], [0, 0, 1, 0], [], []>} : vector<8x4xf32>, vector<256x4xf32>, vector<8x256xf32> -> vector<8x256xf32>
      %142 = arith.addf %138, %141 : vector<8x256xf32>
      %c0_201 = arith.constant 0 : index
      %c1_202 = arith.constant 1 : index
      %c2_203 = arith.constant 2 : index
      %c0_204 = arith.constant 0 : index
      %143 = vector.load %arg7[%c0_201, %c1_202, %c2_203, %c0_204] : memref<2x18x18x4xf32, #tpu.memory_space<vmem>>, vector<1x16x16x4xf32>
      %144 = vector.shape_cast %143 : vector<1x16x16x4xf32> to vector<16x16x4xf32>
      %145 = vector.shape_cast %144 : vector<16x16x4xf32> to vector<256x4xf32>
      %c1_205 = arith.constant 1 : index
      %c1_206 = arith.constant 1 : index
      %c2_207 = arith.constant 2 : index
      %c0_208 = arith.constant 0 : index
      %146 = vector.load %arg7[%c1_205, %c1_206, %c2_207, %c0_208] : memref<2x18x18x4xf32, #tpu.memory_space<vmem>>, vector<1x16x16x4xf32>
      %147 = vector.shape_cast %146 : vector<1x16x16x4xf32> to vector<16x16x4xf32>
      %148 = vector.shape_cast %147 : vector<16x16x4xf32> to vector<256x4xf32>
      %c0_209 = arith.constant 0 : index
      %c0_210 = arith.constant 0 : index
      %c1_211 = arith.constant 1 : index
      %c2_212 = arith.constant 2 : index
      %c0_213 = arith.constant 0 : index
      %149 = vector.load %arg3[%c0_209, %c0_210, %c1_211, %c2_212, %c0_213] : memref<1x1x18x18x4xf32, #tpu.memory_space<vmem>>, vector<1x1x16x16x4xf32>
      %150 = vector.shape_cast %149 : vector<1x1x16x16x4xf32> to vector<16x16x4xf32>
      %151 = vector.shape_cast %150 : vector<16x16x4xf32> to vector<256x4xf32>
      %c0_214 = arith.constant 0 : index
      %c1_215 = arith.constant 1 : index
      %c2_216 = arith.constant 2 : index
      %c0_217 = arith.constant 0 : index
      %c0_218 = arith.constant 0 : index
      %152 = vector.load %arg2[%c0_214, %c1_215, %c2_216, %c0_217, %c0_218] : memref<4x3x3x8x4xf32, #tpu.memory_space<vmem>>, vector<1x1x1x8x4xf32>
      %153 = vector.shape_cast %152 : vector<1x1x1x8x4xf32> to vector<8x4xf32>
      %cst_219 = arith.constant dense<0.000000e+00> : vector<8x256xf32>
      %154 = tpu.matmul %153, %145, %cst_219 {dimension_numbers = #tpu.dot_dimension_numbers<[1], [1], [0], [0], [0, 0, 1, 0], [], []>} : vector<8x4xf32>, vector<256x4xf32>, vector<8x256xf32> -> vector<8x256xf32>
      %155 = arith.addf %134, %154 : vector<8x256xf32>
      %c1_220 = arith.constant 1 : index
      %c1_221 = arith.constant 1 : index
      %c2_222 = arith.constant 2 : index
      %c0_223 = arith.constant 0 : index
      %c0_224 = arith.constant 0 : index
      %156 = vector.load %arg2[%c1_220, %c1_221, %c2_222, %c0_223, %c0_224] : memref<4x3x3x8x4xf32, #tpu.memory_space<vmem>>, vector<1x1x1x8x4xf32>
      %157 = vector.shape_cast %156 : vector<1x1x1x8x4xf32> to vector<8x4xf32>
      %cst_225 = arith.constant dense<0.000000e+00> : vector<8x256xf32>
      %158 = tpu.matmul %157, %148, %cst_225 {dimension_numbers = #tpu.dot_dimension_numbers<[1], [1], [0], [0], [0, 0, 1, 0], [], []>} : vector<8x4xf32>, vector<256x4xf32>, vector<8x256xf32> -> vector<8x256xf32>
      %159 = arith.addf %155, %158 : vector<8x256xf32>
      %c2_226 = arith.constant 2 : index
      %c1_227 = arith.constant 1 : index
      %c2_228 = arith.constant 2 : index
      %c0_229 = arith.constant 0 : index
      %c0_230 = arith.constant 0 : index
      %160 = vector.load %arg2[%c2_226, %c1_227, %c2_228, %c0_229, %c0_230] : memref<4x3x3x8x4xf32, #tpu.memory_space<vmem>>, vector<1x1x1x8x4xf32>
      %161 = vector.shape_cast %160 : vector<1x1x1x8x4xf32> to vector<8x4xf32>
      %cst_231 = arith.constant dense<0.000000e+00> : vector<8x256xf32>
      %162 = tpu.matmul %161, %148, %cst_231 {dimension_numbers = #tpu.dot_dimension_numbers<[1], [1], [0], [0], [0, 0, 1, 0], [], []>} : vector<8x4xf32>, vector<256x4xf32>, vector<8x256xf32> -> vector<8x256xf32>
      %163 = arith.addf %142, %162 : vector<8x256xf32>
      %c3_232 = arith.constant 3 : index
      %c1_233 = arith.constant 1 : index
      %c2_234 = arith.constant 2 : index
      %c0_235 = arith.constant 0 : index
      %c0_236 = arith.constant 0 : index
      %164 = vector.load %arg2[%c3_232, %c1_233, %c2_234, %c0_235, %c0_236] : memref<4x3x3x8x4xf32, #tpu.memory_space<vmem>>, vector<1x1x1x8x4xf32>
      %165 = vector.shape_cast %164 : vector<1x1x1x8x4xf32> to vector<8x4xf32>
      %cst_237 = arith.constant dense<0.000000e+00> : vector<8x256xf32>
      %166 = tpu.matmul %165, %151, %cst_237 {dimension_numbers = #tpu.dot_dimension_numbers<[1], [1], [0], [0], [0, 0, 1, 0], [], []>} : vector<8x4xf32>, vector<256x4xf32>, vector<8x256xf32> -> vector<8x256xf32>
      %167 = arith.addf %163, %166 : vector<8x256xf32>
      %c0_238 = arith.constant 0 : index
      %c2_239 = arith.constant 2 : index
      %c0_240 = arith.constant 0 : index
      %c0_241 = arith.constant 0 : index
      %168 = vector.load %arg7[%c0_238, %c2_239, %c0_240, %c0_241] : memref<2x18x18x4xf32, #tpu.memory_space<vmem>>, vector<1x16x16x4xf32>
      %169 = vector.shape_cast %168 : vector<1x16x16x4xf32> to vector<16x16x4xf32>
      %170 = vector.shape_cast %169 : vector<16x16x4xf32> to vector<256x4xf32>
      %c1_242 = arith.constant 1 : index
      %c2_243 = arith.constant 2 : index
      %c0_244 = arith.constant 0 : index
      %c0_245 = arith.constant 0 : index
      %171 = vector.load %arg7[%c1_242, %c2_243, %c0_244, %c0_245] : memref<2x18x18x4xf32, #tpu.memory_space<vmem>>, vector<1x16x16x4xf32>
      %172 = vector.shape_cast %171 : vector<1x16x16x4xf32> to vector<16x16x4xf32>
      %173 = vector.shape_cast %172 : vector<16x16x4xf32> to vector<256x4xf32>
      %c0_246 = arith.constant 0 : index
      %c0_247 = arith.constant 0 : index
      %c2_248 = arith.constant 2 : index
      %c0_249 = arith.constant 0 : index
      %c0_250 = arith.constant 0 : index
      %174 = vector.load %arg3[%c0_246, %c0_247, %c2_248, %c0_249, %c0_250] : memref<1x1x18x18x4xf32, #tpu.memory_space<vmem>>, vector<1x1x16x16x4xf32>
      %175 = vector.shape_cast %174 : vector<1x1x16x16x4xf32> to vector<16x16x4xf32>
      %176 = vector.shape_cast %175 : vector<16x16x4xf32> to vector<256x4xf32>
      %c0_251 = arith.constant 0 : index
      %c2_252 = arith.constant 2 : index
      %c0_253 = arith.constant 0 : index
      %c0_254 = arith.constant 0 : index
      %c0_255 = arith.constant 0 : index
      %177 = vector.load %arg2[%c0_251, %c2_252, %c0_253, %c0_254, %c0_255] : memref<4x3x3x8x4xf32, #tpu.memory_space<vmem>>, vector<1x1x1x8x4xf32>
      %178 = vector.shape_cast %177 : vector<1x1x1x8x4xf32> to vector<8x4xf32>
      %cst_256 = arith.constant dense<0.000000e+00> : vector<8x256xf32>
      %179 = tpu.matmul %178, %170, %cst_256 {dimension_numbers = #tpu.dot_dimension_numbers<[1], [1], [0], [0], [0, 0, 1, 0], [], []>} : vector<8x4xf32>, vector<256x4xf32>, vector<8x256xf32> -> vector<8x256xf32>
      %180 = arith.addf %159, %179 : vector<8x256xf32>
      %c1_257 = arith.constant 1 : index
      %c2_258 = arith.constant 2 : index
      %c0_259 = arith.constant 0 : index
      %c0_260 = arith.constant 0 : index
      %c0_261 = arith.constant 0 : index
      %181 = vector.load %arg2[%c1_257, %c2_258, %c0_259, %c0_260, %c0_261] : memref<4x3x3x8x4xf32, #tpu.memory_space<vmem>>, vector<1x1x1x8x4xf32>
      %182 = vector.shape_cast %181 : vector<1x1x1x8x4xf32> to vector<8x4xf32>
      %cst_262 = arith.constant dense<0.000000e+00> : vector<8x256xf32>
      %183 = tpu.matmul %182, %173, %cst_262 {dimension_numbers = #tpu.dot_dimension_numbers<[1], [1], [0], [0], [0, 0, 1, 0], [], []>} : vector<8x4xf32>, vector<256x4xf32>, vector<8x256xf32> -> vector<8x256xf32>
      %184 = arith.addf %180, %183 : vector<8x256xf32>
      %c2_263 = arith.constant 2 : index
      %c2_264 = arith.constant 2 : index
      %c0_265 = arith.constant 0 : index
      %c0_266 = arith.constant 0 : index
      %c0_267 = arith.constant 0 : index
      %185 = vector.load %arg2[%c2_263, %c2_264, %c0_265, %c0_266, %c0_267] : memref<4x3x3x8x4xf32, #tpu.memory_space<vmem>>, vector<1x1x1x8x4xf32>
      %186 = vector.shape_cast %185 : vector<1x1x1x8x4xf32> to vector<8x4xf32>
      %cst_268 = arith.constant dense<0.000000e+00> : vector<8x256xf32>
      %187 = tpu.matmul %186, %173, %cst_268 {dimension_numbers = #tpu.dot_dimension_numbers<[1], [1], [0], [0], [0, 0, 1, 0], [], []>} : vector<8x4xf32>, vector<256x4xf32>, vector<8x256xf32> -> vector<8x256xf32>
      %188 = arith.addf %167, %187 : vector<8x256xf32>
      %c3_269 = arith.constant 3 : index
      %c2_270 = arith.constant 2 : index
      %c0_271 = arith.constant 0 : index
      %c0_272 = arith.constant 0 : index
      %c0_273 = arith.constant 0 : index
      %189 = vector.load %arg2[%c3_269, %c2_270, %c0_271, %c0_272, %c0_273] : memref<4x3x3x8x4xf32, #tpu.memory_space<vmem>>, vector<1x1x1x8x4xf32>
      %190 = vector.shape_cast %189 : vector<1x1x1x8x4xf32> to vector<8x4xf32>
      %cst_274 = arith.constant dense<0.000000e+00> : vector<8x256xf32>
      %191 = tpu.matmul %190, %176, %cst_274 {dimension_numbers = #tpu.dot_dimension_numbers<[1], [1], [0], [0], [0, 0, 1, 0], [], []>} : vector<8x4xf32>, vector<256x4xf32>, vector<8x256xf32> -> vector<8x256xf32>
      %192 = arith.addf %188, %191 : vector<8x256xf32>
      %c0_275 = arith.constant 0 : index
      %c2_276 = arith.constant 2 : index
      %c1_277 = arith.constant 1 : index
      %c0_278 = arith.constant 0 : index
      %193 = vector.load %arg7[%c0_275, %c2_276, %c1_277, %c0_278] : memref<2x18x18x4xf32, #tpu.memory_space<vmem>>, vector<1x16x16x4xf32>
      %194 = vector.shape_cast %193 : vector<1x16x16x4xf32> to vector<16x16x4xf32>
      %195 = vector.shape_cast %194 : vector<16x16x4xf32> to vector<256x4xf32>
      %c1_279 = arith.constant 1 : index
      %c2_280 = arith.constant 2 : index
      %c1_281 = arith.constant 1 : index
      %c0_282 = arith.constant 0 : index
      %196 = vector.load %arg7[%c1_279, %c2_280, %c1_281, %c0_282] : memref<2x18x18x4xf32, #tpu.memory_space<vmem>>, vector<1x16x16x4xf32>
      %197 = vector.shape_cast %196 : vector<1x16x16x4xf32> to vector<16x16x4xf32>
      %198 = vector.shape_cast %197 : vector<16x16x4xf32> to vector<256x4xf32>
      %c0_283 = arith.constant 0 : index
      %c0_284 = arith.constant 0 : index
      %c2_285 = arith.constant 2 : index
      %c1_286 = arith.constant 1 : index
      %c0_287 = arith.constant 0 : index
      %199 = vector.load %arg3[%c0_283, %c0_284, %c2_285, %c1_286, %c0_287] : memref<1x1x18x18x4xf32, #tpu.memory_space<vmem>>, vector<1x1x16x16x4xf32>
      %200 = vector.shape_cast %199 : vector<1x1x16x16x4xf32> to vector<16x16x4xf32>
      %201 = vector.shape_cast %200 : vector<16x16x4xf32> to vector<256x4xf32>
      %c0_288 = arith.constant 0 : index
      %c2_289 = arith.constant 2 : index
      %c1_290 = arith.constant 1 : index
      %c0_291 = arith.constant 0 : index
      %c0_292 = arith.constant 0 : index
      %202 = vector.load %arg2[%c0_288, %c2_289, %c1_290, %c0_291, %c0_292] : memref<4x3x3x8x4xf32, #tpu.memory_space<vmem>>, vector<1x1x1x8x4xf32>
      %203 = vector.shape_cast %202 : vector<1x1x1x8x4xf32> to vector<8x4xf32>
      %cst_293 = arith.constant dense<0.000000e+00> : vector<8x256xf32>
      %204 = tpu.matmul %203, %195, %cst_293 {dimension_numbers = #tpu.dot_dimension_numbers<[1], [1], [0], [0], [0, 0, 1, 0], [], []>} : vector<8x4xf32>, vector<256x4xf32>, vector<8x256xf32> -> vector<8x256xf32>
      %205 = arith.addf %184, %204 : vector<8x256xf32>
      %c1_294 = arith.constant 1 : index
      %c2_295 = arith.constant 2 : index
      %c1_296 = arith.constant 1 : index
      %c0_297 = arith.constant 0 : index
      %c0_298 = arith.constant 0 : index
      %206 = vector.load %arg2[%c1_294, %c2_295, %c1_296, %c0_297, %c0_298] : memref<4x3x3x8x4xf32, #tpu.memory_space<vmem>>, vector<1x1x1x8x4xf32>
      %207 = vector.shape_cast %206 : vector<1x1x1x8x4xf32> to vector<8x4xf32>
      %cst_299 = arith.constant dense<0.000000e+00> : vector<8x256xf32>
      %208 = tpu.matmul %207, %198, %cst_299 {dimension_numbers = #tpu.dot_dimension_numbers<[1], [1], [0], [0], [0, 0, 1, 0], [], []>} : vector<8x4xf32>, vector<256x4xf32>, vector<8x256xf32> -> vector<8x256xf32>
      %209 = arith.addf %205, %208 : vector<8x256xf32>
      %c2_300 = arith.constant 2 : index
      %c2_301 = arith.constant 2 : index
      %c1_302 = arith.constant 1 : index
      %c0_303 = arith.constant 0 : index
      %c0_304 = arith.constant 0 : index
      %210 = vector.load %arg2[%c2_300, %c2_301, %c1_302, %c0_303, %c0_304] : memref<4x3x3x8x4xf32, #tpu.memory_space<vmem>>, vector<1x1x1x8x4xf32>
      %211 = vector.shape_cast %210 : vector<1x1x1x8x4xf32> to vector<8x4xf32>
      %cst_305 = arith.constant dense<0.000000e+00> : vector<8x256xf32>
      %212 = tpu.matmul %211, %198, %cst_305 {dimension_numbers = #tpu.dot_dimension_numbers<[1], [1], [0], [0], [0, 0, 1, 0], [], []>} : vector<8x4xf32>, vector<256x4xf32>, vector<8x256xf32> -> vector<8x256xf32>
      %213 = arith.addf %192, %212 : vector<8x256xf32>
      %c3_306 = arith.constant 3 : index
      %c2_307 = arith.constant 2 : index
      %c1_308 = arith.constant 1 : index
      %c0_309 = arith.constant 0 : index
      %c0_310 = arith.constant 0 : index
      %214 = vector.load %arg2[%c3_306, %c2_307, %c1_308, %c0_309, %c0_310] : memref<4x3x3x8x4xf32, #tpu.memory_space<vmem>>, vector<1x1x1x8x4xf32>
      %215 = vector.shape_cast %214 : vector<1x1x1x8x4xf32> to vector<8x4xf32>
      %cst_311 = arith.constant dense<0.000000e+00> : vector<8x256xf32>
      %216 = tpu.matmul %215, %201, %cst_311 {dimension_numbers = #tpu.dot_dimension_numbers<[1], [1], [0], [0], [0, 0, 1, 0], [], []>} : vector<8x4xf32>, vector<256x4xf32>, vector<8x256xf32> -> vector<8x256xf32>
      %217 = arith.addf %213, %216 : vector<8x256xf32>
      %c0_312 = arith.constant 0 : index
      %c2_313 = arith.constant 2 : index
      %c2_314 = arith.constant 2 : index
      %c0_315 = arith.constant 0 : index
      %218 = vector.load %arg7[%c0_312, %c2_313, %c2_314, %c0_315] : memref<2x18x18x4xf32, #tpu.memory_space<vmem>>, vector<1x16x16x4xf32>
      %219 = vector.shape_cast %218 : vector<1x16x16x4xf32> to vector<16x16x4xf32>
      %220 = vector.shape_cast %219 : vector<16x16x4xf32> to vector<256x4xf32>
      %c1_316 = arith.constant 1 : index
      %c2_317 = arith.constant 2 : index
      %c2_318 = arith.constant 2 : index
      %c0_319 = arith.constant 0 : index
      %221 = vector.load %arg7[%c1_316, %c2_317, %c2_318, %c0_319] : memref<2x18x18x4xf32, #tpu.memory_space<vmem>>, vector<1x16x16x4xf32>
      %222 = vector.shape_cast %221 : vector<1x16x16x4xf32> to vector<16x16x4xf32>
      %223 = vector.shape_cast %222 : vector<16x16x4xf32> to vector<256x4xf32>
      %c0_320 = arith.constant 0 : index
      %c0_321 = arith.constant 0 : index
      %c2_322 = arith.constant 2 : index
      %c2_323 = arith.constant 2 : index
      %c0_324 = arith.constant 0 : index
      %224 = vector.load %arg3[%c0_320, %c0_321, %c2_322, %c2_323, %c0_324] : memref<1x1x18x18x4xf32, #tpu.memory_space<vmem>>, vector<1x1x16x16x4xf32>
      %225 = vector.shape_cast %224 : vector<1x1x16x16x4xf32> to vector<16x16x4xf32>
      %226 = vector.shape_cast %225 : vector<16x16x4xf32> to vector<256x4xf32>
      %c0_325 = arith.constant 0 : index
      %c2_326 = arith.constant 2 : index
      %c2_327 = arith.constant 2 : index
      %c0_328 = arith.constant 0 : index
      %c0_329 = arith.constant 0 : index
      %227 = vector.load %arg2[%c0_325, %c2_326, %c2_327, %c0_328, %c0_329] : memref<4x3x3x8x4xf32, #tpu.memory_space<vmem>>, vector<1x1x1x8x4xf32>
      %228 = vector.shape_cast %227 : vector<1x1x1x8x4xf32> to vector<8x4xf32>
      %cst_330 = arith.constant dense<0.000000e+00> : vector<8x256xf32>
      %229 = tpu.matmul %228, %220, %cst_330 {dimension_numbers = #tpu.dot_dimension_numbers<[1], [1], [0], [0], [0, 0, 1, 0], [], []>} : vector<8x4xf32>, vector<256x4xf32>, vector<8x256xf32> -> vector<8x256xf32>
      %230 = arith.addf %209, %229 : vector<8x256xf32>
      %c1_331 = arith.constant 1 : index
      %c2_332 = arith.constant 2 : index
      %c2_333 = arith.constant 2 : index
      %c0_334 = arith.constant 0 : index
      %c0_335 = arith.constant 0 : index
      %231 = vector.load %arg2[%c1_331, %c2_332, %c2_333, %c0_334, %c0_335] : memref<4x3x3x8x4xf32, #tpu.memory_space<vmem>>, vector<1x1x1x8x4xf32>
      %232 = vector.shape_cast %231 : vector<1x1x1x8x4xf32> to vector<8x4xf32>
      %cst_336 = arith.constant dense<0.000000e+00> : vector<8x256xf32>
      %233 = tpu.matmul %232, %223, %cst_336 {dimension_numbers = #tpu.dot_dimension_numbers<[1], [1], [0], [0], [0, 0, 1, 0], [], []>} : vector<8x4xf32>, vector<256x4xf32>, vector<8x256xf32> -> vector<8x256xf32>
      %234 = arith.addf %230, %233 : vector<8x256xf32>
      %c2_337 = arith.constant 2 : index
      %c2_338 = arith.constant 2 : index
      %c2_339 = arith.constant 2 : index
      %c0_340 = arith.constant 0 : index
      %c0_341 = arith.constant 0 : index
      %235 = vector.load %arg2[%c2_337, %c2_338, %c2_339, %c0_340, %c0_341] : memref<4x3x3x8x4xf32, #tpu.memory_space<vmem>>, vector<1x1x1x8x4xf32>
      %236 = vector.shape_cast %235 : vector<1x1x1x8x4xf32> to vector<8x4xf32>
      %cst_342 = arith.constant dense<0.000000e+00> : vector<8x256xf32>
      %237 = tpu.matmul %236, %223, %cst_342 {dimension_numbers = #tpu.dot_dimension_numbers<[1], [1], [0], [0], [0, 0, 1, 0], [], []>} : vector<8x4xf32>, vector<256x4xf32>, vector<8x256xf32> -> vector<8x256xf32>
      %238 = arith.addf %217, %237 : vector<8x256xf32>
      %c3_343 = arith.constant 3 : index
      %c2_344 = arith.constant 2 : index
      %c2_345 = arith.constant 2 : index
      %c0_346 = arith.constant 0 : index
      %c0_347 = arith.constant 0 : index
      %239 = vector.load %arg2[%c3_343, %c2_344, %c2_345, %c0_346, %c0_347] : memref<4x3x3x8x4xf32, #tpu.memory_space<vmem>>, vector<1x1x1x8x4xf32>
      %240 = vector.shape_cast %239 : vector<1x1x1x8x4xf32> to vector<8x4xf32>
      %cst_348 = arith.constant dense<0.000000e+00> : vector<8x256xf32>
      %241 = tpu.matmul %240, %226, %cst_348 {dimension_numbers = #tpu.dot_dimension_numbers<[1], [1], [0], [0], [0, 0, 1, 0], [], []>} : vector<8x4xf32>, vector<256x4xf32>, vector<8x256xf32> -> vector<8x256xf32>
      %242 = arith.addf %238, %241 : vector<8x256xf32>
      %c0_349 = arith.constant 0 : index
      %c0_350 = arith.constant 0 : index
      %c0_351 = arith.constant 0 : index
      %c0_352 = arith.constant 0 : index
      %243 = vector.load %arg4[%c0_349, %c0_350, %c0_351, %c0_352] : memref<1x2x8x256xf32, #tpu.memory_space<vmem>>, vector<1x1x8x256xf32>
      %244 = vector.shape_cast %243 : vector<1x1x8x256xf32> to vector<8x256xf32>
      %245 = vector.shape_cast %234 : vector<8x256xf32> to vector<1x1x8x256xf32>
      tpu.vector_store %arg4[%c0_349, %c0_350, %c0_351, %c0_352], %245 {strides = array<i32>} : memref<1x2x8x256xf32, #tpu.memory_space<vmem>>, vector<1x1x8x256xf32>,
      %c0_353 = arith.constant 0 : index
      %c1_354 = arith.constant 1 : index
      %c0_355 = arith.constant 0 : index
      %c0_356 = arith.constant 0 : index
      %246 = vector.load %arg4[%c0_353, %c1_354, %c0_355, %c0_356] : memref<1x2x8x256xf32, #tpu.memory_space<vmem>>, vector<1x1x8x256xf32>
      %247 = vector.shape_cast %246 : vector<1x1x8x256xf32> to vector<8x256xf32>
      %248 = vector.shape_cast %242 : vector<8x256xf32> to vector<1x1x8x256xf32>
      tpu.vector_store %arg4[%c0_353, %c1_354, %c0_355, %c0_356], %248 {strides = array<i32>} : memref<1x2x8x256xf32, #tpu.memory_space<vmem>>, vector<1x1x8x256xf32>,
      %c0_357 = arith.constant 0 : index
      %c0_358 = arith.constant 0 : index
      %c0_359 = arith.constant 0 : index
      %249 = vector.load %arg5[%c0_357, %c0_358, %c0_359] : memref<1x8x1xf32, #tpu.memory_space<vmem>>, vector<1x8x1xf32>
      %250 = vector.shape_cast %249 : vector<1x8x1xf32> to vector<8x1xf32>
      %cst_360 = arith.constant dense<0.000000e+00> : vector<8xf32>
      %251 = vector.multi_reduction <add>, %234, %cst_360 [1] : vector<8x256xf32> to vector<8xf32>
      %252 = vector.shape_cast %251 : vector<8xf32> to vector<8x1xf32>
      %cst_361 = arith.constant dense<0.000000e+00> : vector<8xf32>
      %253 = vector.multi_reduction <add>, %242, %cst_361 [1] : vector<8x256xf32> to vector<8xf32>
      %254 = vector.shape_cast %253 : vector<8xf32> to vector<8x1xf32>
      %255 = arith.addf %252, %254 : vector<8x1xf32>
      %256 = arith.addf %250, %255 : vector<8x1xf32>
      %c0_362 = arith.constant 0 : index
      %c0_363 = arith.constant 0 : index
      %c0_364 = arith.constant 0 : index
      %257 = vector.load %arg5[%c0_362, %c0_363, %c0_364] : memref<1x8x1xf32, #tpu.memory_space<vmem>>, vector<1x8x1xf32>
      %258 = vector.shape_cast %257 : vector<1x8x1xf32> to vector<8x1xf32>
      %259 = vector.shape_cast %256 : vector<8x1xf32> to vector<1x8x1xf32>
      tpu.vector_store %arg5[%c0_362, %c0_363, %c0_364], %259 {strides = array<i32>} : memref<1x8x1xf32, #tpu.memory_space<vmem>>, vector<1x8x1xf32>,
      %c0_365 = arith.constant 0 : index
      %c0_366 = arith.constant 0 : index
      %c0_367 = arith.constant 0 : index
      %260 = vector.load %arg6[%c0_365, %c0_366, %c0_367] : memref<1x8x1xf32, #tpu.memory_space<vmem>>, vector<1x8x1xf32>
      %261 = vector.shape_cast %260 : vector<1x8x1xf32> to vector<8x1xf32>
      %262 = arith.mulf %234, %234 : vector<8x256xf32>
      %cst_368 = arith.constant dense<0.000000e+00> : vector<8xf32>
      %263 = vector.multi_reduction <add>, %262, %cst_368 [1] : vector<8x256xf32> to vector<8xf32>
      %264 = vector.shape_cast %263 : vector<8xf32> to vector<8x1xf32>
      %265 = arith.mulf %242, %242 : vector<8x256xf32>
      %cst_369 = arith.constant dense<0.000000e+00> : vector<8xf32>
      %266 = vector.multi_reduction <add>, %265, %cst_369 [1] : vector<8x256xf32> to vector<8xf32>
      %267 = vector.shape_cast %266 : vector<8xf32> to vector<8x1xf32>
      %268 = arith.addf %264, %267 : vector<8x1xf32>
      %269 = arith.addf %261, %268 : vector<8x1xf32>
      %c0_370 = arith.constant 0 : index
      %c0_371 = arith.constant 0 : index
      %c0_372 = arith.constant 0 : index
      %270 = vector.load %arg6[%c0_370, %c0_371, %c0_372] : memref<1x8x1xf32, #tpu.memory_space<vmem>>, vector<1x8x1xf32>
      %271 = vector.shape_cast %270 : vector<1x8x1xf32> to vector<8x1xf32>
      %272 = vector.shape_cast %269 : vector<8x1xf32> to vector<1x8x1xf32>
      tpu.vector_store %arg6[%c0_370, %c0_371, %c0_372], %272 {strides = array<i32>} : memref<1x8x1xf32, #tpu.memory_space<vmem>>, vector<1x8x1xf32>,
    } else {
    }
    %c1 = arith.constant 1 : index
    %c0 = arith.constant 0 : index
    %c0_2 = arith.constant 0 : index
    %c0_3 = arith.constant 0 : index
    %6 = vector.load %arg7[%c1, %c0, %c0_2, %c0_3] : memref<2x18x18x4xf32, #tpu.memory_space<vmem>>, vector<1x18x18x4xf32>
    %7 = vector.shape_cast %6 : vector<1x18x18x4xf32> to vector<18x18x4xf32>
    %c0_4 = arith.constant 0 : index
    %c0_5 = arith.constant 0 : index
    %c0_6 = arith.constant 0 : index
    %c0_7 = arith.constant 0 : index
    %8 = vector.load %arg7[%c0_4, %c0_5, %c0_6, %c0_7] : memref<2x18x18x4xf32, #tpu.memory_space<vmem>>, vector<1x18x18x4xf32>
    %9 = vector.shape_cast %8 : vector<1x18x18x4xf32> to vector<18x18x4xf32>
    %10 = vector.shape_cast %7 : vector<18x18x4xf32> to vector<1x18x18x4xf32>
    tpu.vector_store %arg7[%c0_4, %c0_5, %c0_6, %c0_7], %10 {strides = array<i32>} : memref<2x18x18x4xf32, #tpu.memory_space<vmem>>, vector<1x18x18x4xf32>,
    %c0_8 = arith.constant 0 : index
    %c0_9 = arith.constant 0 : index
    %c0_10 = arith.constant 0 : index
    %c0_11 = arith.constant 0 : index
    %c0_12 = arith.constant 0 : index
    %11 = vector.load %arg3[%c0_8, %c0_9, %c0_10, %c0_11, %c0_12] : memref<1x1x18x18x4xf32, #tpu.memory_space<vmem>>, vector<1x1x18x18x4xf32>
    %12 = vector.shape_cast %11 : vector<1x1x18x18x4xf32> to vector<18x18x4xf32>
    %c1_13 = arith.constant 1 : index
    %c0_14 = arith.constant 0 : index
    %c0_15 = arith.constant 0 : index
    %c0_16 = arith.constant 0 : index
    %13 = vector.load %arg7[%c1_13, %c0_14, %c0_15, %c0_16] : memref<2x18x18x4xf32, #tpu.memory_space<vmem>>, vector<1x18x18x4xf32>
    %14 = vector.shape_cast %13 : vector<1x18x18x4xf32> to vector<18x18x4xf32>
    %15 = vector.shape_cast %12 : vector<18x18x4xf32> to vector<1x18x18x4xf32>
    tpu.vector_store %arg7[%c1_13, %c0_14, %c0_15, %c0_16], %15 {strides = array<i32>} : memref<2x18x18x4xf32, #tpu.memory_space<vmem>>, vector<1x18x18x4xf32>,
    return
  }
  func.func @transform_0(%arg0: i32, %arg1: i32) -> (i32, i32, i32, i32, i32) {
    %c0_i32 = arith.constant 0 : i32
    %c0_i32_0 = arith.constant 0 : i32
    %c0_i32_1 = arith.constant 0 : i32
    %c0_i32_2 = arith.constant 0 : i32
    %c0_i32_3 = arith.constant 0 : i32
    %c0_i32_4 = arith.constant 0 : i32
    return %c0_i32, %c0_i32_0, %c0_i32_1, %c0_i32_2, %c0_i32_3 : i32, i32, i32, i32, i32
  }
  func.func @transform_1(%arg0: i32, %arg1: i32) -> (i32, i32, i32, i32, i32) {
    %c0_i32 = arith.constant 0 : i32
    %c0_i32_0 = arith.constant 0 : i32
    %c0_i32_1 = arith.constant 0 : i32
    %c0_i32_2 = arith.constant 0 : i32
    return %arg0, %arg1, %c0_i32, %c0_i32_0, %c0_i32_1 : i32, i32, i32, i32, i32
  }
  func.func @transform_2(%arg0: i32, %arg1: i32) -> (i32, i32, i32, i32) {
    %c2_i32 = arith.constant 2 : i32
    %0 = arith.subi %arg1, %c2_i32 : i32
    %c0_i32 = arith.constant 0 : i32
    %1 = arith.maxsi %0, %c0_i32 : i32
    %c0_i32_0 = arith.constant 0 : i32
    %c0_i32_1 = arith.constant 0 : i32
    %c0_i32_2 = arith.constant 0 : i32
    return %arg0, %1, %c0_i32_0, %c0_i32_1 : i32, i32, i32, i32
  }
  func.func @transform_3(%arg0: i32, %arg1: i32) -> (i32, i32, i32) {
    %c0_i32 = arith.constant 0 : i32
    %c0_i32_0 = arith.constant 0 : i32
    %c0_i32_1 = arith.constant 0 : i32
    return %arg0, %c0_i32, %c0_i32_0 : i32, i32, i32
  }
  func.func @transform_4(%arg0: i32, %arg1: i32) -> (i32, i32, i32) {
    %c0_i32 = arith.constant 0 : i32
    %c0_i32_0 = arith.constant 0 : i32
    %c0_i32_1 = arith.constant 0 : i32
    return %arg0, %c0_i32, %c0_i32_0 : i32, i32, i32
  }
}

module attributes {stable_mosaic.version = 11 : i64} {
  func.func @_bn_relu_kernel(%arg0: i32, %arg1: i32, %arg2: memref<8x1xf32, #tpu.memory_space<vmem>>, %arg3: memref<8x1xf32, #tpu.memory_space<vmem>>, %arg4: memref<1x16x8x256xf32, #tpu.memory_space<vmem>>, %arg5: memref<1x16x8x256xf32, #tpu.memory_space<vmem>>) attributes {dimension_semantics = [#tpu.dimension_semantics<parallel>, #tpu.dimension_semantics<parallel>], iteration_bounds = array<i64: 2, 1>, scalar_prefetch = 0 : i64, scratch_operands = 0 : i64, tpu.core_type = #tpu.core_type<tc>, window_params = [{pipeline_mode = #tpu.pipeline_mode<synchronous>, transform_indices = @transform_0, window_bounds = array<i64: 8, 1>}, {pipeline_mode = #tpu.pipeline_mode<synchronous>, transform_indices = @transform_1, window_bounds = array<i64: 8, 1>}, {transform_indices = @transform_2, window_bounds = array<i64: 1, 16, 8, 256>}, {transform_indices = @transform_3, window_bounds = array<i64: 1, 16, 8, 256>}]} {
    %c0 = arith.constant 0 : index
    %c0_0 = arith.constant 0 : index
    %c0_1 = arith.constant 0 : index
    %c0_2 = arith.constant 0 : index
    %0 = vector.load %arg4[%c0, %c0_0, %c0_1, %c0_2] : memref<1x16x8x256xf32, #tpu.memory_space<vmem>>, vector<1x16x8x256xf32>
    %c0_3 = arith.constant 0 : index
    %c0_4 = arith.constant 0 : index
    %1 = vector.load %arg2[%c0_3, %c0_4] : memref<8x1xf32, #tpu.memory_space<vmem>>, vector<8x1xf32>
    %2 = vector.shape_cast %1 : vector<8x1xf32> to vector<1x1x8x1xf32>
    %3 = vector.broadcast %2 : vector<1x1x8x1xf32> to vector<1x16x8x256xf32>
    %4 = arith.mulf %0, %3 : vector<1x16x8x256xf32>
    %c0_5 = arith.constant 0 : index
    %c0_6 = arith.constant 0 : index
    %5 = vector.load %arg3[%c0_5, %c0_6] : memref<8x1xf32, #tpu.memory_space<vmem>>, vector<8x1xf32>
    %6 = vector.shape_cast %5 : vector<8x1xf32> to vector<1x1x8x1xf32>
    %7 = vector.broadcast %6 : vector<1x1x8x1xf32> to vector<1x16x8x256xf32>
    %8 = arith.addf %4, %7 : vector<1x16x8x256xf32>
    %cst = arith.constant 0.000000e+00 : f32
    %9 = vector.broadcast %cst : f32 to vector<1x16x8x256xf32>
    %10 = arith.maximumf %8, %9 : vector<1x16x8x256xf32>
    %c0_7 = arith.constant 0 : index
    %c0_8 = arith.constant 0 : index
    %c0_9 = arith.constant 0 : index
    %c0_10 = arith.constant 0 : index
    %11 = vector.load %arg5[%c0_7, %c0_8, %c0_9, %c0_10] : memref<1x16x8x256xf32, #tpu.memory_space<vmem>>, vector<1x16x8x256xf32>
    tpu.vector_store %arg5[%c0_7, %c0_8, %c0_9, %c0_10], %10 {strides = array<i32>} : memref<1x16x8x256xf32, #tpu.memory_space<vmem>>, vector<1x16x8x256xf32>,
    return
  }
  func.func @transform_0(%arg0: i32, %arg1: i32) -> (i32, i32) {
    %c0_i32 = arith.constant 0 : i32
    %c0_i32_0 = arith.constant 0 : i32
    %c0_i32_1 = arith.constant 0 : i32
    return %c0_i32, %c0_i32_0 : i32, i32
  }
  func.func @transform_1(%arg0: i32, %arg1: i32) -> (i32, i32) {
    %c0_i32 = arith.constant 0 : i32
    %c0_i32_0 = arith.constant 0 : i32
    %c0_i32_1 = arith.constant 0 : i32
    return %c0_i32, %c0_i32_0 : i32, i32
  }
  func.func @transform_2(%arg0: i32, %arg1: i32) -> (i32, i32, i32, i32) {
    %c0_i32 = arith.constant 0 : i32
    %c0_i32_0 = arith.constant 0 : i32
    %c0_i32_1 = arith.constant 0 : i32
    return %arg0, %arg1, %c0_i32, %c0_i32_0 : i32, i32, i32, i32
  }
  func.func @transform_3(%arg0: i32, %arg1: i32) -> (i32, i32, i32, i32) {
    %c0_i32 = arith.constant 0 : i32
    %c0_i32_0 = arith.constant 0 : i32
    %c0_i32_1 = arith.constant 0 : i32
    return %arg0, %arg1, %c0_i32, %c0_i32_0 : i32, i32, i32, i32
  }
}

</mosaic_0001>

<bundles_post_ra>
// kernel: up_conv.3
= control target key start
LH: loop header
LB: loop body
LE: loop exit
PB: predicated region body
PF: predicated region fallthrough
CT: control target
= control target key end

     0   :  { %s567_s12 = smov 0   ;;  %s569_s13 = smov 0   ;;  %s778_s0 = inlined_call_operand.vmem [shape: f32[8,1], index: 0, kind: input, shape index: {}]   ;;  %s779_s1 = inlined_call_operand.vmem [shape: f32[8,1], index: 1, kind: input, shape index: {}]   ;;  %s780_s2 = inlined_call_operand.vmem [shape: f32[2,16,8,256], index: 2, kind: input, shape index: {}, may-alias: {2,3}]   ;;  %s781_s3 = inlined_call_operand.vmem [shape: f32[2,16,8,256], index: 3, kind: output, shape index: {}, may-alias: {2,3}]  }
   0x1   :  { %s571_s14 = smov 0  }
   0x2 LB: > { %s25_s15 = sadd.s32 1, %s540_s13  ;;  %p487_p0 = scmp.ge.s32.totalorder %s544_s14, 1  ;;  %s544_s14 = sphi %s571_s14, %s13_s14   ;;  %s540_s13 = sphi %s569_s13, %s783_s13   ;;  %s536_s12 = sphi %s567_s12, %s782_s12  }
   0x3   : > { %p27_p1 = scmp.ge.s32.totalorder %s25_s15, 2  ;;  %p159_p2 = scmp.lt.s32.totalorder %s544_s14, 3 }
   0x5   : > { %s785_s15 = smov (%p27_p1, %s25_s15), 0  ;;  %p160_p3 = pnand %p487_p0, %p159_p2 }
   0x6   : > { %p194_p4 = scmp.lt.s32.totalorder (!%p160_p3), %s536_s12, 1 }
   0x7   : > { %163 = sbr.rel (%p160_p3) target bundleno = 173 (0xad), region = 32 }
   0xc   : > { %v247_v0 = vld [vmem:[%s778_s0] sm:$0xff]  ;;  %v546_v1 = vmov 0   ;;  %s787_s12 = smov (!%p194_p4, %s536_s12), 1 }
   0xd   : > { %521 = vset.pattern.permute.xlu0 %v546_v1  ;;  %v285_v2 = vld [vmem:[%s779_s1] sm:$0xff]  ;;  %s494_s20 = sshll.u32 %s787_s12, 8 }
   0xe   : > { %250 = vperm.xlu0 %521, %v247_v0   ;;  %s599_s23 = scalar_lea.vmem %s780_s2, %s494_s20  ;;  %s630_s26 = scalar_lea.vmem %s781_s3, %s494_s20 }
   0xf   : > { %v215_v4 = vld [vmem:[%s599_s23] sm:$0xff]  ;;  %v216_v5 = vld [vmem:[%s599_s23 + $0x8] sm:$0xff]  ;;  %v217_v6 = vld [vmem:[%s599_s23 + $0x10] sm:$0xff] }
  0x10   : > { %v218_v7 = vld [vmem:[%s599_s23 + $0x18] sm:$0xff]  ;;  %v219_v9 = vld [vmem:[%s599_s23 + $0x20] sm:$0xff]  ;;  %v220_v10 = vld [vmem:[%s599_s23 + $0x28] sm:$0xff] }
  0x11   : > { %v221_v14 = vld [vmem:[%s599_s23 + $0x30] sm:$0xff]  ;;  %v222_v16 = vld [vmem:[%s599_s23 + $0x38] sm:$0xff]  ;;  %v223_v17 = vld [vmem:[%s599_s23 + $0x40] sm:$0xff] }
  0x12   : > { %v224_v24 = vld [vmem:[%s599_s23 + $0x48] sm:$0xff]  ;;  %v225_v25 = vld [vmem:[%s599_s23 + $0x50] sm:$0xff]  ;;  %v226_v26 = vld [vmem:[%s599_s23 + $0x58] sm:$0xff] }
  0x13   : > { %v227_v29 = vld [vmem:[%s599_s23 + $0x60] sm:$0xff]  ;;  %v228_v30 = vld [vmem:[%s599_s23 + $0x68] sm:$0xff]  ;;  %v229_v31 = vld [vmem:[%s599_s23 + $0x70] sm:$0xff] }
  0x14   : > { %v230_v32 = vld [vmem:[%s599_s23 + $0x78] sm:$0xff]  ;;  %v231_v33 = vld [vmem:[%s599_s23 + $0x80] sm:$0xff]  ;;  %v232_v34 = vld [vmem:[%s599_s23 + $0x88] sm:$0xff] }
  0x15   : > { %v233_v35 = vld [vmem:[%s599_s23 + $0x90] sm:$0xff]  ;;  %v234_v36 = vld [vmem:[%s599_s23 + $0x98] sm:$0xff]  ;;  %v235_v37 = vld [vmem:[%s599_s23 + $0xa0] sm:$0xff] }
  0x16   : > { %288 = vperm.xlu0 %521, %v285_v2   ;;  %v642_v38 = vld [vmem:[%s599_s23 + $0xa8] sm:$0xff]  ;;  %v645_v39 = vld [vmem:[%s599_s23 + $0xb0] sm:$0xff]  ;;  %v648_v40 = vld [vmem:[%s599_s23 + $0xb8] sm:$0xff] }
  0x17   : > { %v651_v41 = vld [vmem:[%s599_s23 + $0xc0] sm:$0xff]  ;;  %v654_v42 = vld [vmem:[%s599_s23 + $0xc8] sm:$0xff]  ;;  %v660_v46 = vld [vmem:[%s599_s23 + $0xd0] sm:$0xff] }
  0x18   : > { %v663_v47 = vld [vmem:[%s599_s23 + $0xd8] sm:$0xff]  ;;  %v666_v48 = vld [vmem:[%s599_s23 + $0xe0] sm:$0xff]  ;;  %v670_v53 = vld [vmem:[%s599_s23 + $0xe8] sm:$0xff] }
  0x19   : > { %v673_v54 = vld [vmem:[%s599_s23 + $0xf0] sm:$0xff]  ;;  %v676_v55 = vld [vmem:[%s599_s23 + $0xf8] sm:$0xff] }
  0x80   : > { %v593_v3 = vpop.permute.xlu0 %250 }
  0x81   : > { %v253_v11 = vmul.f32 %v593_v3, %v215_v4  ;;  %v254_v12 = vmul.f32 %v593_v3, %v216_v5  ;;  %v255_v13 = vmul.f32 %v593_v3, %v217_v6  ;;  %v256_v15 = vmul.f32 %v593_v3, %v218_v7 }
  0x82   : > { %v257_v18 = vmul.f32 %v593_v3, %v219_v9  ;;  %v258_v22 = vmul.f32 %v593_v3, %v220_v10  ;;  %v259_v27 = vmul.f32 %v593_v3, %v221_v14  ;;  %v260_v43 = vmul.f32 %v593_v3, %v222_v16 }
  0x83   : > { %v261_v44 = vmul.f32 %v593_v3, %v223_v17  ;;  %v262_v56 = vmul.f32 %v593_v3, %v224_v24  ;;  %v263_v59 = vmul.f32 %v593_v3, %v225_v25  ;;  %v264_v62 = vmul.f32 %v593_v3, %v226_v26 }
  0x84   : > { %v265_v1 = vmul.f32 %v593_v3, %v227_v29  ;;  %v266_v5 = vmul.f32 %v593_v3, %v228_v30  ;;  %v267_v9 = vmul.f32 %v593_v3, %v229_v31  ;;  %v272_v24 = vmul.f32 %v593_v3, %v234_v36 }
  0x85   : > { %v274_v30 = vmul.f32 %v593_v3, %v642_v38  ;;  %v276_v36 = vmul.f32 %v593_v3, %v648_v40  ;;  %v277_v38 = vmul.f32 %v593_v3, %v651_v41  ;;  %v279_v40 = vmul.f32 %v593_v3, %v660_v46 }
  0x86   : > { %v280_v41 = vmul.f32 %v593_v3, %v663_v47  ;;  %v282_v46 = vmul.f32 %v593_v3, %v670_v53 }
  0x88   : > { %v605_v8 = vpop.permute.xlu0 %288 }
  0x89   : > { %v291_v19 = vadd.f32 %v605_v8, %v253_v11  ;;  %v292_v20 = vadd.f32 %v605_v8, %v254_v12  ;;  %v293_v21 = vadd.f32 %v605_v8, %v255_v13  ;;  %v294_v23 = vadd.f32 %v605_v8, %v256_v15 }
  0x8a   : > { %v295_v28 = vadd.f32 %v605_v8, %v257_v18  ;;  %v296_v45 = vadd.f32 %v605_v8, %v258_v22  ;;  %v297_v49 = vadd.f32 %v605_v8, %v259_v27  ;;  %v298_v57 = vadd.f32 %v605_v8, %v260_v43 }
  0x8b   : > { %v323_v50 = vmax.f32 %v291_v19, 0.0  ;;  %v324_v51 = vmax.f32 %v292_v20, 0.0  ;;  %v325_v52 = vmax.f32 %v293_v21, 0.0  ;;  %v326_v58 = vmax.f32 %v294_v23, 0.0 }
  0x8c   : > { %v299_v60 = vadd.f32 %v605_v8, %v261_v44  ;;  %v327_v61 = vmax.f32 %v295_v28, 0.0  ;;  %v300_v63 = vadd.f32 %v605_v8, %v262_v56  ;;  %v328_v0 = vmax.f32 %v296_v45, 0.0 }
  0x8d   : > { %355 = vst [vmem:[%s630_s26] sm:$0xff] %v323_v50  ;;  %v301_v2 = vadd.f32 %v605_v8, %v263_v59  ;;  %v329_v4 = vmax.f32 %v297_v49, 0.0  ;;  %v302_v6 = vadd.f32 %v605_v8, %v264_v62  ;;  %v330_v7 = vmax.f32 %v298_v57, 0.0 }
  0x8e   : > { %356 = vst [vmem:[%s630_s26 + $0x8] sm:$0xff] %v324_v51  ;;  %v303_v10 = vadd.f32 %v605_v8, %v265_v1  ;;  %v331_v11 = vmax.f32 %v299_v60, 0.0  ;;  %v268_v12 = vmul.f32 %v593_v3, %v230_v32  ;;  %v304_v13 = vadd.f32 %v605_v8, %v266_v5 }
  0x8f   : > { %357 = vst [vmem:[%s630_s26 + $0x10] sm:$0xff] %v325_v52  ;;  %v332_v14 = vmax.f32 %v300_v63, 0.0  ;;  %v269_v15 = vmul.f32 %v593_v3, %v231_v33  ;;  %v305_v16 = vadd.f32 %v605_v8, %v267_v9  ;;  %v333_v17 = vmax.f32 %v301_v2, 0.0 }
  0x90   : > { %358 = vst [vmem:[%s630_s26 + $0x18] sm:$0xff] %v326_v58  ;;  %v270_v18 = vmul.f32 %v593_v3, %v232_v34  ;;  %v306_v19 = vadd.f32 %v605_v8, %v268_v12  ;;  %v334_v20 = vmax.f32 %v302_v6, 0.0  ;;  %v271_v21 = vmul.f32 %v593_v3, %v233_v35 }
  0x91   : > { %359 = vst [vmem:[%s630_s26 + $0x20] sm:$0xff] %v327_v61  ;;  %v307_v22 = vadd.f32 %v605_v8, %v269_v15  ;;  %v335_v23 = vmax.f32 %v303_v10, 0.0  ;;  %v336_v26 = vmax.f32 %v304_v13, 0.0  ;;  %v273_v27 = vmul.f32 %v593_v3, %v235_v37 }
  0x92   : > { %360 = vst [vmem:[%s630_s26 + $0x28] sm:$0xff] %v328_v0  ;;  %v308_v25 = vadd.f32 %v605_v8, %v270_v18  ;;  %v309_v28 = vadd.f32 %v605_v8, %v271_v21  ;;  %v337_v29 = vmax.f32 %v305_v16, 0.0  ;;  %v310_v31 = vadd.f32 %v605_v8, %v272_v24 }
  0x93   : > { %361 = vst [vmem:[%s630_s26 + $0x30] sm:$0xff] %v329_v4  ;;  %v338_v32 = vmax.f32 %v306_v19, 0.0  ;;  %v275_v33 = vmul.f32 %v593_v3, %v645_v39  ;;  %v311_v34 = vadd.f32 %v605_v8, %v273_v27  ;;  %v339_v35 = vmax.f32 %v307_v22, 0.0 }
  0x94   : > { %362 = vst [vmem:[%s630_s26 + $0x38] sm:$0xff] %v330_v7  ;;  %v312_v37 = vadd.f32 %v605_v8, %v274_v30  ;;  %v340_v43 = vmax.f32 %v308_v25, 0.0  ;;  %v341_v45 = vmax.f32 %v309_v28, 0.0  ;;  %v278_v39 = vmul.f32 %v593_v3, %v654_v42 }
  0x95   : > { %363 = vst [vmem:[%s630_s26 + $0x40] sm:$0xff] %v331_v11  ;;  %v313_v44 = vadd.f32 %v605_v8, %v275_v33  ;;  %v314_v49 = vadd.f32 %v605_v8, %v276_v36  ;;  %v342_v50 = vmax.f32 %v310_v31, 0.0  ;;  %v315_v51 = vadd.f32 %v605_v8, %v277_v38 }
  0x96   : > { %364 = vst [vmem:[%s630_s26 + $0x48] sm:$0xff] %v332_v14  ;;  %v343_v52 = vmax.f32 %v311_v34, 0.0  ;;  %v316_v56 = vadd.f32 %v605_v8, %v278_v39  ;;  %v344_v57 = vmax.f32 %v312_v37, 0.0  ;;  %v281_v42 = vmul.f32 %v593_v3, %v666_v48 }
  0x97   : > { %365 = vst [vmem:[%s630_s26 + $0x50] sm:$0xff] %v333_v17  ;;  %v317_v58 = vadd.f32 %v605_v8, %v279_v40  ;;  %v345_v59 = vmax.f32 %v313_v44, 0.0  ;;  %v318_v60 = vadd.f32 %v605_v8, %v280_v41  ;;  %v346_v47 = vmax.f32 %v314_v49, 0.0 }
  0x98   : > { %366 = vst [vmem:[%s630_s26 + $0x58] sm:$0xff] %v334_v20  ;;  %v283_v61 = vmul.f32 %v593_v3, %v673_v54  ;;  %v319_v62 = vadd.f32 %v605_v8, %v281_v42  ;;  %v347_v48 = vmax.f32 %v315_v51, 0.0  ;;  %v284_v63 = vmul.f32 %v593_v3, %v676_v55 }
  0x99   : > { %367 = vst [vmem:[%s630_s26 + $0x60] sm:$0xff] %v335_v23  ;;  %v320_v53 = vadd.f32 %v605_v8, %v282_v46  ;;  %v348_v0 = vmax.f32 %v316_v56, 0.0  ;;  %v349_v54 = vmax.f32 %v317_v58, 0.0  ;;  %v350_v4 = vmax.f32 %v318_v60, 0.0 }
  0x9a   : > { %368 = vst [vmem:[%s630_s26 + $0x68] sm:$0xff] %v336_v26  ;;  %v321_v1 = vadd.f32 %v605_v8, %v283_v61  ;;  %v322_v2 = vadd.f32 %v605_v8, %v284_v63  ;;  %v351_v5 = vmax.f32 %v319_v62, 0.0 }
  0x9b   : > { %369 = vst [vmem:[%s630_s26 + $0x70] sm:$0xff] %v337_v29  ;;  %v352_v3 = vmax.f32 %v320_v53, 0.0 }
  0x9c   : > { %370 = vst [vmem:[%s630_s26 + $0x78] sm:$0xff] %v338_v32  ;;  %v353_v55 = vmax.f32 %v321_v1, 0.0  ;;  %v354_v6 = vmax.f32 %v322_v2, 0.0 }
  0x9d   : > { %371 = vst [vmem:[%s630_s26 + $0x80] sm:$0xff] %v339_v35 }
  0x9e   : > { %372 = vst [vmem:[%s630_s26 + $0x88] sm:$0xff] %v340_v43 }
  0x9f   : > { %373 = vst [vmem:[%s630_s26 + $0x90] sm:$0xff] %v341_v45 }
  0xa0   : > { %374 = vst [vmem:[%s630_s26 + $0x98] sm:$0xff] %v342_v50 }
  0xa1   : > { %375 = vst [vmem:[%s630_s26 + $0xa0] sm:$0xff] %v343_v52 }
  0xa2   : > { %376 = vst [vmem:[%s630_s26 + $0xa8] sm:$0xff] %v344_v57 }
  0xa3   : > { %377 = vst [vmem:[%s630_s26 + $0xb0] sm:$0xff] %v345_v59 }
  0xa4   : > { %378 = vst [vmem:[%s630_s26 + $0xb8] sm:$0xff] %v346_v47 }
  0xa5   : > { %379 = vst [vmem:[%s630_s26 + $0xc0] sm:$0xff] %v347_v48 }
  0xa6   : > { %380 = vst [vmem:[%s630_s26 + $0xc8] sm:$0xff] %v348_v0 }
  0xa7   : > { %381 = vst [vmem:[%s630_s26 + $0xd0] sm:$0xff] %v349_v54 }
  0xa8   : > { %382 = vst [vmem:[%s630_s26 + $0xd8] sm:$0xff] %v350_v4 }
  0xa9   : > { %383 = vst [vmem:[%s630_s26 + $0xe0] sm:$0xff] %v351_v5 }
  0xaa   : > { %384 = vst [vmem:[%s630_s26 + $0xe8] sm:$0xff] %v352_v3 }
  0xab   : > { %385 = vst [vmem:[%s630_s26 + $0xf0] sm:$0xff] %v353_v55 }
  0xac   : > { %386 = vst [vmem:[%s630_s26 + $0xf8] sm:$0xff] %v354_v6 }
  0xad PF: > { %s13_s14 = sadd.s32 1, %s544_s14   ;;  %s782_s12 = smov %s540_s13 }
  0xae   : > { %p10_p5 = scmp.ge.s32.totalorder %s13_s14, 4   ;;  %s783_s13 = smov %s785_s15 }
  0xb0   :  { %12 = sbr.rel (!%p10_p5) target bundleno = 2 (0x2), region = 62 }

// kernel: up_conv.2
= control target key start
LH: loop header
LB: loop body
LE: loop exit
PB: predicated region body
PF: predicated region fallthrough
CT: control target
= control target key end

     0   :  { %s7431_s15 = smov 0   ;;  %s7433_s16 = smov 0   ;;  %s10555_s0 = inlined_call_operand.vmem [shape: f32[4,3,3,8,4], index: 0, kind: input, shape index: {}]   ;;  %s10556_s1 = inlined_call_operand.vmem [shape: f32[2,10,18,18,4], index: 1, kind: input, shape index: {}]   ;;  %s10557_s2 = inlined_call_operand.vmem [shape: f32[2,16,8,256], index: 2, kind: output, shape index: {0}]   ;;  %s10558_s3 = inlined_call_operand.vmem [shape: f32[2,8,1], index: 3, kind: output, shape index: {1}]   ;;  %s10559_s4 = inlined_call_operand.vmem [shape: f32[2,8,1], index: 4, kind: output, shape index: {2}]  }
   0x1   :  { %s7435_s17 = smov 0   ;;  %s7437_s18 = smov 0  }
   0x2   :  { %s7439_s19 = smov 0  }
   0x3 LB: > { %s24_s20 = sadd.s32 1, %s7395_s17  ;;  %s27_s21 = sadd.s32 1, %s7399_s18  ;;  %s7403_s19 = sphi %s7439_s19, %s15_s19   ;;  %s7399_s18 = sphi %s7437_s18, %s10563_s18   ;;  %s7395_s17 = sphi %s7435_s17, %s10562_s17   ;;  %s7391_s16 = sphi %s7433_s16, %s10561_s16   ;;  %s7387_s15 = sphi %s7431_s15, %s10560_s15  }
   0x4   : > { %p25_p0 = scmp.ge.s32.totalorder %s24_s20, 10  ;;  %p5856_p1 = scmp.ge.s32.totalorder %s7403_s19, 1 }
   0x5   : > { %p193_p2 = scmp.lt.s32.totalorder %s7403_s19, 21 }
   0x6   : > { %s10565_s20 = smov (%p25_p0, %s24_s20), 0  ;;  %s10567_s21 = smov (!%p25_p0, %s27_s21), %s7399_s18 }
   0x7   : > { %p194_p3 = pnand %p5856_p1, %p193_p2  ;;  %p29_p4 = scmp.ge.s32.totalorder %s10567_s21, 2 }
   0x8   : > { %p239_p5 = scmp.lt.s32.totalorder (!%p194_p3), %s7391_s16, 1  ;;  %p241_p6 = scmp.lt.s32.totalorder (!%p194_p3), %s7387_s15, 9 }
   0x9   : > { %s10569_s21 = smov (%p29_p4, %s10567_s21), 0  ;;  %197 = sbr.rel (%p194_p3) target bundleno = 1558 (0x616), region = 28 }
   0xa   : > { %s5858_s22 = sadd.s32 (!%p194_p3), 4294967294, %s7387_s15  ;;  %p5865_p9 = scmp.ne.s32.totalorder (!%p194_p3), %s7387_s15, 0 }
   0xb   : > { %p249_p7 = scmp.gt.s32.totalorder (!%p194_p3), %s5858_s22, 0 }
   0xe   : > { %s10571_s16 = smov (!%p239_p5, %s7391_s16), 1  ;;  %s10573_s22 = smov (!%p249_p7, %s5858_s22), 0 }
   0xf   : > { %s242_s23 = scalar_select %p241_p6, %s7387_s15, 9 }
  0x10   : > { %s7323_s24 = smul.u32 540, %s10571_s16  ;;  %s5861_s26 = sshll.u32 %s10571_s16, 5 }
  0x11   : > { %s7322_s25 = smul.u32 54, %s242_s23  ;;  %s5863_s28 = sshll.u32 %s10571_s16, 3 }
  0x12   : > { %s5859_s30 = sshll.u32 %s10573_s22, 1  ;;  %s7474_s10 = scalar_lea.vmem %s10558_s3, %s5863_s28 }
  0x13   : > { %s245_s27 = sadd.s32 %s7323_s24, %s7322_s25  ;;  %p254_p8 = scmp.lt.s32.totalorder %s5859_s30, 15 }
  0x14   : > { %s5857_s29 = sshll.u32 %s245_s27, 3  ;;  %s7479_s13 = scalar_lea.vmem %s10559_s4, %s5863_s28 }
  0x15   : > { %s7469_s7 = scalar_lea.vmem %s10556_s1, %s5857_s29  ;;  %s10575_s30 = smov (!%p254_p8, %s5859_s30), 15 }
  0x16   : > { %s5860_s14 = sshll.u32 %s10575_s30, 1  ;;  %276 = sbr.rel (%p5865_p9) target bundleno = 30 (0x1e), region = 32 }
  0x17   : > { %s258_s16 = sadd.s32 %s5861_s26, %s5860_s14 }
  0x18   : > { %s5862_s22 = sshll.u32 %s258_s16, 3 }
  0x19   : > { %s7484_s25 = scalar_lea.vmem %s10557_s2, %s5862_s22 }
  0x1b   : > { %vm277_vm0 = vcmask 7168   ;;  %v7405_v0 = vmov 0.0  }
  0x1c   : > { %278 = vst.msk [vmem:[%s7474_s10] sm:$0xff] %vm277_vm0, %v7405_v0 }
  0x1d   : > { %279 = vst.msk [vmem:[%s7479_s13] sm:$0xff] %vm277_vm0, %v7405_v0 }
  0x1e PF: > { %p5866_p10 = scmp.lt.s32.totalorder %s7387_s15, 2 }
  0x20   : > { %283 = sbr.rel (%p5866_p10) target bundleno = 1449 (0x5a9), region = 36 }
  0x25   : > { %v7490_v1 = vld [vmem:[#allocation2 + $0x260] sm:$0xff]  ;;  %vm384_vm1 = vcmask 31744   ;;  %v299_v3 = vld [vmem:[#allocation2 + $0xb0] sm:$0xff]  ;;  %v7500_v5 = vld [vmem:[#allocation2 + $0x258] sm:$0xff]  ;;  %vm5445_vm2 = vcmask 7168  }
  0x26   : > { %v7492_v2 = vld [vmem:[#allocation2 + $0x320] sm:$0xff]  ;;  %5868 = vmatpush.xpose.msk.msra.mxu0 %vm384_vm1, %v7490_v1  ;;  %v315_v4 = vld [vmem:[#allocation2 + $0x170] sm:$0xff]  ;;  %5902 = vmatpush.xpose.msk.msra.mxu2 %vm384_vm1, %v299_v3  ;;  %v7502_v6 = vld [vmem:[#allocation2 + $0x318] sm:$0xff] }
  0x27   : > { %5885 = vmatpush.xpose.msk.msra.mxu1 %vm384_vm1, %v7492_v2  ;;  %5919 = vmatpush.xpose.msk.msra.mxu3 %vm384_vm1, %v315_v4  ;;  %v298_v7 = vld [vmem:[#allocation2 + $0xa8] sm:$0xff]  ;;  %v297_v11 = vld [vmem:[#allocation2 + $0x98] sm:$0xff]  ;;  %v7520_v13 = vld [vmem:[#allocation2 + $0x240] sm:$0xff] }
  0x28   : > { %v314_v8 = vld [vmem:[#allocation2 + $0x168] sm:$0xff]  ;;  %v313_v12 = vld [vmem:[#allocation2 + $0x158] sm:$0xff]  ;;  %v7522_v14 = vld [vmem:[#allocation2 + $0x300] sm:$0xff] }
  0x29   : > { %v7510_v9 = vld [vmem:[#allocation2 + $0x248] sm:$0xff]  ;;  %v296_v15 = vld [vmem:[#allocation2 + $0x90] sm:$0xff]  ;;  %v295_v19 = vld [vmem:[#allocation2 + $0x80] sm:$0xff] }
  0x2a   : > { %5869 = vmatpush.xpose.msk.msra.mxu0 %vm384_vm1, %v7500_v5  ;;  %5903 = vmatpush.xpose.msk.msra.mxu2 %vm384_vm1, %v298_v7  ;;  %v7512_v10 = vld [vmem:[#allocation2 + $0x308] sm:$0xff]  ;;  %v312_v16 = vld [vmem:[#allocation2 + $0x150] sm:$0xff]  ;;  %v311_v20 = vld [vmem:[#allocation2 + $0x140] sm:$0xff] }
  0x2b   : > { %5886 = vmatpush.xpose.msk.msra.mxu1 %vm384_vm1, %v7502_v6  ;;  %5920 = vmatpush.xpose.msk.msra.mxu3 %vm384_vm1, %v314_v8  ;;  %v7530_v17 = vld [vmem:[#allocation2 + $0x230] sm:$0xff]  ;;  %v7540_v21 = vld [vmem:[#allocation2 + $0x228] sm:$0xff]  ;;  %v294_v23 = vld [vmem:[#allocation2 + $0x78] sm:$0xff] }
  0x2c   : > { %v7532_v18 = vld [vmem:[#allocation2 + $0x2f0] sm:$0xff]  ;;  %v7542_v22 = vld [vmem:[#allocation2 + $0x2e8] sm:$0xff]  ;;  %v310_v24 = vld [vmem:[#allocation2 + $0x138] sm:$0xff] }
  0x2d   : > { %v7550_v25 = vld [vmem:[#allocation2 + $0x218] sm:$0xff]  ;;  %v293_v27 = vld [vmem:[#allocation2 + $0x68] sm:$0xff]  ;;  %v7560_v29 = vld [vmem:[#allocation2 + $0x210] sm:$0xff] }
  0x2e   : > { %5870 = vmatpush.xpose.msk.msra.mxu0 %vm384_vm1, %v7510_v9  ;;  %5904 = vmatpush.xpose.msk.msra.mxu2 %vm384_vm1, %v297_v11  ;;  %v7552_v26 = vld [vmem:[#allocation2 + $0x2d8] sm:$0xff]  ;;  %v309_v28 = vld [vmem:[#allocation2 + $0x128] sm:$0xff]  ;;  %v7562_v30 = vld [vmem:[#allocation2 + $0x2d0] sm:$0xff] }
  0x2f   : > { %5887 = vmatpush.xpose.msk.msra.mxu1 %vm384_vm1, %v7512_v10  ;;  %5921 = vmatpush.xpose.msk.msra.mxu3 %vm384_vm1, %v313_v12  ;;  %v292_v31 = vld [vmem:[#allocation2 + $0x60] sm:$0xff]  ;;  %v291_v35 = vld [vmem:[#allocation2 + $0x50] sm:$0xff]  ;;  %v7580_v37 = vld [vmem:[#allocation2 + $0x1f8] sm:$0xff] }
  0x30   : > { %v308_v32 = vld [vmem:[#allocation2 + $0x120] sm:$0xff]  ;;  %v307_v36 = vld [vmem:[#allocation2 + $0x110] sm:$0xff]  ;;  %v7582_v38 = vld [vmem:[#allocation2 + $0x2b8] sm:$0xff] }
  0x31   : > { %v7570_v33 = vld [vmem:[#allocation2 + $0x200] sm:$0xff]  ;;  %v290_v39 = vld [vmem:[#allocation2 + $0x48] sm:$0xff]  ;;  %v289_v43 = vld [vmem:[#allocation2 + $0x38] sm:$0xff] }
  0x32   : > { %5871 = vmatpush.xpose.msk.msra.mxu0 %vm384_vm1, %v7520_v13  ;;  %5905 = vmatpush.xpose.msk.msra.mxu2 %vm384_vm1, %v296_v15  ;;  %v7572_v34 = vld [vmem:[#allocation2 + $0x2c0] sm:$0xff]  ;;  %v306_v40 = vld [vmem:[#allocation2 + $0x108] sm:$0xff]  ;;  %v305_v44 = vld [vmem:[#allocation2 + $0xf8] sm:$0xff] }
  0x33   : > { %5888 = vmatpush.xpose.msk.msra.mxu1 %vm384_vm1, %v7522_v14  ;;  %5922 = vmatpush.xpose.msk.msra.mxu3 %vm384_vm1, %v312_v16  ;;  %v7590_v41 = vld [vmem:[#allocation2 + $0x1e8] sm:$0xff]  ;;  %v7600_v45 = vld [vmem:[#allocation2 + $0x1e0] sm:$0xff]  ;;  %v288_v47 = vld [vmem:[#allocation2 + $0x30] sm:$0xff] }
  0x34   : > { %v7592_v42 = vld [vmem:[#allocation2 + $0x2a8] sm:$0xff]  ;;  %v7602_v46 = vld [vmem:[#allocation2 + $0x2a0] sm:$0xff]  ;;  %v304_v48 = vld [vmem:[#allocation2 + $0xf0] sm:$0xff] }
  0x35   : > { %v7610_v49 = vld [vmem:[#allocation2 + $0x1d0] sm:$0xff]  ;;  %v287_v51 = vld [vmem:[#allocation2 + $0x20] sm:$0xff]  ;;  %v7620_v53 = vld [vmem:[#allocation2 + $0x1c8] sm:$0xff] }
  0x36   : > { %5872 = vmatpush.xpose.msk.msra.mxu0 %vm384_vm1, %v7530_v17  ;;  %5906 = vmatpush.xpose.msk.msra.mxu2 %vm384_vm1, %v295_v19  ;;  %v7612_v50 = vld [vmem:[#allocation2 + $0x290] sm:$0xff]  ;;  %v303_v52 = vld [vmem:[#allocation2 + $0xe0] sm:$0xff]  ;;  %v7622_v54 = vld [vmem:[#allocation2 + $0x288] sm:$0xff] }
  0x37   : > { %5889 = vmatpush.xpose.msk.msra.mxu1 %vm384_vm1, %v7532_v18  ;;  %5923 = vmatpush.xpose.msk.msra.mxu3 %vm384_vm1, %v311_v20  ;;  %v286_v55 = vld [vmem:[#allocation2 + $0x18] sm:$0xff]  ;;  %v285_v59 = vld [vmem:[#allocation2 + $0x8] sm:$0xff]  ;;  %v7640_v61 = vld [vmem:[#allocation2 + $0x1b0] sm:$0xff] }
  0x38   : > { %v302_v56 = vld [vmem:[#allocation2 + $0xd8] sm:$0xff]  ;;  %v301_v60 = vld [vmem:[#allocation2 + $0xc8] sm:$0xff]  ;;  %v7642_v62 = vld [vmem:[#allocation2 + $0x270] sm:$0xff] }
  0x39   : > { %v7630_v57 = vld [vmem:[#allocation2 + $0x1b8] sm:$0xff]  ;;  %v284_v63 = vld [vmem:[#allocation2] sm:$0xff]  ;;  %v364_v3 = vld [vmem:[%s7469_s7 + $0xb0] sm:$0xff] }
  0x3a   : > { %5873 = vmatpush.xpose.msk.msra.mxu0 %vm384_vm1, %v7540_v21  ;;  %5907 = vmatpush.xpose.msk.msra.mxu2 %vm384_vm1, %v294_v23  ;;  %v7632_v58 = vld [vmem:[#allocation2 + $0x278] sm:$0xff]  ;;  %v300_v0 = vld [vmem:[#allocation2 + $0xc0] sm:$0xff]  ;;  %v380_v4 = vld [vmem:[%s7469_s7 + $0x170] sm:$0xff] }
  0x3b   : > { %5890 = vmatpush.xpose.msk.msra.mxu1 %vm384_vm1, %v7542_v22  ;;  %5924 = vmatpush.xpose.msk.msra.mxu3 %vm384_vm1, %v310_v24  ;;  %v363_v7 = vld [vmem:[%s7469_s7 + $0xa8] sm:$0xff]  ;;  %v362_v11 = vld [vmem:[%s7469_s7 + $0x98] sm:$0xff]  ;;  %v357_v15 = vld [vmem:[%s7469_s7 + $0x60] sm:$0xff] }
  0x3c   : > { %v379_v8 = vld [vmem:[%s7469_s7 + $0x168] sm:$0xff]  ;;  %v378_v12 = vld [vmem:[%s7469_s7 + $0x158] sm:$0xff]  ;;  %v373_v16 = vld [vmem:[%s7469_s7 + $0x120] sm:$0xff] }
  0x3d   : > { %v372_v19 = vld [vmem:[%s7469_s7 + $0x110] sm:$0xff]  ;;  %v5867_v20 = vld [vmem:[%s10555_s0 + $0x48] sm:$0xff]  ;;  %v354_v23 = vld [vmem:[%s7469_s7 + $0x38] sm:$0xff] }
  0x3e   : > { %5874 = vmatpush.xpose.msk.msra.mxu0 %vm384_vm1, %v7550_v25  ;;  %5908 = vmatpush.xpose.msk.msra.mxu2 %vm384_vm1, %v293_v27  ;;  %v370_v24 = vld [vmem:[%s7469_s7 + $0xf8] sm:$0xff]  ;;  %v352_v27 = vld [vmem:[%s7469_s7 + $0x20] sm:$0xff] }
  0x3f   : > { %5891 = vmatpush.xpose.msk.msra.mxu1 %vm384_vm1, %v7552_v26  ;;  %5925 = vmatpush.xpose.msk.msra.mxu3 %vm384_vm1, %v309_v28  ;;  %v368_v28 = vld [vmem:[%s7469_s7 + $0xe0] sm:$0xff] }
  0x42   : > { %5875 = vmatpush.xpose.msk.msra.mxu0 %vm384_vm1, %v7560_v29  ;;  %5909 = vmatpush.xpose.msk.msra.mxu2 %vm384_vm1, %v292_v31  ;;  %v350_v31 = vld [vmem:[%s7469_s7 + $0x8] sm:$0xff] }
  0x43   : > { %5892 = vmatpush.xpose.msk.msra.mxu1 %vm384_vm1, %v7562_v30  ;;  %5926 = vmatpush.xpose.msk.msra.mxu3 %vm384_vm1, %v308_v32  ;;  %v366_v32 = vld [vmem:[%s7469_s7 + $0xc8] sm:$0xff] }
  0x46   : > { %5876 = vmatpush.xpose.msk.msra.mxu0 %vm384_vm1, %v7570_v33  ;;  %5910 = vmatpush.xpose.msk.msra.mxu2 %vm384_vm1, %v291_v35  ;;  %v864_v35 = vld [vmem:[#allocation2 + $0xb1] sm:$0xff] }
  0x47   : > { %5893 = vmatpush.xpose.msk.msra.mxu1 %vm384_vm1, %v7572_v34  ;;  %5927 = vmatpush.xpose.msk.msra.mxu3 %vm384_vm1, %v307_v36  ;;  %v880_v36 = vld [vmem:[#allocation2 + $0x171] sm:$0xff] }
  0x4a   : > { %5877 = vmatpush.xpose.msk.msra.mxu0 %vm384_vm1, %v7580_v37  ;;  %5911 = vmatpush.xpose.msk.msra.mxu2 %vm384_vm1, %v290_v39  ;;  %v863_v39 = vld [vmem:[#allocation2 + $0xa9] sm:$0xff] }
  0x4b   : > { %5894 = vmatpush.xpose.msk.msra.mxu1 %vm384_vm1, %v7582_v38  ;;  %5928 = vmatpush.xpose.msk.msra.mxu3 %vm384_vm1, %v306_v40  ;;  %v879_v40 = vld [vmem:[#allocation2 + $0x169] sm:$0xff] }
  0x4e   : > { %5878 = vmatpush.xpose.msk.msra.mxu0 %vm384_vm1, %v7590_v41  ;;  %5912 = vmatpush.xpose.msk.msra.mxu2 %vm384_vm1, %v289_v43  ;;  %v862_v43 = vld [vmem:[#allocation2 + $0x99] sm:$0xff] }
  0x4f   : > { %5895 = vmatpush.xpose.msk.msra.mxu1 %vm384_vm1, %v7592_v42  ;;  %5929 = vmatpush.xpose.msk.msra.mxu3 %vm384_vm1, %v305_v44  ;;  %v878_v44 = vld [vmem:[#allocation2 + $0x159] sm:$0xff] }
  0x52   : > { %5879 = vmatpush.xpose.msk.msra.mxu0 %vm384_vm1, %v7600_v45  ;;  %5913 = vmatpush.xpose.msk.msra.mxu2 %vm384_vm1, %v288_v47  ;;  %v861_v47 = vld [vmem:[#allocation2 + $0x91] sm:$0xff] }
  0x53   : > { %5896 = vmatpush.xpose.msk.msra.mxu1 %vm384_vm1, %v7602_v46  ;;  %5930 = vmatpush.xpose.msk.msra.mxu3 %vm384_vm1, %v304_v48  ;;  %v877_v48 = vld [vmem:[#allocation2 + $0x151] sm:$0xff] }
  0x56   : > { %5880 = vmatpush.xpose.msk.msra.mxu0 %vm384_vm1, %v7610_v49  ;;  %5914 = vmatpush.xpose.msk.msra.mxu2 %vm384_vm1, %v287_v51  ;;  %v860_v51 = vld [vmem:[#allocation2 + $0x81] sm:$0xff] }
  0x57   : > { %5897 = vmatpush.xpose.msk.msra.mxu1 %vm384_vm1, %v7612_v50  ;;  %5931 = vmatpush.xpose.msk.msra.mxu3 %vm384_vm1, %v303_v52  ;;  %v876_v52 = vld [vmem:[#allocation2 + $0x141] sm:$0xff] }
  0x5a   : > { %5881 = vmatpush.xpose.msk.msra.mxu0 %vm384_vm1, %v7620_v53  ;;  %5915 = vmatpush.xpose.msk.msra.mxu2 %vm384_vm1, %v286_v55  ;;  %v859_v55 = vld [vmem:[#allocation2 + $0x79] sm:$0xff] }
  0x5b   : > { %5898 = vmatpush.xpose.msk.msra.mxu1 %vm384_vm1, %v7622_v54  ;;  %5932 = vmatpush.xpose.msk.msra.mxu3 %vm384_vm1, %v302_v56  ;;  %v875_v56 = vld [vmem:[#allocation2 + $0x139] sm:$0xff] }
  0x5e   : > { %5882 = vmatpush.xpose.msk.msra.mxu0 %vm384_vm1, %v7630_v57  ;;  %5916 = vmatpush.xpose.msk.msra.mxu2 %vm384_vm1, %v285_v59  ;;  %v858_v59 = vld [vmem:[#allocation2 + $0x69] sm:$0xff] }
  0x5f   : > { %5899 = vmatpush.xpose.msk.msra.mxu1 %vm384_vm1, %v7632_v58  ;;  %5933 = vmatpush.xpose.msk.msra.mxu3 %vm384_vm1, %v301_v60  ;;  %v874_v60 = vld [vmem:[#allocation2 + $0x129] sm:$0xff] }
  0x62   : > { %5883 = vmatpush.xpose.msk.msra.mxu0 %vm384_vm1, %v7640_v61  ;;  %5917 = vmatpush.xpose.msk.msra.mxu2 %vm384_vm1, %v284_v63  ;;  %v7854_v63 = vld [vmem:[#allocation2 + $0x219] sm:$0xff] }
  0x63   : > { %5900 = vmatpush.xpose.msk.msra.mxu1 %vm384_vm1, %v7642_v62  ;;  %5934 = vmatpush.xpose.msk.msra.mxu3 %vm384_vm1, %v300_v0  ;;  %v7856_v0 = vld [vmem:[#allocation2 + $0x2d9] sm:$0xff] }
  0x65   : > { %5884 = vmatmul.msk.f32.vlgmr.msra.gmra.mxu0 %vm384_vm1, %v5867_v20 }
  0x66   : > { %5938 = vmatpush.xpose.msk.msrb.mxu0 %vm384_vm1, %v364_v3  ;;  %5972 = vmatpush.xpose.msk.msrb.mxu2 %vm384_vm1, %v7490_v1  ;;  %v361_v1 = vld [vmem:[%s7469_s7 + $0x90] sm:$0xff]  ;;  %v857_v3 = vld [vmem:[#allocation2 + $0x61] sm:$0xff] }
  0x67   : > { %5955 = vmatpush.xpose.msk.msrb.mxu1 %vm384_vm1, %v380_v4  ;;  %5989 = vmatpush.xpose.msk.msrb.mxu3 %vm384_vm1, %v7492_v2  ;;  %v377_v2 = vld [vmem:[%s7469_s7 + $0x150] sm:$0xff]  ;;  %v873_v4 = vld [vmem:[#allocation2 + $0x121] sm:$0xff] }
  0x68   : > { %5901 = vmatmul.msk.f32.vlgmr.msra.gmra.mxu1 %vm384_vm1, %v5867_v20  ;;  %v7910_v20 = vld [vmem:[#allocation2 + $0x2a1] sm:$0xff] }
  0x6a   : > { %5939 = vmatpush.xpose.msk.msrb.mxu0 %vm384_vm1, %v363_v7  ;;  %5973 = vmatpush.xpose.msk.msrb.mxu2 %vm384_vm1, %v7500_v5  ;;  %v360_v5 = vld [vmem:[%s7469_s7 + $0x80] sm:$0xff]  ;;  %v7868_v7 = vld [vmem:[#allocation2 + $0x211] sm:$0xff] }
  0x6b   : > { %5956 = vmatpush.xpose.msk.msrb.mxu1 %vm384_vm1, %v379_v8  ;;  %5990 = vmatpush.xpose.msk.msrb.mxu3 %vm384_vm1, %v7502_v6  ;;  %v376_v6 = vld [vmem:[%s7469_s7 + $0x140] sm:$0xff]  ;;  %v7870_v8 = vld [vmem:[#allocation2 + $0x2d1] sm:$0xff] }
  0x6e   : > { %5940 = vmatpush.xpose.msk.msrb.mxu0 %vm384_vm1, %v362_v11  ;;  %5974 = vmatpush.xpose.msk.msrb.mxu2 %vm384_vm1, %v7510_v9  ;;  %v359_v9 = vld [vmem:[%s7469_s7 + $0x78] sm:$0xff] }
  0x6f   : > { %5957 = vmatpush.xpose.msk.msrb.mxu1 %vm384_vm1, %v378_v12  ;;  %5991 = vmatpush.xpose.msk.msrb.mxu3 %vm384_vm1, %v7512_v10  ;;  %v375_v10 = vld [vmem:[%s7469_s7 + $0x138] sm:$0xff] }
  0x70   : > { %v856_v11 = vld [vmem:[#allocation2 + $0x51] sm:$0xff] }
  0x71   : > { %v872_v12 = vld [vmem:[#allocation2 + $0x111] sm:$0xff] }
  0x72   : > { %5941 = vmatpush.xpose.msk.msrb.mxu0 %vm384_vm1, %v361_v1  ;;  %5975 = vmatpush.xpose.msk.msrb.mxu2 %vm384_vm1, %v7520_v13  ;;  %v358_v13 = vld [vmem:[%s7469_s7 + $0x68] sm:$0xff] }
  0x73   : > { %5958 = vmatpush.xpose.msk.msrb.mxu1 %vm384_vm1, %v377_v2  ;;  %5992 = vmatpush.xpose.msk.msrb.mxu3 %vm384_vm1, %v7522_v14  ;;  %v374_v14 = vld [vmem:[%s7469_s7 + $0x128] sm:$0xff] }
  0x74   : > { %v7878_v1 = vld [vmem:[#allocation2 + $0x201] sm:$0xff] }
  0x75   : > { %v7880_v2 = vld [vmem:[#allocation2 + $0x2c1] sm:$0xff] }
  0x76   : > { %5942 = vmatpush.xpose.msk.msrb.mxu0 %vm384_vm1, %v360_v5  ;;  %5976 = vmatpush.xpose.msk.msrb.mxu2 %vm384_vm1, %v7530_v17  ;;  %v381_v17 = vld [vmem:[%s10555_s0] sm:$0xff]  ;;  %v855_v5 = vld [vmem:[#allocation2 + $0x49] sm:$0xff] }
  0x77   : > { %5959 = vmatpush.xpose.msk.msrb.mxu1 %vm384_vm1, %v376_v6  ;;  %5993 = vmatpush.xpose.msk.msrb.mxu3 %vm384_vm1, %v7532_v18  ;;  %v356_v18 = vld [vmem:[%s7469_s7 + $0x50] sm:$0xff] }
  0x78   : > { %5918 = vmatmul.msk.f32.vlgmr.msra.gmra.mxu2 %vm384_vm1, %v381_v17  ;;  %5935 = vmatmul.msk.f32.vlgmr.msra.gmra.mxu3 %vm384_vm1, %v381_v17  ;;  %v871_v6 = vld [vmem:[#allocation2 + $0x109] sm:$0xff]  ;;  %v853_v17 = vld [vmem:[#allocation2 + $0x31] sm:$0xff] }
  0x7a   : > { %5943 = vmatpush.xpose.msk.msrb.mxu0 %vm384_vm1, %v359_v9  ;;  %5977 = vmatpush.xpose.msk.msrb.mxu2 %vm384_vm1, %v7540_v21  ;;  %v355_v21 = vld [vmem:[%s7469_s7 + $0x48] sm:$0xff]  ;;  %v7888_v9 = vld [vmem:[#allocation2 + $0x1f9] sm:$0xff] }
  0x7b   : > { %5960 = vmatpush.xpose.msk.msrb.mxu1 %vm384_vm1, %v375_v10  ;;  %5994 = vmatpush.xpose.msk.msrb.mxu3 %vm384_vm1, %v7542_v22  ;;  %v371_v22 = vld [vmem:[%s7469_s7 + $0x108] sm:$0xff]  ;;  %v7890_v10 = vld [vmem:[#allocation2 + $0x2b9] sm:$0xff] }
  0x7e   : > { %5944 = vmatpush.xpose.msk.msrb.mxu0 %vm384_vm1, %v358_v13  ;;  %5978 = vmatpush.xpose.msk.msrb.mxu2 %vm384_vm1, %v7550_v25  ;;  %v353_v25 = vld [vmem:[%s7469_s7 + $0x30] sm:$0xff]  ;;  %v854_v13 = vld [vmem:[#allocation2 + $0x39] sm:$0xff] }
  0x7f   : > { %5961 = vmatpush.xpose.msk.msrb.mxu1 %vm384_vm1, %v374_v14  ;;  %5995 = vmatpush.xpose.msk.msrb.mxu3 %vm384_vm1, %v7552_v26  ;;  %v369_v26 = vld [vmem:[%s7469_s7 + $0xf0] sm:$0xff]  ;;  %v870_v14 = vld [vmem:[#allocation2 + $0xf9] sm:$0xff] }
  0x82   : > { %5945 = vmatpush.xpose.msk.msrb.mxu0 %vm384_vm1, %v357_v15  ;;  %5979 = vmatpush.xpose.msk.msrb.mxu2 %vm384_vm1, %v7560_v29  ;;  %v351_v29 = vld [vmem:[%s7469_s7 + $0x18] sm:$0xff]  ;;  %v7898_v15 = vld [vmem:[#allocation2 + $0x1e9] sm:$0xff] }
  0x83   : > { %5962 = vmatpush.xpose.msk.msrb.mxu1 %vm384_vm1, %v373_v16  ;;  %5996 = vmatpush.xpose.msk.msrb.mxu3 %vm384_vm1, %v7562_v30  ;;  %v367_v30 = vld [vmem:[%s7469_s7 + $0xd8] sm:$0xff]  ;;  %v7900_v16 = vld [vmem:[#allocation2 + $0x2a9] sm:$0xff] }
  0x86   : > { %5946 = vmatpush.xpose.msk.msrb.mxu0 %vm384_vm1, %v356_v18  ;;  %5980 = vmatpush.xpose.msk.msrb.mxu2 %vm384_vm1, %v7570_v33  ;;  %v349_v33 = vld [vmem:[%s7469_s7] sm:$0xff]  ;;  %v869_v18 = vld [vmem:[#allocation2 + $0xf1] sm:$0xff] }
  0x87   : > { %5963 = vmatpush.xpose.msk.msrb.mxu1 %vm384_vm1, %v372_v19  ;;  %5997 = vmatpush.xpose.msk.msrb.mxu3 %vm384_vm1, %v7572_v34  ;;  %v365_v34 = vld [vmem:[%s7469_s7 + $0xc0] sm:$0xff] }
  0x88   : > { %v7908_v19 = vld [vmem:[#allocation2 + $0x1e1] sm:$0xff] }
  0x8a   : > { %5947 = vmatpush.xpose.msk.msrb.mxu0 %vm384_vm1, %v355_v21  ;;  %5981 = vmatpush.xpose.msk.msrb.mxu2 %vm384_vm1, %v7580_v37  ;;  %v7784_v37 = vld [vmem:[#allocation2 + $0x261] sm:$0xff] }
  0x8b   : > { %5964 = vmatpush.xpose.msk.msrb.mxu1 %vm384_vm1, %v371_v22  ;;  %5998 = vmatpush.xpose.msk.msrb.mxu3 %vm384_vm1, %v7582_v38  ;;  %v7786_v38 = vld [vmem:[#allocation2 + $0x321] sm:$0xff] }
  0x8c   : > { %v852_v21 = vld [vmem:[#allocation2 + $0x21] sm:$0xff] }
  0x8d   : > { %v868_v22 = vld [vmem:[#allocation2 + $0xe1] sm:$0xff] }
  0x8e   : > { %5948 = vmatpush.xpose.msk.msrb.mxu0 %vm384_vm1, %v354_v23  ;;  %5982 = vmatpush.xpose.msk.msrb.mxu2 %vm384_vm1, %v7590_v41  ;;  %v7798_v41 = vld [vmem:[#allocation2 + $0x259] sm:$0xff]  ;;  %v7918_v23 = vld [vmem:[#allocation2 + $0x1d1] sm:$0xff] }
  0x8f   : > { %5965 = vmatpush.xpose.msk.msrb.mxu1 %vm384_vm1, %v370_v24  ;;  %5999 = vmatpush.xpose.msk.msrb.mxu3 %vm384_vm1, %v7592_v42  ;;  %v7800_v42 = vld [vmem:[#allocation2 + $0x319] sm:$0xff]  ;;  %v7920_v24 = vld [vmem:[#allocation2 + $0x291] sm:$0xff] }
  0x92   : > { %5949 = vmatpush.xpose.msk.msrb.mxu0 %vm384_vm1, %v353_v25  ;;  %5983 = vmatpush.xpose.msk.msrb.mxu2 %vm384_vm1, %v7600_v45  ;;  %v7808_v45 = vld [vmem:[#allocation2 + $0x249] sm:$0xff]  ;;  %v851_v25 = vld [vmem:[#allocation2 + $0x19] sm:$0xff] }
  0x93   : > { %5966 = vmatpush.xpose.msk.msrb.mxu1 %vm384_vm1, %v369_v26  ;;  %6000 = vmatpush.xpose.msk.msrb.mxu3 %vm384_vm1, %v7602_v46  ;;  %v7810_v46 = vld [vmem:[#allocation2 + $0x309] sm:$0xff]  ;;  %v867_v26 = vld [vmem:[#allocation2 + $0xd9] sm:$0xff] }
  0x96   : > { %5950 = vmatpush.xpose.msk.msrb.mxu0 %vm384_vm1, %v352_v27  ;;  %5984 = vmatpush.xpose.msk.msrb.mxu2 %vm384_vm1, %v7610_v49  ;;  %v7818_v49 = vld [vmem:[#allocation2 + $0x241] sm:$0xff]  ;;  %v7928_v27 = vld [vmem:[#allocation2 + $0x1c9] sm:$0xff] }
  0x97   : > { %5967 = vmatpush.xpose.msk.msrb.mxu1 %vm384_vm1, %v368_v28  ;;  %6001 = vmatpush.xpose.msk.msrb.mxu3 %vm384_vm1, %v7612_v50  ;;  %v7820_v50 = vld [vmem:[#allocation2 + $0x301] sm:$0xff]  ;;  %v7930_v28 = vld [vmem:[#allocation2 + $0x289] sm:$0xff] }
  0x9a   : > { %5951 = vmatpush.xpose.msk.msrb.mxu0 %vm384_vm1, %v351_v29  ;;  %5985 = vmatpush.xpose.msk.msrb.mxu2 %vm384_vm1, %v7620_v53  ;;  %v7828_v53 = vld [vmem:[#allocation2 + $0x231] sm:$0xff]  ;;  %v850_v29 = vld [vmem:[#allocation2 + $0x9] sm:$0xff] }
  0x9b   : > { %5968 = vmatpush.xpose.msk.msrb.mxu1 %vm384_vm1, %v367_v30  ;;  %6002 = vmatpush.xpose.msk.msrb.mxu3 %vm384_vm1, %v7622_v54  ;;  %v7830_v54 = vld [vmem:[#allocation2 + $0x2f1] sm:$0xff]  ;;  %v866_v30 = vld [vmem:[#allocation2 + $0xc9] sm:$0xff] }
  0x9e   : > { %5952 = vmatpush.xpose.msk.msrb.mxu0 %vm384_vm1, %v350_v31  ;;  %5986 = vmatpush.xpose.msk.msrb.mxu2 %vm384_vm1, %v7630_v57  ;;  %v7838_v57 = vld [vmem:[#allocation2 + $0x229] sm:$0xff]  ;;  %v7938_v31 = vld [vmem:[#allocation2 + $0x1b9] sm:$0xff] }
  0x9f   : > { %5969 = vmatpush.xpose.msk.msrb.mxu1 %vm384_vm1, %v366_v32  ;;  %6003 = vmatpush.xpose.msk.msrb.mxu3 %vm384_vm1, %v7632_v58  ;;  %v7840_v58 = vld [vmem:[#allocation2 + $0x2e9] sm:$0xff]  ;;  %v7940_v32 = vld [vmem:[#allocation2 + $0x279] sm:$0xff] }
  0xa2   : > { %5953 = vmatpush.xpose.msk.msrb.mxu0 %vm384_vm1, %v349_v33  ;;  %5987 = vmatpush.xpose.msk.msrb.mxu2 %vm384_vm1, %v7640_v61  ;;  %v5937_v61 = vld [vmem:[%s10555_s0 + $0xd8] sm:$0xff]  ;;  %v849_v33 = vld [vmem:[#allocation2 + $0x1] sm:$0xff] }
  0xa3   : > { %5970 = vmatpush.xpose.msk.msrb.mxu1 %vm384_vm1, %v365_v34  ;;  %6004 = vmatpush.xpose.msk.msrb.mxu3 %vm384_vm1, %v7642_v62  ;;  %v5936_v62 = vld [vmem:[%s10555_s0 + $0x90] sm:$0xff]  ;;  %v865_v34 = vld [vmem:[#allocation2 + $0xc1] sm:$0xff] }
  0xa5   : > { %5954 = vmatmul.msk.f32.vlgmr.msrb.gmra.mxu0 %vm384_vm1, %v5937_v61  ;;  %5988 = vmatmul.msk.f32.vlgmr.msrb.gmra.mxu2 %vm384_vm1, %v5936_v62 }
  0xa6   : > { %6007 = vmatpush.xpose.msk.msra.mxu0 %vm384_vm1, %v864_v35  ;;  %6042 = vmatpush.xpose.msk.msra.mxu2 %vm384_vm1, %v7784_v37  ;;  %v7948_v35 = vld [vmem:[#allocation2 + $0x1b1] sm:$0xff] }
  0xa7   : > { %6024 = vmatpush.xpose.msk.msra.mxu1 %vm384_vm1, %v880_v36  ;;  %6059 = vmatpush.xpose.msk.msra.mxu3 %vm384_vm1, %v7786_v38  ;;  %v7950_v36 = vld [vmem:[#allocation2 + $0x271] sm:$0xff] }
  0xa8   : > { %5971 = vmatmul.msk.f32.vlgmr.msrb.gmra.mxu1 %vm384_vm1, %v5937_v61  ;;  %6005 = vmatmul.msk.f32.vlgmr.msrb.gmra.mxu3 %vm384_vm1, %v5936_v62 }
  0xaa   : > { %6008 = vmatpush.xpose.msk.msra.mxu0 %vm384_vm1, %v863_v39  ;;  %6043 = vmatpush.xpose.msk.msra.mxu2 %vm384_vm1, %v7798_v41  ;;  %v928_v39 = vld [vmem:[%s7469_s7 + $0xb1] sm:$0xff] }
  0xab   : > { %6025 = vmatpush.xpose.msk.msra.mxu1 %vm384_vm1, %v879_v40  ;;  %6060 = vmatpush.xpose.msk.msra.mxu3 %vm384_vm1, %v7800_v42  ;;  %v944_v40 = vld [vmem:[%s7469_s7 + $0x171] sm:$0xff] }
  0xae   : > { %6009 = vmatpush.xpose.msk.msra.mxu0 %vm384_vm1, %v862_v43  ;;  %6044 = vmatpush.xpose.msk.msra.mxu2 %vm384_vm1, %v7808_v45  ;;  %v6006_v43 = vld [vmem:[%s10555_s0 + $0x8] sm:$0xff] }
  0xaf   : > { %6026 = vmatpush.xpose.msk.msra.mxu1 %vm384_vm1, %v878_v44  ;;  %6061 = vmatpush.xpose.msk.msra.mxu3 %vm384_vm1, %v7810_v46  ;;  %v6041_v44 = vld [vmem:[%s10555_s0 + $0x50] sm:$0xff] }
  0xb2   : > { %6010 = vmatpush.xpose.msk.msra.mxu0 %vm384_vm1, %v861_v47  ;;  %6045 = vmatpush.xpose.msk.msra.mxu2 %vm384_vm1, %v7818_v49  ;;  %v927_v47 = vld [vmem:[%s7469_s7 + $0xa9] sm:$0xff] }
  0xb3   : > { %6027 = vmatpush.xpose.msk.msra.mxu1 %vm384_vm1, %v877_v48  ;;  %6062 = vmatpush.xpose.msk.msra.mxu3 %vm384_vm1, %v7820_v50  ;;  %v942_v48 = vld [vmem:[%s7469_s7 + $0x159] sm:$0xff] }
  0xb6   : > { %6011 = vmatpush.xpose.msk.msra.mxu0 %vm384_vm1, %v860_v51  ;;  %6046 = vmatpush.xpose.msk.msra.mxu2 %vm384_vm1, %v7828_v53  ;;  %v922_v51 = vld [vmem:[%s7469_s7 + $0x69] sm:$0xff] }
  0xb7   : > { %6028 = vmatpush.xpose.msk.msra.mxu1 %vm384_vm1, %v876_v52  ;;  %6063 = vmatpush.xpose.msk.msra.mxu3 %vm384_vm1, %v7830_v54  ;;  %v938_v52 = vld [vmem:[%s7469_s7 + $0x129] sm:$0xff] }
  0xba   : > { %6012 = vmatpush.xpose.msk.msra.mxu0 %vm384_vm1, %v859_v55  ;;  %6047 = vmatpush.xpose.msk.msra.mxu2 %vm384_vm1, %v7838_v57  ;;  %v920_v55 = vld [vmem:[%s7469_s7 + $0x51] sm:$0xff] }
  0xbb   : > { %6029 = vmatpush.xpose.msk.msra.mxu1 %vm384_vm1, %v875_v56  ;;  %6064 = vmatpush.xpose.msk.msra.mxu3 %vm384_vm1, %v7840_v58  ;;  %v936_v56 = vld [vmem:[%s7469_s7 + $0x111] sm:$0xff] }
  0xbe   : > { %6013 = vmatpush.xpose.msk.msra.mxu0 %vm384_vm1, %v858_v59  ;;  %6048 = vmatpush.xpose.msk.msra.mxu2 %vm384_vm1, %v7854_v63 }
  0xbf   : > { %6030 = vmatpush.xpose.msk.msra.mxu1 %vm384_vm1, %v874_v60  ;;  %6065 = vmatpush.xpose.msk.msra.mxu3 %vm384_vm1, %v7856_v0 }
  0xc2   : > { %6014 = vmatpush.xpose.msk.msra.mxu0 %vm384_vm1, %v857_v3  ;;  %6049 = vmatpush.xpose.msk.msra.mxu2 %vm384_vm1, %v7868_v7  ;;  %v918_v3 = vld [vmem:[%s7469_s7 + $0x39] sm:$0xff] }
  0xc3   : > { %6031 = vmatpush.xpose.msk.msra.mxu1 %vm384_vm1, %v873_v4  ;;  %6066 = vmatpush.xpose.msk.msra.mxu3 %vm384_vm1, %v7870_v8  ;;  %v934_v4 = vld [vmem:[%s7469_s7 + $0xf9] sm:$0xff] }
  0xc6   : > { %6015 = vmatpush.xpose.msk.msra.mxu0 %vm384_vm1, %v856_v11  ;;  %6050 = vmatpush.xpose.msk.msra.mxu2 %vm384_vm1, %v7878_v1  ;;  %v916_v11 = vld [vmem:[%s7469_s7 + $0x21] sm:$0xff] }
  0xc7   : > { %6032 = vmatpush.xpose.msk.msra.mxu1 %vm384_vm1, %v872_v12  ;;  %6067 = vmatpush.xpose.msk.msra.mxu3 %vm384_vm1, %v7880_v2  ;;  %v932_v12 = vld [vmem:[%s7469_s7 + $0xe1] sm:$0xff] }
  0xca   : > { %6016 = vmatpush.xpose.msk.msra.mxu0 %vm384_vm1, %v855_v5  ;;  %6051 = vmatpush.xpose.msk.msra.mxu2 %vm384_vm1, %v7888_v9  ;;  %v914_v5 = vld [vmem:[%s7469_s7 + $0x9] sm:$0xff] }
  0xcb   : > { %6033 = vmatpush.xpose.msk.msra.mxu1 %vm384_vm1, %v871_v6  ;;  %6068 = vmatpush.xpose.msk.msra.mxu3 %vm384_vm1, %v7890_v10  ;;  %v930_v6 = vld [vmem:[%s7469_s7 + $0xc9] sm:$0xff] }
  0xce   : > { %6017 = vmatpush.xpose.msk.msra.mxu0 %vm384_vm1, %v854_v13  ;;  %6052 = vmatpush.xpose.msk.msra.mxu2 %vm384_vm1, %v7898_v15  ;;  %v1436_v13 = vld [vmem:[#allocation2 + $0xb2] sm:$0xff] }
  0xcf   : > { %6034 = vmatpush.xpose.msk.msra.mxu1 %vm384_vm1, %v870_v14  ;;  %6069 = vmatpush.xpose.msk.msra.mxu3 %vm384_vm1, %v7900_v16  ;;  %v1452_v14 = vld [vmem:[#allocation2 + $0x172] sm:$0xff] }
  0xd2   : > { %6018 = vmatpush.xpose.msk.msra.mxu0 %vm384_vm1, %v853_v17  ;;  %6053 = vmatpush.xpose.msk.msra.mxu2 %vm384_vm1, %v7908_v19  ;;  %v6076_v17 = vld [vmem:[%s10555_s0 + $0x98] sm:$0xff] }
  0xd3   : > { %6035 = vmatpush.xpose.msk.msra.mxu1 %vm384_vm1, %v869_v18  ;;  %6070 = vmatpush.xpose.msk.msra.mxu3 %vm384_vm1, %v7910_v20  ;;  %v6111_v18 = vld [vmem:[%s10555_s0 + $0xe0] sm:$0xff] }
  0xd6   : > { %6019 = vmatpush.xpose.msk.msra.mxu0 %vm384_vm1, %v852_v21  ;;  %6054 = vmatpush.xpose.msk.msra.mxu2 %vm384_vm1, %v7918_v23  ;;  %v8118_v21 = vld [vmem:[#allocation2 + $0x25a] sm:$0xff] }
  0xd7   : > { %6036 = vmatpush.xpose.msk.msra.mxu1 %vm384_vm1, %v868_v22  ;;  %6071 = vmatpush.xpose.msk.msra.mxu3 %vm384_vm1, %v7920_v24  ;;  %v8120_v22 = vld [vmem:[#allocation2 + $0x31a] sm:$0xff] }
  0xda   : > { %6020 = vmatpush.xpose.msk.msra.mxu0 %vm384_vm1, %v851_v25  ;;  %6055 = vmatpush.xpose.msk.msra.mxu2 %vm384_vm1, %v7928_v27  ;;  %v8130_v25 = vld [vmem:[#allocation2 + $0x24a] sm:$0xff] }
  0xdb   : > { %6037 = vmatpush.xpose.msk.msra.mxu1 %vm384_vm1, %v867_v26  ;;  %6072 = vmatpush.xpose.msk.msra.mxu3 %vm384_vm1, %v7930_v28  ;;  %v8132_v26 = vld [vmem:[#allocation2 + $0x30a] sm:$0xff] }
  0xde   : > { %6021 = vmatpush.xpose.msk.msra.mxu0 %vm384_vm1, %v850_v29  ;;  %6056 = vmatpush.xpose.msk.msra.mxu2 %vm384_vm1, %v7938_v31  ;;  %v8140_v29 = vld [vmem:[#allocation2 + $0x242] sm:$0xff] }
  0xdf   : > { %6038 = vmatpush.xpose.msk.msra.mxu1 %vm384_vm1, %v866_v30  ;;  %6073 = vmatpush.xpose.msk.msra.mxu3 %vm384_vm1, %v7940_v32  ;;  %v8142_v30 = vld [vmem:[#allocation2 + $0x302] sm:$0xff] }
  0xe2   : > { %6022 = vmatpush.xpose.msk.msra.mxu0 %vm384_vm1, %v849_v33  ;;  %6057 = vmatpush.xpose.msk.msra.mxu2 %vm384_vm1, %v7948_v35  ;;  %v501_v59 = vpop.f32.mrf.mxu0  ;;  %v8150_v33 = vld [vmem:[#allocation2 + $0x232] sm:$0xff] }
  0xe3   : > { %6039 = vmatpush.xpose.msk.msra.mxu1 %vm384_vm1, %v865_v34  ;;  %6074 = vmatpush.xpose.msk.msra.mxu3 %vm384_vm1, %v7950_v36  ;;  %v8152_v34 = vld [vmem:[#allocation2 + $0x2f2] sm:$0xff] }
  0xe5   : > { %6023 = vmatmul.msk.f32.vlgmr.msra.gmra.mxu0 %vm384_vm1, %v6006_v43  ;;  %6058 = vmatmul.msk.f32.vlgmr.msra.gmra.mxu2 %vm384_vm1, %v6041_v44  ;;  %v521_v60 = vpop.f32.mrf.mxu1 }
  0xe6   : > { %6077 = vmatpush.xpose.msk.msrb.mxu0 %vm384_vm1, %v7784_v37  ;;  %6112 = vmatpush.xpose.msk.msrb.mxu2 %vm384_vm1, %v928_v39  ;;  %v943_v37 = vld [vmem:[%s7469_s7 + $0x169] sm:$0xff] }
  0xe7   : > { %6094 = vmatpush.xpose.msk.msrb.mxu1 %vm384_vm1, %v7786_v38  ;;  %6129 = vmatpush.xpose.msk.msrb.mxu3 %vm384_vm1, %v944_v40  ;;  %v926_v38 = vld [vmem:[%s7469_s7 + $0x99] sm:$0xff]  ;;  %v8160_v39 = vld [vmem:[#allocation2 + $0x22a] sm:$0xff] }
  0xe8   : > { %6040 = vmatmul.msk.f32.vlgmr.msra.gmra.mxu1 %vm384_vm1, %v6006_v43  ;;  %6075 = vmatmul.msk.f32.vlgmr.msra.gmra.mxu3 %vm384_vm1, %v6041_v44  ;;  %v8162_v40 = vld [vmem:[#allocation2 + $0x2ea] sm:$0xff] }
  0xe9   : > { %v1430_v43 = vld [vmem:[#allocation2 + $0x6a] sm:$0xff] }
  0xea   : > { %6078 = vmatpush.xpose.msk.msrb.mxu0 %vm384_vm1, %v7798_v41  ;;  %6113 = vmatpush.xpose.msk.msrb.mxu2 %vm384_vm1, %v927_v47  ;;  %v925_v41 = vld [vmem:[%s7469_s7 + $0x91] sm:$0xff]  ;;  %v8170_v47 = vld [vmem:[#allocation2 + $0x21a] sm:$0xff] }
  0xeb   : > { %6095 = vmatpush.xpose.msk.msrb.mxu1 %vm384_vm1, %v7800_v42  ;;  %6130 = vmatpush.xpose.msk.msrb.mxu3 %vm384_vm1, %v943_v37  ;;  %v941_v42 = vld [vmem:[%s7469_s7 + $0x151] sm:$0xff]  ;;  %v8172_v37 = vld [vmem:[#allocation2 + $0x2da] sm:$0xff] }
  0xec   : > { %v1446_v44 = vld [vmem:[#allocation2 + $0x12a] sm:$0xff] }
  0xee   : > { %6079 = vmatpush.xpose.msk.msrb.mxu0 %vm384_vm1, %v7808_v45  ;;  %6114 = vmatpush.xpose.msk.msrb.mxu2 %vm384_vm1, %v926_v38  ;;  %v924_v45 = vld [vmem:[%s7469_s7 + $0x81] sm:$0xff] }
  0xef   : > { %6096 = vmatpush.xpose.msk.msrb.mxu1 %vm384_vm1, %v7810_v46  ;;  %6131 = vmatpush.xpose.msk.msrb.mxu3 %vm384_vm1, %v942_v48  ;;  %v940_v46 = vld [vmem:[%s7469_s7 + $0x141] sm:$0xff] }
  0xf0   : > { %v1429_v38 = vld [vmem:[#allocation2 + $0x62] sm:$0xff] }
  0xf1   : > { %v1445_v48 = vld [vmem:[#allocation2 + $0x122] sm:$0xff] }
  0xf2   : > { %6080 = vmatpush.xpose.msk.msrb.mxu0 %vm384_vm1, %v7818_v49  ;;  %6115 = vmatpush.xpose.msk.msrb.mxu2 %vm384_vm1, %v925_v41  ;;  %v923_v49 = vld [vmem:[%s7469_s7 + $0x79] sm:$0xff] }
  0xf3   : > { %6097 = vmatpush.xpose.msk.msrb.mxu1 %vm384_vm1, %v7820_v50  ;;  %6132 = vmatpush.xpose.msk.msrb.mxu3 %vm384_vm1, %v941_v42  ;;  %v939_v50 = vld [vmem:[%s7469_s7 + $0x139] sm:$0xff] }
  0xf4   : > { %v8180_v41 = vld [vmem:[#allocation2 + $0x212] sm:$0xff] }
  0xf5   : > { %v8182_v42 = vld [vmem:[#allocation2 + $0x2d2] sm:$0xff] }
  0xf6   : > { %6081 = vmatpush.xpose.msk.msrb.mxu0 %vm384_vm1, %v7828_v53  ;;  %6116 = vmatpush.xpose.msk.msrb.mxu2 %vm384_vm1, %v924_v45  ;;  %v921_v53 = vld [vmem:[%s7469_s7 + $0x61] sm:$0xff]  ;;  %v1428_v45 = vld [vmem:[#allocation2 + $0x52] sm:$0xff] }
  0xf7   : > { %6098 = vmatpush.xpose.msk.msrb.mxu1 %vm384_vm1, %v7830_v54  ;;  %6133 = vmatpush.xpose.msk.msrb.mxu3 %vm384_vm1, %v940_v46  ;;  %v937_v54 = vld [vmem:[%s7469_s7 + $0x121] sm:$0xff]  ;;  %v1444_v46 = vld [vmem:[#allocation2 + $0x112] sm:$0xff] }
  0xfa   : > { %6082 = vmatpush.xpose.msk.msrb.mxu0 %vm384_vm1, %v7838_v57  ;;  %6117 = vmatpush.xpose.msk.msrb.mxu2 %vm384_vm1, %v923_v49  ;;  %v919_v57 = vld [vmem:[%s7469_s7 + $0x49] sm:$0xff] }
  0xfb   : > { %6099 = vmatpush.xpose.msk.msrb.mxu1 %vm384_vm1, %v7840_v58  ;;  %6134 = vmatpush.xpose.msk.msrb.mxu3 %vm384_vm1, %v939_v50  ;;  %v935_v58 = vld [vmem:[%s7469_s7 + $0x109] sm:$0xff]  ;;  %v640_v61 = vpop.f32.mrf.mxu2  ;;  %v660_v62 = vpop.f32.mrf.mxu3 }
  0xfc   : > { %v8190_v49 = vld [vmem:[#allocation2 + $0x202] sm:$0xff] }
  0xfd   : > { %v8192_v50 = vld [vmem:[#allocation2 + $0x2c2] sm:$0xff] }
  0xfe   : > { %6083 = vmatpush.xpose.msk.msrb.mxu0 %vm384_vm1, %v7854_v63  ;;  %6118 = vmatpush.xpose.msk.msrb.mxu2 %vm384_vm1, %v922_v51  ;;  %v8048_v63 = vadd.f32 %v640_v61, %v501_v59  ;;  %v1426_v61 = vld [vmem:[#allocation2 + $0x3a] sm:$0xff] }
  0xff   : > { %6100 = vmatpush.xpose.msk.msrb.mxu1 %vm384_vm1, %v7856_v0  ;;  %6135 = vmatpush.xpose.msk.msrb.mxu3 %vm384_vm1, %v938_v52  ;;  %v8050_v0 = vadd.f32 %v660_v62, %v521_v60  ;;  %v1442_v62 = vld [vmem:[#allocation2 + $0xfa] sm:$0xff] }
 0x102   : > { %6084 = vmatpush.xpose.msk.msrb.mxu0 %vm384_vm1, %v7868_v7  ;;  %6119 = vmatpush.xpose.msk.msrb.mxu2 %vm384_vm1, %v921_v53  ;;  %v917_v7 = vld [vmem:[%s7469_s7 + $0x31] sm:$0xff] }
 0x103   : > { %6101 = vmatpush.xpose.msk.msrb.mxu1 %vm384_vm1, %v7870_v8  ;;  %6136 = vmatpush.xpose.msk.msrb.mxu3 %vm384_vm1, %v937_v54  ;;  %v933_v8 = vld [vmem:[%s7469_s7 + $0xf1] sm:$0xff] }
 0x104   : > { %v1427_v53 = vld [vmem:[#allocation2 + $0x4a] sm:$0xff] }
 0x105   : > { %v1443_v54 = vld [vmem:[#allocation2 + $0x10a] sm:$0xff] }
 0x106   : > { %6085 = vmatpush.xpose.msk.msrb.mxu0 %vm384_vm1, %v7878_v1  ;;  %6120 = vmatpush.xpose.msk.msrb.mxu2 %vm384_vm1, %v920_v55  ;;  %v915_v1 = vld [vmem:[%s7469_s7 + $0x19] sm:$0xff] }
 0x107   : > { %6102 = vmatpush.xpose.msk.msrb.mxu1 %vm384_vm1, %v7880_v2  ;;  %6137 = vmatpush.xpose.msk.msrb.mxu3 %vm384_vm1, %v936_v56  ;;  %v931_v2 = vld [vmem:[%s7469_s7 + $0xd9] sm:$0xff] }
 0x10a   : > { %6086 = vmatpush.xpose.msk.msrb.mxu0 %vm384_vm1, %v7888_v9  ;;  %6121 = vmatpush.xpose.msk.msrb.mxu2 %vm384_vm1, %v919_v57  ;;  %v913_v9 = vld [vmem:[%s7469_s7 + $0x1] sm:$0xff] }
 0x10b   : > { %6103 = vmatpush.xpose.msk.msrb.mxu1 %vm384_vm1, %v7890_v10  ;;  %6138 = vmatpush.xpose.msk.msrb.mxu3 %vm384_vm1, %v935_v58  ;;  %v929_v10 = vld [vmem:[%s7469_s7 + $0xc1] sm:$0xff] }
 0x10c   : > { %v8200_v57 = vld [vmem:[#allocation2 + $0x1fa] sm:$0xff] }
 0x10d   : > { %v8202_v58 = vld [vmem:[#allocation2 + $0x2ba] sm:$0xff] }
 0x10e   : > { %6087 = vmatpush.xpose.msk.msrb.mxu0 %vm384_vm1, %v7898_v15  ;;  %6122 = vmatpush.xpose.msk.msrb.mxu2 %vm384_vm1, %v918_v3  ;;  %v8098_v15 = vld [vmem:[#allocation2 + $0x262] sm:$0xff]  ;;  %v8214_v3 = vld [vmem:[#allocation2 + $0x1ea] sm:$0xff] }
 0x10f   : > { %6104 = vmatpush.xpose.msk.msrb.mxu1 %vm384_vm1, %v7900_v16  ;;  %6139 = vmatpush.xpose.msk.msrb.mxu3 %vm384_vm1, %v934_v4  ;;  %v8100_v16 = vld [vmem:[#allocation2 + $0x322] sm:$0xff]  ;;  %v8216_v4 = vld [vmem:[#allocation2 + $0x2aa] sm:$0xff] }
 0x112   : > { %6088 = vmatpush.xpose.msk.msrb.mxu0 %vm384_vm1, %v7908_v19  ;;  %6123 = vmatpush.xpose.msk.msrb.mxu2 %vm384_vm1, %v917_v7  ;;  %v1435_v19 = vld [vmem:[#allocation2 + $0xaa] sm:$0xff]  ;;  %v1425_v7 = vld [vmem:[#allocation2 + $0x32] sm:$0xff] }
 0x113   : > { %6105 = vmatpush.xpose.msk.msrb.mxu1 %vm384_vm1, %v7910_v20  ;;  %6140 = vmatpush.xpose.msk.msrb.mxu3 %vm384_vm1, %v933_v8  ;;  %v1451_v20 = vld [vmem:[#allocation2 + $0x16a] sm:$0xff]  ;;  %v1441_v8 = vld [vmem:[#allocation2 + $0xf2] sm:$0xff] }
 0x116   : > { %6089 = vmatpush.xpose.msk.msrb.mxu0 %vm384_vm1, %v7918_v23  ;;  %6124 = vmatpush.xpose.msk.msrb.mxu2 %vm384_vm1, %v916_v11  ;;  %v1434_v23 = vld [vmem:[#allocation2 + $0x9a] sm:$0xff]  ;;  %v8224_v11 = vld [vmem:[#allocation2 + $0x1e2] sm:$0xff] }
 0x117   : > { %6106 = vmatpush.xpose.msk.msrb.mxu1 %vm384_vm1, %v7920_v24  ;;  %6141 = vmatpush.xpose.msk.msrb.mxu3 %vm384_vm1, %v932_v12  ;;  %v1450_v24 = vld [vmem:[#allocation2 + $0x15a] sm:$0xff]  ;;  %v8226_v12 = vld [vmem:[#allocation2 + $0x2a2] sm:$0xff] }
 0x11a   : > { %6090 = vmatpush.xpose.msk.msrb.mxu0 %vm384_vm1, %v7928_v27  ;;  %6125 = vmatpush.xpose.msk.msrb.mxu2 %vm384_vm1, %v915_v1  ;;  %v1433_v27 = vld [vmem:[#allocation2 + $0x92] sm:$0xff]  ;;  %v1424_v1 = vld [vmem:[#allocation2 + $0x22] sm:$0xff] }
 0x11b   : > { %6107 = vmatpush.xpose.msk.msrb.mxu1 %vm384_vm1, %v7930_v28  ;;  %6142 = vmatpush.xpose.msk.msrb.mxu3 %vm384_vm1, %v931_v2  ;;  %v1449_v28 = vld [vmem:[#allocation2 + $0x152] sm:$0xff]  ;;  %v1440_v2 = vld [vmem:[#allocation2 + $0xe2] sm:$0xff] }
 0x11e   : > { %6091 = vmatpush.xpose.msk.msrb.mxu0 %vm384_vm1, %v7938_v31  ;;  %6126 = vmatpush.xpose.msk.msrb.mxu2 %vm384_vm1, %v914_v5  ;;  %v1432_v31 = vld [vmem:[#allocation2 + $0x82] sm:$0xff]  ;;  %v8234_v5 = vld [vmem:[#allocation2 + $0x1d2] sm:$0xff] }
 0x11f   : > { %6108 = vmatpush.xpose.msk.msrb.mxu1 %vm384_vm1, %v7940_v32  ;;  %6143 = vmatpush.xpose.msk.msrb.mxu3 %vm384_vm1, %v930_v6  ;;  %v1448_v32 = vld [vmem:[#allocation2 + $0x142] sm:$0xff]  ;;  %v8236_v6 = vld [vmem:[#allocation2 + $0x292] sm:$0xff] }
 0x122   : > { %6092 = vmatpush.xpose.msk.msrb.mxu0 %vm384_vm1, %v7948_v35  ;;  %6127 = vmatpush.xpose.msk.msrb.mxu2 %vm384_vm1, %v913_v9  ;;  %v1431_v35 = vld [vmem:[#allocation2 + $0x7a] sm:$0xff]  ;;  %v783_v51 = vpop.f32.mrf.mxu0 }
 0x123   : > { %6109 = vmatpush.xpose.msk.msrb.mxu1 %vm384_vm1, %v7950_v36  ;;  %6144 = vmatpush.xpose.msk.msrb.mxu3 %vm384_vm1, %v929_v10  ;;  %v1447_v36 = vld [vmem:[#allocation2 + $0x13a] sm:$0xff] }
 0x124   : > { %v1423_v9 = vld [vmem:[#allocation2 + $0x1a] sm:$0xff] }
 0x125   : > { %6093 = vmatmul.msk.f32.vlgmr.msrb.gmra.mxu0 %vm384_vm1, %v6076_v17  ;;  %6128 = vmatmul.msk.f32.vlgmr.msrb.gmra.mxu2 %vm384_vm1, %v6111_v18  ;;  %v803_v52 = vpop.f32.mrf.mxu1  ;;  %v1439_v10 = vld [vmem:[#allocation2 + $0xda] sm:$0xff] }
 0x126   : > { %6147 = vmatpush.xpose.msk.msra.mxu0 %vm384_vm1, %v1436_v13  ;;  %6182 = vmatpush.xpose.msk.msra.mxu2 %vm384_vm1, %v8098_v15  ;;  %v8244_v13 = vld [vmem:[#allocation2 + $0x1ca] sm:$0xff] }
 0x127   : > { %6164 = vmatpush.xpose.msk.msra.mxu1 %vm384_vm1, %v1452_v14  ;;  %6199 = vmatpush.xpose.msk.msra.mxu3 %vm384_vm1, %v8100_v16  ;;  %v8246_v14 = vld [vmem:[#allocation2 + $0x28a] sm:$0xff] }
 0x128   : > { %6110 = vmatmul.msk.f32.vlgmr.msrb.gmra.mxu1 %vm384_vm1, %v6076_v17  ;;  %6145 = vmatmul.msk.f32.vlgmr.msrb.gmra.mxu3 %vm384_vm1, %v6111_v18  ;;  %v826_v55 = vpop.f32.mrf.mxu2  ;;  %v1422_v17 = vld [vmem:[#allocation2 + $0xa] sm:$0xff] }
 0x129   : > { %v8204_v59 = vadd.f32 %v826_v55, %v783_v51  ;;  %v1438_v18 = vld [vmem:[#allocation2 + $0xca] sm:$0xff]  ;;  %v1488_v55 = vld [vmem:[%s7469_s7 + $0x22] sm:$0xff] }
 0x12a   : > { %6148 = vmatpush.xpose.msk.msra.mxu0 %vm384_vm1, %v1435_v19  ;;  %6183 = vmatpush.xpose.msk.msra.mxu2 %vm384_vm1, %v8118_v21  ;;  %v8254_v19 = vld [vmem:[#allocation2 + $0x1ba] sm:$0xff] }
 0x12b   : > { %6165 = vmatpush.xpose.msk.msra.mxu1 %vm384_vm1, %v1451_v20  ;;  %6200 = vmatpush.xpose.msk.msra.mxu3 %vm384_vm1, %v8120_v22  ;;  %v846_v56 = vpop.f32.mrf.mxu3  ;;  %v8256_v20 = vld [vmem:[#allocation2 + $0x27a] sm:$0xff] }
 0x12c   : > { %v8206_v60 = vadd.f32 %v846_v56, %v803_v52  ;;  %v1504_v56 = vld [vmem:[%s7469_s7 + $0xe2] sm:$0xff] }
 0x12e   : > { %6149 = vmatpush.xpose.msk.msra.mxu0 %vm384_vm1, %v1434_v23  ;;  %6184 = vmatpush.xpose.msk.msra.mxu2 %vm384_vm1, %v8130_v25  ;;  %v1421_v23 = vld [vmem:[#allocation2 + $0x2] sm:$0xff] }
 0x12f   : > { %6166 = vmatpush.xpose.msk.msra.mxu1 %vm384_vm1, %v1450_v24  ;;  %6201 = vmatpush.xpose.msk.msra.mxu3 %vm384_vm1, %v8132_v26  ;;  %v1437_v24 = vld [vmem:[#allocation2 + $0xc2] sm:$0xff] }
 0x132   : > { %6150 = vmatpush.xpose.msk.msra.mxu0 %vm384_vm1, %v1433_v27  ;;  %6185 = vmatpush.xpose.msk.msra.mxu2 %vm384_vm1, %v8140_v29  ;;  %v8264_v27 = vld [vmem:[#allocation2 + $0x1b2] sm:$0xff] }
 0x133   : > { %6167 = vmatpush.xpose.msk.msra.mxu1 %vm384_vm1, %v1449_v28  ;;  %6202 = vmatpush.xpose.msk.msra.mxu3 %vm384_vm1, %v8142_v30  ;;  %v8266_v28 = vld [vmem:[#allocation2 + $0x272] sm:$0xff] }
 0x136   : > { %6151 = vmatpush.xpose.msk.msra.mxu0 %vm384_vm1, %v1432_v31  ;;  %6186 = vmatpush.xpose.msk.msra.mxu2 %vm384_vm1, %v8150_v33  ;;  %v1500_v31 = vld [vmem:[%s7469_s7 + $0xb2] sm:$0xff] }
 0x137   : > { %6168 = vmatpush.xpose.msk.msra.mxu1 %vm384_vm1, %v1448_v32  ;;  %6203 = vmatpush.xpose.msk.msra.mxu3 %vm384_vm1, %v8152_v34  ;;  %v1516_v32 = vld [vmem:[%s7469_s7 + $0x172] sm:$0xff] }
 0x13a   : > { %6152 = vmatpush.xpose.msk.msra.mxu0 %vm384_vm1, %v1431_v35  ;;  %6187 = vmatpush.xpose.msk.msra.mxu2 %vm384_vm1, %v8160_v39  ;;  %v6146_v35 = vld [vmem:[%s10555_s0 + $0x10] sm:$0xff] }
 0x13b   : > { %6169 = vmatpush.xpose.msk.msra.mxu1 %vm384_vm1, %v1447_v36  ;;  %6204 = vmatpush.xpose.msk.msra.mxu3 %vm384_vm1, %v8162_v40  ;;  %v6181_v36 = vld [vmem:[%s10555_s0 + $0x58] sm:$0xff] }
 0x13e   : > { %6153 = vmatpush.xpose.msk.msra.mxu0 %vm384_vm1, %v1430_v43  ;;  %6188 = vmatpush.xpose.msk.msra.mxu2 %vm384_vm1, %v8170_v47  ;;  %v1499_v43 = vld [vmem:[%s7469_s7 + $0xaa] sm:$0xff] }
 0x13f   : > { %6170 = vmatpush.xpose.msk.msra.mxu1 %vm384_vm1, %v1446_v44  ;;  %6205 = vmatpush.xpose.msk.msra.mxu3 %vm384_vm1, %v8172_v37  ;;  %v1515_v44 = vld [vmem:[%s7469_s7 + $0x16a] sm:$0xff] }
 0x142   : > { %6154 = vmatpush.xpose.msk.msra.mxu0 %vm384_vm1, %v1429_v38  ;;  %6189 = vmatpush.xpose.msk.msra.mxu2 %vm384_vm1, %v8180_v41 }
 0x143   : > { %6171 = vmatpush.xpose.msk.msra.mxu1 %vm384_vm1, %v1445_v48  ;;  %6206 = vmatpush.xpose.msk.msra.mxu3 %vm384_vm1, %v8182_v42 }
 0x146   : > { %6155 = vmatpush.xpose.msk.msra.mxu0 %vm384_vm1, %v1428_v45  ;;  %6190 = vmatpush.xpose.msk.msra.mxu2 %vm384_vm1, %v8190_v49  ;;  %v1498_v45 = vld [vmem:[%s7469_s7 + $0x9a] sm:$0xff] }
 0x147   : > { %6172 = vmatpush.xpose.msk.msra.mxu1 %vm384_vm1, %v1444_v46  ;;  %6207 = vmatpush.xpose.msk.msra.mxu3 %vm384_vm1, %v8192_v50  ;;  %v1514_v46 = vld [vmem:[%s7469_s7 + $0x15a] sm:$0xff] }
 0x14a   : > { %6156 = vmatpush.xpose.msk.msra.mxu0 %vm384_vm1, %v1427_v53  ;;  %6191 = vmatpush.xpose.msk.msra.mxu2 %vm384_vm1, %v8200_v57  ;;  %v1489_v53 = vld [vmem:[%s7469_s7 + $0x32] sm:$0xff] }
 0x14b   : > { %6173 = vmatpush.xpose.msk.msra.mxu1 %vm384_vm1, %v1443_v54  ;;  %6208 = vmatpush.xpose.msk.msra.mxu3 %vm384_vm1, %v8202_v58  ;;  %v1505_v54 = vld [vmem:[%s7469_s7 + $0xf2] sm:$0xff] }
 0x14e   : > { %6157 = vmatpush.xpose.msk.msra.mxu0 %vm384_vm1, %v1426_v61  ;;  %6192 = vmatpush.xpose.msk.msra.mxu2 %vm384_vm1, %v8214_v3  ;;  %v1486_v61 = vld [vmem:[%s7469_s7 + $0xa] sm:$0xff] }
 0x14f   : > { %6174 = vmatpush.xpose.msk.msra.mxu1 %vm384_vm1, %v1442_v62  ;;  %6209 = vmatpush.xpose.msk.msra.mxu3 %vm384_vm1, %v8216_v4  ;;  %v1502_v62 = vld [vmem:[%s7469_s7 + $0xca] sm:$0xff] }
 0x152   : > { %6158 = vmatpush.xpose.msk.msra.mxu0 %vm384_vm1, %v1425_v7  ;;  %6193 = vmatpush.xpose.msk.msra.mxu2 %vm384_vm1, %v8224_v11  ;;  %v2009_v7 = vld [vmem:[#allocation2 + $0xc8] sm:$0xff] }
 0x153   : > { %6175 = vmatpush.xpose.msk.msra.mxu1 %vm384_vm1, %v1441_v8  ;;  %6210 = vmatpush.xpose.msk.msra.mxu3 %vm384_vm1, %v8226_v12  ;;  %v2025_v8 = vld [vmem:[#allocation2 + $0x188] sm:$0xff] }
 0x156   : > { %6159 = vmatpush.xpose.msk.msra.mxu0 %vm384_vm1, %v1424_v1  ;;  %6194 = vmatpush.xpose.msk.msra.mxu2 %vm384_vm1, %v8234_v5  ;;  %v6216_v1 = vld [vmem:[%s10555_s0 + $0xa0] sm:$0xff] }
 0x157   : > { %6176 = vmatpush.xpose.msk.msra.mxu1 %vm384_vm1, %v1440_v2  ;;  %6211 = vmatpush.xpose.msk.msra.mxu3 %vm384_vm1, %v8236_v6  ;;  %v6251_v2 = vld [vmem:[%s10555_s0 + $0xe8] sm:$0xff] }
 0x15a   : > { %6160 = vmatpush.xpose.msk.msra.mxu0 %vm384_vm1, %v1423_v9  ;;  %6195 = vmatpush.xpose.msk.msra.mxu2 %vm384_vm1, %v8244_v13  ;;  %v8436_v9 = vld [vmem:[#allocation2 + $0x270] sm:$0xff] }
 0x15b   : > { %6177 = vmatpush.xpose.msk.msra.mxu1 %vm384_vm1, %v1439_v10  ;;  %6212 = vmatpush.xpose.msk.msra.mxu3 %vm384_vm1, %v8246_v14  ;;  %v8438_v10 = vld [vmem:[#allocation2 + $0x330] sm:$0xff] }
 0x15e   : > { %6161 = vmatpush.xpose.msk.msra.mxu0 %vm384_vm1, %v1422_v17  ;;  %6196 = vmatpush.xpose.msk.msra.mxu2 %vm384_vm1, %v8254_v19 }
 0x15f   : > { %6178 = vmatpush.xpose.msk.msra.mxu1 %vm384_vm1, %v1438_v18  ;;  %6213 = vmatpush.xpose.msk.msra.mxu3 %vm384_vm1, %v8256_v20 }
 0x162   : > { %6162 = vmatpush.xpose.msk.msra.mxu0 %vm384_vm1, %v1421_v23  ;;  %6197 = vmatpush.xpose.msk.msra.mxu2 %vm384_vm1, %v8264_v27  ;;  %v8450_v23 = vld [vmem:[#allocation2 + $0x260] sm:$0xff] }
 0x163   : > { %6179 = vmatpush.xpose.msk.msra.mxu1 %vm384_vm1, %v1437_v24  ;;  %6214 = vmatpush.xpose.msk.msra.mxu3 %vm384_vm1, %v8266_v28  ;;  %v8452_v24 = vld [vmem:[#allocation2 + $0x320] sm:$0xff] }
 0x165   : > { %6163 = vmatmul.msk.f32.vlgmr.msra.gmra.mxu0 %vm384_vm1, %v6146_v35  ;;  %6198 = vmatmul.msk.f32.vlgmr.msra.gmra.mxu2 %vm384_vm1, %v6181_v36 }
 0x166   : > { %6217 = vmatpush.xpose.msk.msrb.mxu0 %vm384_vm1, %v8098_v15  ;;  %6252 = vmatpush.xpose.msk.msrb.mxu2 %vm384_vm1, %v1500_v31  ;;  %v1063_v15 = vpop.f32.mrf.mxu0  ;;  %v8460_v31 = vld [vmem:[#allocation2 + $0x258] sm:$0xff] }
 0x167   : > { %6234 = vmatpush.xpose.msk.msrb.mxu1 %vm384_vm1, %v8100_v16  ;;  %6269 = vmatpush.xpose.msk.msrb.mxu3 %vm384_vm1, %v1516_v32  ;;  %v1083_v16 = vpop.f32.mrf.mxu1  ;;  %v1086_v38 = vadd.f32 %v1063_v15, %v8048_v63  ;;  %v8462_v32 = vld [vmem:[#allocation2 + $0x318] sm:$0xff]  ;;  %v8474_v15 = vld [vmem:[#allocation2 + $0x248] sm:$0xff] }
 0x168   : > { %6180 = vmatmul.msk.f32.vlgmr.msra.gmra.mxu1 %vm384_vm1, %v6146_v35  ;;  %6215 = vmatmul.msk.f32.vlgmr.msra.gmra.mxu3 %vm384_vm1, %v6181_v36  ;;  %v1087_v48 = vadd.f32 %v1083_v16, %v8050_v0  ;;  %v1206_v63 = vpop.f32.mrf.mxu2  ;;  %v8476_v16 = vld [vmem:[#allocation2 + $0x308] sm:$0xff] }
 0x169   : > { %v8312_v51 = vadd.f32 %v1206_v63, %v1086_v38  ;;  %v2004_v38 = vld [vmem:[#allocation2 + $0x90] sm:$0xff]  ;;  %v2003_v63 = vld [vmem:[#allocation2 + $0x80] sm:$0xff] }
 0x16a   : > { %6218 = vmatpush.xpose.msk.msrb.mxu0 %vm384_vm1, %v8118_v21  ;;  %6253 = vmatpush.xpose.msk.msrb.mxu2 %vm384_vm1, %v1499_v43  ;;  %v1497_v21 = vld [vmem:[%s7469_s7 + $0x92] sm:$0xff] }
 0x16b   : > { %6235 = vmatpush.xpose.msk.msrb.mxu1 %vm384_vm1, %v8120_v22  ;;  %6270 = vmatpush.xpose.msk.msrb.mxu3 %vm384_vm1, %v1515_v44  ;;  %v1226_v0 = vpop.f32.mrf.mxu3  ;;  %v1513_v22 = vld [vmem:[%s7469_s7 + $0x152] sm:$0xff] }
 0x16c   : > { %v8314_v52 = vadd.f32 %v1226_v0, %v1087_v48  ;;  %v2005_v43 = vld [vmem:[#allocation2 + $0x98] sm:$0xff]  ;;  %v2020_v48 = vld [vmem:[#allocation2 + $0x150] sm:$0xff]  ;;  %v2019_v0 = vld [vmem:[#allocation2 + $0x140] sm:$0xff] }
 0x16d   : > { %v2021_v44 = vld [vmem:[#allocation2 + $0x158] sm:$0xff] }
 0x16e   : > { %6219 = vmatpush.xpose.msk.msrb.mxu0 %vm384_vm1, %v8130_v25  ;;  %6254 = vmatpush.xpose.msk.msrb.mxu2 %vm384_vm1, %v1498_v45  ;;  %v1496_v25 = vld [vmem:[%s7469_s7 + $0x82] sm:$0xff] }
 0x16f   : > { %6236 = vmatpush.xpose.msk.msrb.mxu1 %vm384_vm1, %v8132_v26  ;;  %6271 = vmatpush.xpose.msk.msrb.mxu3 %vm384_vm1, %v1514_v46  ;;  %v1512_v26 = vld [vmem:[%s7469_s7 + $0x142] sm:$0xff] }
 0x170   : > { %v8484_v45 = vld [vmem:[#allocation2 + $0x240] sm:$0xff] }
 0x171   : > { %v8486_v46 = vld [vmem:[#allocation2 + $0x300] sm:$0xff] }
 0x172   : > { %6220 = vmatpush.xpose.msk.msrb.mxu0 %vm384_vm1, %v8140_v29  ;;  %6255 = vmatpush.xpose.msk.msrb.mxu2 %vm384_vm1, %v1497_v21  ;;  %v1495_v29 = vld [vmem:[%s7469_s7 + $0x7a] sm:$0xff]  ;;  %v8494_v21 = vld [vmem:[#allocation2 + $0x230] sm:$0xff] }
 0x173   : > { %6237 = vmatpush.xpose.msk.msrb.mxu1 %vm384_vm1, %v8142_v30  ;;  %6272 = vmatpush.xpose.msk.msrb.mxu3 %vm384_vm1, %v1513_v22  ;;  %v1511_v30 = vld [vmem:[%s7469_s7 + $0x13a] sm:$0xff]  ;;  %v8496_v22 = vld [vmem:[#allocation2 + $0x2f0] sm:$0xff] }
 0x176   : > { %6221 = vmatpush.xpose.msk.msrb.mxu0 %vm384_vm1, %v8150_v33  ;;  %6256 = vmatpush.xpose.msk.msrb.mxu2 %vm384_vm1, %v1496_v25  ;;  %v1494_v33 = vld [vmem:[%s7469_s7 + $0x6a] sm:$0xff]  ;;  %v2002_v25 = vld [vmem:[#allocation2 + $0x78] sm:$0xff] }
 0x177   : > { %6238 = vmatpush.xpose.msk.msrb.mxu1 %vm384_vm1, %v8152_v34  ;;  %6273 = vmatpush.xpose.msk.msrb.mxu3 %vm384_vm1, %v1512_v26  ;;  %v1510_v34 = vld [vmem:[%s7469_s7 + $0x12a] sm:$0xff]  ;;  %v2018_v26 = vld [vmem:[#allocation2 + $0x138] sm:$0xff] }
 0x17a   : > { %6222 = vmatpush.xpose.msk.msrb.mxu0 %vm384_vm1, %v8160_v39  ;;  %6257 = vmatpush.xpose.msk.msrb.mxu2 %vm384_vm1, %v1495_v29  ;;  %v1493_v39 = vld [vmem:[%s7469_s7 + $0x62] sm:$0xff] }
 0x17b   : > { %6239 = vmatpush.xpose.msk.msrb.mxu1 %vm384_vm1, %v8162_v40  ;;  %6274 = vmatpush.xpose.msk.msrb.mxu3 %vm384_vm1, %v1511_v30  ;;  %v1509_v40 = vld [vmem:[%s7469_s7 + $0x122] sm:$0xff] }
 0x17c   : > { %v8504_v29 = vld [vmem:[#allocation2 + $0x228] sm:$0xff] }
 0x17d   : > { %v8506_v30 = vld [vmem:[#allocation2 + $0x2e8] sm:$0xff] }
 0x17e   : > { %6223 = vmatpush.xpose.msk.msrb.mxu0 %vm384_vm1, %v8170_v47  ;;  %6258 = vmatpush.xpose.msk.msrb.mxu2 %vm384_vm1, %v1494_v33  ;;  %v1492_v47 = vld [vmem:[%s7469_s7 + $0x52] sm:$0xff]  ;;  %v2001_v33 = vld [vmem:[#allocation2 + $0x68] sm:$0xff] }
 0x17f   : > { %6240 = vmatpush.xpose.msk.msrb.mxu1 %vm384_vm1, %v8172_v37  ;;  %6275 = vmatpush.xpose.msk.msrb.mxu3 %vm384_vm1, %v1510_v34  ;;  %v1508_v37 = vld [vmem:[%s7469_s7 + $0x112] sm:$0xff]  ;;  %v2017_v34 = vld [vmem:[#allocation2 + $0x128] sm:$0xff] }
 0x182   : > { %6224 = vmatpush.xpose.msk.msrb.mxu0 %vm384_vm1, %v8180_v41  ;;  %6259 = vmatpush.xpose.msk.msrb.mxu2 %vm384_vm1, %v1493_v39  ;;  %v1491_v41 = vld [vmem:[%s7469_s7 + $0x4a] sm:$0xff]  ;;  %v8514_v39 = vld [vmem:[#allocation2 + $0x218] sm:$0xff] }
 0x183   : > { %6241 = vmatpush.xpose.msk.msrb.mxu1 %vm384_vm1, %v8182_v42  ;;  %6276 = vmatpush.xpose.msk.msrb.mxu3 %vm384_vm1, %v1509_v40  ;;  %v1507_v42 = vld [vmem:[%s7469_s7 + $0x10a] sm:$0xff]  ;;  %v8516_v40 = vld [vmem:[#allocation2 + $0x2d8] sm:$0xff] }
 0x186   : > { %6225 = vmatpush.xpose.msk.msrb.mxu0 %vm384_vm1, %v8190_v49  ;;  %6260 = vmatpush.xpose.msk.msrb.mxu2 %vm384_vm1, %v1492_v47  ;;  %v1490_v49 = vld [vmem:[%s7469_s7 + $0x3a] sm:$0xff] }
 0x187   : > { %6242 = vmatpush.xpose.msk.msrb.mxu1 %vm384_vm1, %v8192_v50  ;;  %6277 = vmatpush.xpose.msk.msrb.mxu3 %vm384_vm1, %v1508_v37  ;;  %v1506_v50 = vld [vmem:[%s7469_s7 + $0xfa] sm:$0xff] }
 0x188   : > { %v2000_v47 = vld [vmem:[#allocation2 + $0x60] sm:$0xff] }
 0x189   : > { %v2016_v37 = vld [vmem:[#allocation2 + $0x120] sm:$0xff] }
 0x18a   : > { %6226 = vmatpush.xpose.msk.msrb.mxu0 %vm384_vm1, %v8200_v57  ;;  %6261 = vmatpush.xpose.msk.msrb.mxu2 %vm384_vm1, %v1491_v41  ;;  %v1487_v57 = vld [vmem:[%s7469_s7 + $0x1a] sm:$0xff]  ;;  %v8524_v41 = vld [vmem:[#allocation2 + $0x210] sm:$0xff] }
 0x18b   : > { %6243 = vmatpush.xpose.msk.msrb.mxu1 %vm384_vm1, %v8202_v58  ;;  %6278 = vmatpush.xpose.msk.msrb.mxu3 %vm384_vm1, %v1507_v42  ;;  %v1503_v58 = vld [vmem:[%s7469_s7 + $0xda] sm:$0xff]  ;;  %v8526_v42 = vld [vmem:[#allocation2 + $0x2d0] sm:$0xff] }
 0x18e   : > { %6227 = vmatpush.xpose.msk.msrb.mxu0 %vm384_vm1, %v8214_v3  ;;  %6262 = vmatpush.xpose.msk.msrb.mxu2 %vm384_vm1, %v1490_v49  ;;  %v1485_v3 = vld [vmem:[%s7469_s7 + $0x2] sm:$0xff]  ;;  %v1999_v49 = vld [vmem:[#allocation2 + $0x50] sm:$0xff] }
 0x18f   : > { %6244 = vmatpush.xpose.msk.msrb.mxu1 %vm384_vm1, %v8216_v4  ;;  %6279 = vmatpush.xpose.msk.msrb.mxu3 %vm384_vm1, %v1506_v50  ;;  %v1501_v4 = vld [vmem:[%s7469_s7 + $0xc2] sm:$0xff]  ;;  %v2015_v50 = vld [vmem:[#allocation2 + $0x110] sm:$0xff] }
 0x192   : > { %6228 = vmatpush.xpose.msk.msrb.mxu0 %vm384_vm1, %v8224_v11  ;;  %6263 = vmatpush.xpose.msk.msrb.mxu2 %vm384_vm1, %v1489_v53  ;;  %v8416_v11 = vld [vmem:[#allocation2 + $0x278] sm:$0xff]  ;;  %v8534_v53 = vld [vmem:[#allocation2 + $0x200] sm:$0xff] }
 0x193   : > { %6245 = vmatpush.xpose.msk.msrb.mxu1 %vm384_vm1, %v8226_v12  ;;  %6280 = vmatpush.xpose.msk.msrb.mxu3 %vm384_vm1, %v1505_v54  ;;  %v8418_v12 = vld [vmem:[#allocation2 + $0x338] sm:$0xff]  ;;  %v8536_v54 = vld [vmem:[#allocation2 + $0x2c0] sm:$0xff] }
 0x196   : > { %6229 = vmatpush.xpose.msk.msrb.mxu0 %vm384_vm1, %v8234_v5  ;;  %6264 = vmatpush.xpose.msk.msrb.mxu2 %vm384_vm1, %v1488_v55  ;;  %v2008_v5 = vld [vmem:[#allocation2 + $0xc0] sm:$0xff]  ;;  %v1998_v55 = vld [vmem:[#allocation2 + $0x48] sm:$0xff] }
 0x197   : > { %6246 = vmatpush.xpose.msk.msrb.mxu1 %vm384_vm1, %v8236_v6  ;;  %6281 = vmatpush.xpose.msk.msrb.mxu3 %vm384_vm1, %v1504_v56  ;;  %v2024_v6 = vld [vmem:[#allocation2 + $0x180] sm:$0xff]  ;;  %v2014_v56 = vld [vmem:[#allocation2 + $0x108] sm:$0xff] }
 0x19a   : > { %6230 = vmatpush.xpose.msk.msrb.mxu0 %vm384_vm1, %v8244_v13  ;;  %6265 = vmatpush.xpose.msk.msrb.mxu2 %vm384_vm1, %v1487_v57  ;;  %v8544_v57 = vld [vmem:[#allocation2 + $0x1f8] sm:$0xff] }
 0x19b   : > { %6247 = vmatpush.xpose.msk.msrb.mxu1 %vm384_vm1, %v8246_v14  ;;  %6282 = vmatpush.xpose.msk.msrb.mxu3 %vm384_vm1, %v1503_v58  ;;  %v8546_v58 = vld [vmem:[#allocation2 + $0x2b8] sm:$0xff] }
 0x19e   : > { %6231 = vmatpush.xpose.msk.msrb.mxu0 %vm384_vm1, %v8254_v19  ;;  %6266 = vmatpush.xpose.msk.msrb.mxu2 %vm384_vm1, %v1486_v61  ;;  %v2007_v19 = vld [vmem:[#allocation2 + $0xb0] sm:$0xff]  ;;  %v1997_v61 = vld [vmem:[#allocation2 + $0x38] sm:$0xff] }
 0x19f   : > { %6248 = vmatpush.xpose.msk.msrb.mxu1 %vm384_vm1, %v8256_v20  ;;  %6283 = vmatpush.xpose.msk.msrb.mxu3 %vm384_vm1, %v1502_v62  ;;  %v2023_v20 = vld [vmem:[#allocation2 + $0x170] sm:$0xff]  ;;  %v2013_v62 = vld [vmem:[#allocation2 + $0xf8] sm:$0xff] }
 0x1a2   : > { %6232 = vmatpush.xpose.msk.msrb.mxu0 %vm384_vm1, %v8264_v27  ;;  %6267 = vmatpush.xpose.msk.msrb.mxu2 %vm384_vm1, %v1485_v3  ;;  %v1253_v13 = vpop.f32.mrf.mxu0  ;;  %v8554_v3 = vld [vmem:[#allocation2 + $0x1e8] sm:$0xff] }
 0x1a3   : > { %6249 = vmatpush.xpose.msk.msrb.mxu1 %vm384_vm1, %v8266_v28  ;;  %6284 = vmatpush.xpose.msk.msrb.mxu3 %vm384_vm1, %v1501_v4  ;;  %v1276_v17 = vadd.f32 %v1253_v13, %v8204_v59  ;;  %v2006_v59 = vld [vmem:[#allocation2 + $0xa8] sm:$0xff]  ;;  %v8574_v13 = vld [vmem:[#allocation2 + $0x1d0] sm:$0xff] }
 0x1a4   : > { %v8556_v4 = vld [vmem:[#allocation2 + $0x2a8] sm:$0xff] }
 0x1a5   : > { %6233 = vmatmul.msk.f32.vlgmr.msrb.gmra.mxu0 %vm384_vm1, %v6216_v1  ;;  %6268 = vmatmul.msk.f32.vlgmr.msrb.gmra.mxu2 %vm384_vm1, %v6251_v2  ;;  %v1273_v14 = vpop.f32.mrf.mxu1 }
 0x1a6   : > { %6319 = vmatpush.xpose.msk.msra.mxu0 %vm384_vm1, %v2009_v7  ;;  %6354 = vmatpush.xpose.msk.msra.mxu2 %vm384_vm1, %v8416_v11  ;;  %v1277_v18 = vadd.f32 %v1273_v14, %v8206_v60  ;;  %v2022_v60 = vld [vmem:[#allocation2 + $0x168] sm:$0xff]  ;;  %v1996_v7 = vld [vmem:[#allocation2 + $0x30] sm:$0xff] }
 0x1a7   : > { %6336 = vmatpush.xpose.msk.msra.mxu1 %vm384_vm1, %v2025_v8  ;;  %6371 = vmatpush.xpose.msk.msra.mxu3 %vm384_vm1, %v8418_v12  ;;  %v2012_v8 = vld [vmem:[#allocation2 + $0xf0] sm:$0xff] }
 0x1a8   : > { %6250 = vmatmul.msk.f32.vlgmr.msrb.gmra.mxu1 %vm384_vm1, %v6216_v1  ;;  %6285 = vmatmul.msk.f32.vlgmr.msrb.gmra.mxu3 %vm384_vm1, %v6251_v2  ;;  %v1396_v27 = vpop.f32.mrf.mxu2  ;;  %v8564_v1 = vld [vmem:[#allocation2 + $0x1e0] sm:$0xff]  ;;  %v8576_v14 = vld [vmem:[#allocation2 + $0x290] sm:$0xff] }
 0x1a9   : > { %v8464_v35 = vadd.f32 %v1396_v27, %v1276_v17  ;;  %v8566_v2 = vld [vmem:[#allocation2 + $0x2a0] sm:$0xff]  ;;  %v1994_v17 = vld [vmem:[#allocation2 + $0x18] sm:$0xff] }
 0x1aa   : > { %6320 = vmatpush.xpose.msk.msra.mxu0 %vm384_vm1, %v2008_v5  ;;  %6355 = vmatpush.xpose.msk.msra.mxu2 %vm384_vm1, %v8436_v9  ;;  %v1995_v5 = vld [vmem:[#allocation2 + $0x20] sm:$0xff]  ;;  %v6318_v27 = vld [vmem:[%s10555_s0 + $0x18] sm:$0xff] }
 0x1ab   : > { %6337 = vmatpush.xpose.msk.msra.mxu1 %vm384_vm1, %v2024_v6  ;;  %6372 = vmatpush.xpose.msk.msra.mxu3 %vm384_vm1, %v8438_v10  ;;  %v1416_v28 = vpop.f32.mrf.mxu3  ;;  %v2011_v6 = vld [vmem:[#allocation2 + $0xe0] sm:$0xff] }
 0x1ac   : > { %v8466_v36 = vadd.f32 %v1416_v28, %v1277_v18  ;;  %v2010_v18 = vld [vmem:[#allocation2 + $0xd8] sm:$0xff]  ;;  %v6353_v28 = vld [vmem:[%s10555_s0 + $0x60] sm:$0xff] }
 0x1ae   : > { %6321 = vmatpush.xpose.msk.msra.mxu0 %vm384_vm1, %v2007_v19  ;;  %6356 = vmatpush.xpose.msk.msra.mxu2 %vm384_vm1, %v8450_v23  ;;  %v8584_v19 = vld [vmem:[#allocation2 + $0x1c8] sm:$0xff] }
 0x1af   : > { %6338 = vmatpush.xpose.msk.msra.mxu1 %vm384_vm1, %v2023_v20  ;;  %6373 = vmatpush.xpose.msk.msra.mxu3 %vm384_vm1, %v8452_v24  ;;  %v8586_v20 = vld [vmem:[#allocation2 + $0x288] sm:$0xff] }
 0x1b2   : > { %6322 = vmatpush.xpose.msk.msra.mxu0 %vm384_vm1, %v2006_v59  ;;  %6357 = vmatpush.xpose.msk.msra.mxu2 %vm384_vm1, %v8460_v31  ;;  %v6301_v59 = vld [vmem:[%s7469_s7 + $0xc8] sm:$0xff] }
 0x1b3   : > { %6339 = vmatpush.xpose.msk.msra.mxu1 %vm384_vm1, %v2022_v60  ;;  %6374 = vmatpush.xpose.msk.msra.mxu3 %vm384_vm1, %v8462_v32  ;;  %v6317_v60 = vld [vmem:[%s7469_s7 + $0x188] sm:$0xff] }
 0x1b6   : > { %6323 = vmatpush.xpose.msk.msra.mxu0 %vm384_vm1, %v2005_v43  ;;  %6358 = vmatpush.xpose.msk.msra.mxu2 %vm384_vm1, %v8474_v15  ;;  %v6300_v43 = vld [vmem:[%s7469_s7 + $0xc0] sm:$0xff] }
 0x1b7   : > { %6340 = vmatpush.xpose.msk.msra.mxu1 %vm384_vm1, %v2021_v44  ;;  %6375 = vmatpush.xpose.msk.msra.mxu3 %vm384_vm1, %v8476_v16  ;;  %v6316_v44 = vld [vmem:[%s7469_s7 + $0x180] sm:$0xff] }
 0x1ba   : > { %6324 = vmatpush.xpose.msk.msra.mxu0 %vm384_vm1, %v2004_v38  ;;  %6359 = vmatpush.xpose.msk.msra.mxu2 %vm384_vm1, %v8484_v45 }
 0x1bb   : > { %6341 = vmatpush.xpose.msk.msra.mxu1 %vm384_vm1, %v2020_v48  ;;  %6376 = vmatpush.xpose.msk.msra.mxu3 %vm384_vm1, %v8486_v46 }
 0x1be   : > { %6325 = vmatpush.xpose.msk.msra.mxu0 %vm384_vm1, %v2003_v63  ;;  %6360 = vmatpush.xpose.msk.msra.mxu2 %vm384_vm1, %v8494_v21  ;;  %v6299_v63 = vld [vmem:[%s7469_s7 + $0xb0] sm:$0xff] }
 0x1bf   : > { %6342 = vmatpush.xpose.msk.msra.mxu1 %vm384_vm1, %v2019_v0  ;;  %6377 = vmatpush.xpose.msk.msra.mxu3 %vm384_vm1, %v8496_v22  ;;  %v6315_v0 = vld [vmem:[%s7469_s7 + $0x170] sm:$0xff] }
 0x1c2   : > { %6326 = vmatpush.xpose.msk.msra.mxu0 %vm384_vm1, %v2002_v25  ;;  %6361 = vmatpush.xpose.msk.msra.mxu2 %vm384_vm1, %v8504_v29 }
 0x1c3   : > { %6343 = vmatpush.xpose.msk.msra.mxu1 %vm384_vm1, %v2018_v26  ;;  %6378 = vmatpush.xpose.msk.msra.mxu3 %vm384_vm1, %v8506_v30 }
 0x1c6   : > { %6327 = vmatpush.xpose.msk.msra.mxu0 %vm384_vm1, %v2001_v33  ;;  %6362 = vmatpush.xpose.msk.msra.mxu2 %vm384_vm1, %v8514_v39  ;;  %v6291_v33 = vld [vmem:[%s7469_s7 + $0x50] sm:$0xff] }
 0x1c7   : > { %6344 = vmatpush.xpose.msk.msra.mxu1 %vm384_vm1, %v2017_v34  ;;  %6379 = vmatpush.xpose.msk.msra.mxu3 %vm384_vm1, %v8516_v40  ;;  %v6307_v34 = vld [vmem:[%s7469_s7 + $0x110] sm:$0xff] }
 0x1ca   : > { %6328 = vmatpush.xpose.msk.msra.mxu0 %vm384_vm1, %v2000_v47  ;;  %6363 = vmatpush.xpose.msk.msra.mxu2 %vm384_vm1, %v8524_v41  ;;  %v6289_v47 = vld [vmem:[%s7469_s7 + $0x38] sm:$0xff] }
 0x1cb   : > { %6345 = vmatpush.xpose.msk.msra.mxu1 %vm384_vm1, %v2016_v37  ;;  %6380 = vmatpush.xpose.msk.msra.mxu3 %vm384_vm1, %v8526_v42  ;;  %v6305_v37 = vld [vmem:[%s7469_s7 + $0xf8] sm:$0xff] }
 0x1ce   : > { %6329 = vmatpush.xpose.msk.msra.mxu0 %vm384_vm1, %v1999_v49  ;;  %6364 = vmatpush.xpose.msk.msra.mxu2 %vm384_vm1, %v8534_v53  ;;  %v6287_v49 = vld [vmem:[%s7469_s7 + $0x20] sm:$0xff] }
 0x1cf   : > { %6346 = vmatpush.xpose.msk.msra.mxu1 %vm384_vm1, %v2015_v50  ;;  %6381 = vmatpush.xpose.msk.msra.mxu3 %vm384_vm1, %v8536_v54  ;;  %v6303_v50 = vld [vmem:[%s7469_s7 + $0xe0] sm:$0xff] }
 0x1d2   : > { %6330 = vmatpush.xpose.msk.msra.mxu0 %vm384_vm1, %v1998_v55  ;;  %6365 = vmatpush.xpose.msk.msra.mxu2 %vm384_vm1, %v8544_v57  ;;  %v2583_v55 = vld [vmem:[#allocation2 + $0xc9] sm:$0xff] }
 0x1d3   : > { %6347 = vmatpush.xpose.msk.msra.mxu1 %vm384_vm1, %v2014_v56  ;;  %6382 = vmatpush.xpose.msk.msra.mxu3 %vm384_vm1, %v8546_v58  ;;  %v2599_v56 = vld [vmem:[#allocation2 + $0x189] sm:$0xff] }
 0x1d6   : > { %6331 = vmatpush.xpose.msk.msra.mxu0 %vm384_vm1, %v1997_v61  ;;  %6366 = vmatpush.xpose.msk.msra.mxu2 %vm384_vm1, %v8554_v3  ;;  %v6388_v61 = vld [vmem:[%s10555_s0 + $0xa8] sm:$0xff] }
 0x1d7   : > { %6348 = vmatpush.xpose.msk.msra.mxu1 %vm384_vm1, %v2013_v62  ;;  %6383 = vmatpush.xpose.msk.msra.mxu3 %vm384_vm1, %v8556_v4  ;;  %v6423_v62 = vld [vmem:[%s10555_s0 + $0xf0] sm:$0xff] }
 0x1da   : > { %6332 = vmatpush.xpose.msk.msra.mxu0 %vm384_vm1, %v1996_v7  ;;  %6367 = vmatpush.xpose.msk.msra.mxu2 %vm384_vm1, %v8564_v1  ;;  %v8756_v7 = vld [vmem:[#allocation2 + $0x271] sm:$0xff] }
 0x1db   : > { %6349 = vmatpush.xpose.msk.msra.mxu1 %vm384_vm1, %v2012_v8  ;;  %6384 = vmatpush.xpose.msk.msra.mxu3 %vm384_vm1, %v8566_v2  ;;  %v8758_v8 = vld [vmem:[#allocation2 + $0x331] sm:$0xff] }
 0x1de   : > { %6333 = vmatpush.xpose.msk.msra.mxu0 %vm384_vm1, %v1995_v5  ;;  %6368 = vmatpush.xpose.msk.msra.mxu2 %vm384_vm1, %v8574_v13 }
 0x1df   : > { %6350 = vmatpush.xpose.msk.msra.mxu1 %vm384_vm1, %v2011_v6  ;;  %6385 = vmatpush.xpose.msk.msra.mxu3 %vm384_vm1, %v8576_v14 }
 0x1e2   : > { %6334 = vmatpush.xpose.msk.msra.mxu0 %vm384_vm1, %v1994_v17  ;;  %6369 = vmatpush.xpose.msk.msra.mxu2 %vm384_vm1, %v8584_v19  ;;  %v8770_v17 = vld [vmem:[#allocation2 + $0x261] sm:$0xff] }
 0x1e3   : > { %6351 = vmatpush.xpose.msk.msra.mxu1 %vm384_vm1, %v2010_v18  ;;  %6386 = vmatpush.xpose.msk.msra.mxu3 %vm384_vm1, %v8586_v20  ;;  %v8772_v18 = vld [vmem:[#allocation2 + $0x321] sm:$0xff] }
 0x1e5   : > { %6335 = vmatmul.msk.f32.vlgmr.msra.gmra.mxu0 %vm384_vm1, %v6318_v27  ;;  %6370 = vmatmul.msk.f32.vlgmr.msra.gmra.mxu2 %vm384_vm1, %v6353_v28 }
 0x1e6   : > { %6389 = vmatpush.xpose.msk.msrb.mxu0 %vm384_vm1, %v8416_v11  ;;  %6424 = vmatpush.xpose.msk.msrb.mxu2 %vm384_vm1, %v6301_v59  ;;  %v1635_v11 = vpop.f32.mrf.mxu0  ;;  %v8780_v59 = vld [vmem:[#allocation2 + $0x259] sm:$0xff] }
 0x1e7   : > { %6406 = vmatpush.xpose.msk.msrb.mxu1 %vm384_vm1, %v8418_v12  ;;  %6441 = vmatpush.xpose.msk.msrb.mxu3 %vm384_vm1, %v6317_v60  ;;  %v1655_v12 = vpop.f32.mrf.mxu1  ;;  %v1658_v38 = vadd.f32 %v1635_v11, %v8312_v51  ;;  %v8782_v60 = vld [vmem:[#allocation2 + $0x319] sm:$0xff]  ;;  %v8794_v11 = vld [vmem:[#allocation2 + $0x249] sm:$0xff] }
 0x1e8   : > { %6352 = vmatmul.msk.f32.vlgmr.msra.gmra.mxu1 %vm384_vm1, %v6318_v27  ;;  %6387 = vmatmul.msk.f32.vlgmr.msra.gmra.mxu3 %vm384_vm1, %v6353_v28  ;;  %v1659_v48 = vadd.f32 %v1655_v12, %v8314_v52  ;;  %v1778_v51 = vpop.f32.mrf.mxu2  ;;  %v8796_v12 = vld [vmem:[#allocation2 + $0x309] sm:$0xff] }
 0x1e9   : > { %v8632_v25 = vadd.f32 %v1778_v51, %v1658_v38  ;;  %v2578_v38 = vld [vmem:[#allocation2 + $0x91] sm:$0xff]  ;;  %v2577_v51 = vld [vmem:[#allocation2 + $0x81] sm:$0xff] }
 0x1ea   : > { %6390 = vmatpush.xpose.msk.msrb.mxu0 %vm384_vm1, %v8436_v9  ;;  %6425 = vmatpush.xpose.msk.msrb.mxu2 %vm384_vm1, %v6300_v43  ;;  %v6298_v9 = vld [vmem:[%s7469_s7 + $0xa8] sm:$0xff]  ;;  %v2579_v43 = vld [vmem:[#allocation2 + $0x99] sm:$0xff] }
 0x1eb   : > { %6407 = vmatpush.xpose.msk.msrb.mxu1 %vm384_vm1, %v8438_v10  ;;  %6442 = vmatpush.xpose.msk.msrb.mxu3 %vm384_vm1, %v6316_v44  ;;  %v1798_v52 = vpop.f32.mrf.mxu3  ;;  %v6314_v10 = vld [vmem:[%s7469_s7 + $0x168] sm:$0xff]  ;;  %v2595_v44 = vld [vmem:[#allocation2 + $0x159] sm:$0xff] }
 0x1ec   : > { %v8634_v26 = vadd.f32 %v1798_v52, %v1659_v48  ;;  %v2594_v48 = vld [vmem:[#allocation2 + $0x151] sm:$0xff]  ;;  %v2593_v52 = vld [vmem:[#allocation2 + $0x141] sm:$0xff] }
 0x1ee   : > { %6391 = vmatpush.xpose.msk.msrb.mxu0 %vm384_vm1, %v8450_v23  ;;  %6426 = vmatpush.xpose.msk.msrb.mxu2 %vm384_vm1, %v6299_v63  ;;  %v6297_v23 = vld [vmem:[%s7469_s7 + $0x98] sm:$0xff]  ;;  %v8804_v63 = vld [vmem:[#allocation2 + $0x241] sm:$0xff] }
 0x1ef   : > { %6408 = vmatpush.xpose.msk.msrb.mxu1 %vm384_vm1, %v8452_v24  ;;  %6443 = vmatpush.xpose.msk.msrb.mxu3 %vm384_vm1, %v6315_v0  ;;  %v6313_v24 = vld [vmem:[%s7469_s7 + $0x158] sm:$0xff]  ;;  %v8806_v0 = vld [vmem:[#allocation2 + $0x301] sm:$0xff] }
 0x1f2   : > { %6392 = vmatpush.xpose.msk.msrb.mxu0 %vm384_vm1, %v8460_v31  ;;  %6427 = vmatpush.xpose.msk.msrb.mxu2 %vm384_vm1, %v6298_v9  ;;  %v6296_v31 = vld [vmem:[%s7469_s7 + $0x90] sm:$0xff] }
 0x1f3   : > { %6409 = vmatpush.xpose.msk.msrb.mxu1 %vm384_vm1, %v8462_v32  ;;  %6444 = vmatpush.xpose.msk.msrb.mxu3 %vm384_vm1, %v6314_v10  ;;  %v6312_v32 = vld [vmem:[%s7469_s7 + $0x150] sm:$0xff] }
 0x1f4   : > { %v8814_v9 = vld [vmem:[#allocation2 + $0x231] sm:$0xff] }
 0x1f5   : > { %v8816_v10 = vld [vmem:[#allocation2 + $0x2f1] sm:$0xff] }
 0x1f6   : > { %6393 = vmatpush.xpose.msk.msrb.mxu0 %vm384_vm1, %v8474_v15  ;;  %6428 = vmatpush.xpose.msk.msrb.mxu2 %vm384_vm1, %v6297_v23  ;;  %v6295_v15 = vld [vmem:[%s7469_s7 + $0x80] sm:$0xff] }
 0x1f7   : > { %6410 = vmatpush.xpose.msk.msrb.mxu1 %vm384_vm1, %v8476_v16  ;;  %6445 = vmatpush.xpose.msk.msrb.mxu3 %vm384_vm1, %v6313_v24  ;;  %v6311_v16 = vld [vmem:[%s7469_s7 + $0x140] sm:$0xff] }
 0x1f8   : > { %v2576_v23 = vld [vmem:[#allocation2 + $0x79] sm:$0xff] }
 0x1f9   : > { %v2592_v24 = vld [vmem:[#allocation2 + $0x139] sm:$0xff] }
 0x1fa   : > { %6394 = vmatpush.xpose.msk.msrb.mxu0 %vm384_vm1, %v8484_v45  ;;  %6429 = vmatpush.xpose.msk.msrb.mxu2 %vm384_vm1, %v6296_v31  ;;  %v6294_v45 = vld [vmem:[%s7469_s7 + $0x78] sm:$0xff]  ;;  %v8824_v31 = vld [vmem:[#allocation2 + $0x229] sm:$0xff] }
 0x1fb   : > { %6411 = vmatpush.xpose.msk.msrb.mxu1 %vm384_vm1, %v8486_v46  ;;  %6446 = vmatpush.xpose.msk.msrb.mxu3 %vm384_vm1, %v6312_v32  ;;  %v6310_v46 = vld [vmem:[%s7469_s7 + $0x138] sm:$0xff]  ;;  %v8826_v32 = vld [vmem:[#allocation2 + $0x2e9] sm:$0xff] }
 0x1fe   : > { %6395 = vmatpush.xpose.msk.msrb.mxu0 %vm384_vm1, %v8494_v21  ;;  %6430 = vmatpush.xpose.msk.msrb.mxu2 %vm384_vm1, %v6295_v15  ;;  %v6293_v21 = vld [vmem:[%s7469_s7 + $0x68] sm:$0xff] }
 0x1ff   : > { %6412 = vmatpush.xpose.msk.msrb.mxu1 %vm384_vm1, %v8496_v22  ;;  %6447 = vmatpush.xpose.msk.msrb.mxu3 %vm384_vm1, %v6311_v16  ;;  %v6309_v22 = vld [vmem:[%s7469_s7 + $0x128] sm:$0xff] }
 0x200   : > { %v2575_v15 = vld [vmem:[#allocation2 + $0x69] sm:$0xff] }
 0x201   : > { %v2591_v16 = vld [vmem:[#allocation2 + $0x129] sm:$0xff] }
 0x202   : > { %6396 = vmatpush.xpose.msk.msrb.mxu0 %vm384_vm1, %v8504_v29  ;;  %6431 = vmatpush.xpose.msk.msrb.mxu2 %vm384_vm1, %v6294_v45  ;;  %v6292_v29 = vld [vmem:[%s7469_s7 + $0x60] sm:$0xff] }
 0x203   : > { %6413 = vmatpush.xpose.msk.msrb.mxu1 %vm384_vm1, %v8506_v30  ;;  %6448 = vmatpush.xpose.msk.msrb.mxu3 %vm384_vm1, %v6310_v46  ;;  %v6308_v30 = vld [vmem:[%s7469_s7 + $0x120] sm:$0xff] }
 0x204   : > { %v8834_v45 = vld [vmem:[#allocation2 + $0x219] sm:$0xff] }
 0x205   : > { %v8836_v46 = vld [vmem:[#allocation2 + $0x2d9] sm:$0xff] }
 0x206   : > { %6397 = vmatpush.xpose.msk.msrb.mxu0 %vm384_vm1, %v8514_v39  ;;  %6432 = vmatpush.xpose.msk.msrb.mxu2 %vm384_vm1, %v6293_v21  ;;  %v6290_v39 = vld [vmem:[%s7469_s7 + $0x48] sm:$0xff] }
 0x207   : > { %6414 = vmatpush.xpose.msk.msrb.mxu1 %vm384_vm1, %v8516_v40  ;;  %6449 = vmatpush.xpose.msk.msrb.mxu3 %vm384_vm1, %v6309_v22  ;;  %v6306_v40 = vld [vmem:[%s7469_s7 + $0x108] sm:$0xff] }
 0x208   : > { %v2574_v21 = vld [vmem:[#allocation2 + $0x61] sm:$0xff] }
 0x209   : > { %v2590_v22 = vld [vmem:[#allocation2 + $0x121] sm:$0xff] }
 0x20a   : > { %6398 = vmatpush.xpose.msk.msrb.mxu0 %vm384_vm1, %v8524_v41  ;;  %6433 = vmatpush.xpose.msk.msrb.mxu2 %vm384_vm1, %v6292_v29  ;;  %v6288_v41 = vld [vmem:[%s7469_s7 + $0x30] sm:$0xff] }
 0x20b   : > { %6415 = vmatpush.xpose.msk.msrb.mxu1 %vm384_vm1, %v8526_v42  ;;  %6450 = vmatpush.xpose.msk.msrb.mxu3 %vm384_vm1, %v6308_v30  ;;  %v6304_v42 = vld [vmem:[%s7469_s7 + $0xf0] sm:$0xff] }
 0x20c   : > { %v8844_v29 = vld [vmem:[#allocation2 + $0x211] sm:$0xff] }
 0x20d   : > { %v8846_v30 = vld [vmem:[#allocation2 + $0x2d1] sm:$0xff] }
 0x20e   : > { %6399 = vmatpush.xpose.msk.msrb.mxu0 %vm384_vm1, %v8534_v53  ;;  %6434 = vmatpush.xpose.msk.msrb.mxu2 %vm384_vm1, %v6291_v33  ;;  %v6286_v53 = vld [vmem:[%s7469_s7 + $0x18] sm:$0xff] }
 0x20f   : > { %6416 = vmatpush.xpose.msk.msrb.mxu1 %vm384_vm1, %v8536_v54  ;;  %6451 = vmatpush.xpose.msk.msrb.mxu3 %vm384_vm1, %v6307_v34  ;;  %v6302_v54 = vld [vmem:[%s7469_s7 + $0xd8] sm:$0xff] }
 0x210   : > { %v2573_v33 = vld [vmem:[#allocation2 + $0x51] sm:$0xff] }
 0x211   : > { %v2589_v34 = vld [vmem:[#allocation2 + $0x111] sm:$0xff] }
 0x212   : > { %6400 = vmatpush.xpose.msk.msrb.mxu0 %vm384_vm1, %v8544_v57  ;;  %6435 = vmatpush.xpose.msk.msrb.mxu2 %vm384_vm1, %v6290_v39  ;;  %v8736_v57 = vld [vmem:[#allocation2 + $0x279] sm:$0xff]  ;;  %v8854_v39 = vld [vmem:[#allocation2 + $0x201] sm:$0xff] }
 0x213   : > { %6417 = vmatpush.xpose.msk.msrb.mxu1 %vm384_vm1, %v8546_v58  ;;  %6452 = vmatpush.xpose.msk.msrb.mxu3 %vm384_vm1, %v6306_v40  ;;  %v8738_v58 = vld [vmem:[#allocation2 + $0x339] sm:$0xff]  ;;  %v8856_v40 = vld [vmem:[#allocation2 + $0x2c1] sm:$0xff] }
 0x216   : > { %6401 = vmatpush.xpose.msk.msrb.mxu0 %vm384_vm1, %v8554_v3  ;;  %6436 = vmatpush.xpose.msk.msrb.mxu2 %vm384_vm1, %v6289_v47  ;;  %v2582_v3 = vld [vmem:[#allocation2 + $0xc1] sm:$0xff]  ;;  %v2572_v47 = vld [vmem:[#allocation2 + $0x49] sm:$0xff] }
 0x217   : > { %6418 = vmatpush.xpose.msk.msrb.mxu1 %vm384_vm1, %v8556_v4  ;;  %6453 = vmatpush.xpose.msk.msrb.mxu3 %vm384_vm1, %v6305_v37  ;;  %v2598_v4 = vld [vmem:[#allocation2 + $0x181] sm:$0xff]  ;;  %v2588_v37 = vld [vmem:[#allocation2 + $0x109] sm:$0xff] }
 0x21a   : > { %6402 = vmatpush.xpose.msk.msrb.mxu0 %vm384_vm1, %v8564_v1  ;;  %6437 = vmatpush.xpose.msk.msrb.mxu2 %vm384_vm1, %v6288_v41  ;;  %v8864_v41 = vld [vmem:[#allocation2 + $0x1f9] sm:$0xff] }
 0x21b   : > { %6419 = vmatpush.xpose.msk.msrb.mxu1 %vm384_vm1, %v8566_v2  ;;  %6454 = vmatpush.xpose.msk.msrb.mxu3 %vm384_vm1, %v6304_v42  ;;  %v8866_v42 = vld [vmem:[#allocation2 + $0x2b9] sm:$0xff] }
 0x21e   : > { %6403 = vmatpush.xpose.msk.msrb.mxu0 %vm384_vm1, %v8574_v13  ;;  %6438 = vmatpush.xpose.msk.msrb.mxu2 %vm384_vm1, %v6287_v49  ;;  %v2581_v13 = vld [vmem:[#allocation2 + $0xb1] sm:$0xff]  ;;  %v2571_v49 = vld [vmem:[#allocation2 + $0x39] sm:$0xff] }
 0x21f   : > { %6420 = vmatpush.xpose.msk.msrb.mxu1 %vm384_vm1, %v8576_v14  ;;  %6455 = vmatpush.xpose.msk.msrb.mxu3 %vm384_vm1, %v6303_v50  ;;  %v2597_v14 = vld [vmem:[#allocation2 + $0x171] sm:$0xff]  ;;  %v2587_v50 = vld [vmem:[#allocation2 + $0xf9] sm:$0xff] }
 0x222   : > { %6404 = vmatpush.xpose.msk.msrb.mxu0 %vm384_vm1, %v8584_v19  ;;  %6439 = vmatpush.xpose.msk.msrb.mxu2 %vm384_vm1, %v6286_v53  ;;  %v1825_v1 = vpop.f32.mrf.mxu0  ;;  %v8874_v53 = vld [vmem:[#allocation2 + $0x1e9] sm:$0xff] }
 0x223   : > { %6421 = vmatpush.xpose.msk.msrb.mxu1 %vm384_vm1, %v8586_v20  ;;  %6456 = vmatpush.xpose.msk.msrb.mxu3 %vm384_vm1, %v6302_v54  ;;  %v1848_v5 = vadd.f32 %v1825_v1, %v8464_v35  ;;  %v2580_v35 = vld [vmem:[#allocation2 + $0xa9] sm:$0xff]  ;;  %v8894_v1 = vld [vmem:[#allocation2 + $0x1d1] sm:$0xff] }
 0x224   : > { %v8876_v54 = vld [vmem:[#allocation2 + $0x2a9] sm:$0xff] }
 0x225   : > { %6405 = vmatmul.msk.f32.vlgmr.msrb.gmra.mxu0 %vm384_vm1, %v6388_v61  ;;  %6440 = vmatmul.msk.f32.vlgmr.msrb.gmra.mxu2 %vm384_vm1, %v6423_v62  ;;  %v1845_v2 = vpop.f32.mrf.mxu1 }
 0x226   : > { %6491 = vmatpush.xpose.msk.msra.mxu0 %vm384_vm1, %v2583_v55  ;;  %6526 = vmatpush.xpose.msk.msra.mxu2 %vm384_vm1, %v8736_v57  ;;  %v1849_v6 = vadd.f32 %v1845_v2, %v8466_v36  ;;  %v2596_v36 = vld [vmem:[#allocation2 + $0x169] sm:$0xff]  ;;  %v2570_v55 = vld [vmem:[#allocation2 + $0x31] sm:$0xff] }
 0x227   : > { %6508 = vmatpush.xpose.msk.msra.mxu1 %vm384_vm1, %v2599_v56  ;;  %6543 = vmatpush.xpose.msk.msra.mxu3 %vm384_vm1, %v8738_v58  ;;  %v2586_v56 = vld [vmem:[#allocation2 + $0xf1] sm:$0xff] }
 0x228   : > { %6422 = vmatmul.msk.f32.vlgmr.msrb.gmra.mxu1 %vm384_vm1, %v6388_v61  ;;  %6457 = vmatmul.msk.f32.vlgmr.msrb.gmra.mxu3 %vm384_vm1, %v6423_v62  ;;  %v1968_v19 = vpop.f32.mrf.mxu2  ;;  %v8884_v61 = vld [vmem:[#allocation2 + $0x1e1] sm:$0xff]  ;;  %v8896_v2 = vld [vmem:[#allocation2 + $0x291] sm:$0xff] }
 0x229   : > { %v8784_v27 = vadd.f32 %v1968_v19, %v1848_v5  ;;  %v8886_v62 = vld [vmem:[#allocation2 + $0x2a1] sm:$0xff]  ;;  %v2568_v5 = vld [vmem:[#allocation2 + $0x19] sm:$0xff] }
 0x22a   : > { %6492 = vmatpush.xpose.msk.msra.mxu0 %vm384_vm1, %v2582_v3  ;;  %6527 = vmatpush.xpose.msk.msra.mxu2 %vm384_vm1, %v8756_v7  ;;  %v2569_v3 = vld [vmem:[#allocation2 + $0x21] sm:$0xff] }
 0x22b   : > { %6509 = vmatpush.xpose.msk.msra.mxu1 %vm384_vm1, %v2598_v4  ;;  %6544 = vmatpush.xpose.msk.msra.mxu3 %vm384_vm1, %v8758_v8  ;;  %v1988_v20 = vpop.f32.mrf.mxu3  ;;  %v2585_v4 = vld [vmem:[#allocation2 + $0xe1] sm:$0xff] }
 0x22c   : > { %v8786_v28 = vadd.f32 %v1988_v20, %v1849_v6  ;;  %v2584_v6 = vld [vmem:[#allocation2 + $0xd9] sm:$0xff]  ;;  %v6525_v20 = vld [vmem:[%s10555_s0 + $0x68] sm:$0xff] }
 0x22d   : > { %v6490_v19 = vld [vmem:[%s10555_s0 + $0x20] sm:$0xff] }
 0x22e   : > { %6493 = vmatpush.xpose.msk.msra.mxu0 %vm384_vm1, %v2581_v13  ;;  %6528 = vmatpush.xpose.msk.msra.mxu2 %vm384_vm1, %v8770_v17  ;;  %v8904_v13 = vld [vmem:[#allocation2 + $0x1c9] sm:$0xff] }
 0x22f   : > { %6510 = vmatpush.xpose.msk.msra.mxu1 %vm384_vm1, %v2597_v14  ;;  %6545 = vmatpush.xpose.msk.msra.mxu3 %vm384_vm1, %v8772_v18  ;;  %v8906_v14 = vld [vmem:[#allocation2 + $0x289] sm:$0xff] }
 0x232   : > { %6494 = vmatpush.xpose.msk.msra.mxu0 %vm384_vm1, %v2580_v35  ;;  %6529 = vmatpush.xpose.msk.msra.mxu2 %vm384_vm1, %v8780_v59  ;;  %v6473_v35 = vld [vmem:[%s7469_s7 + $0xc9] sm:$0xff] }
 0x233   : > { %6511 = vmatpush.xpose.msk.msra.mxu1 %vm384_vm1, %v2596_v36  ;;  %6546 = vmatpush.xpose.msk.msra.mxu3 %vm384_vm1, %v8782_v60  ;;  %v6489_v36 = vld [vmem:[%s7469_s7 + $0x189] sm:$0xff] }
 0x236   : > { %6495 = vmatpush.xpose.msk.msra.mxu0 %vm384_vm1, %v2579_v43  ;;  %6530 = vmatpush.xpose.msk.msra.mxu2 %vm384_vm1, %v8794_v11  ;;  %v6472_v43 = vld [vmem:[%s7469_s7 + $0xc1] sm:$0xff] }
 0x237   : > { %6512 = vmatpush.xpose.msk.msra.mxu1 %vm384_vm1, %v2595_v44  ;;  %6547 = vmatpush.xpose.msk.msra.mxu3 %vm384_vm1, %v8796_v12  ;;  %v6487_v44 = vld [vmem:[%s7469_s7 + $0x171] sm:$0xff] }
 0x23a   : > { %6496 = vmatpush.xpose.msk.msra.mxu0 %vm384_vm1, %v2578_v38  ;;  %6531 = vmatpush.xpose.msk.msra.mxu2 %vm384_vm1, %v8804_v63  ;;  %v6466_v38 = vld [vmem:[%s7469_s7 + $0x79] sm:$0xff] }
 0x23b   : > { %6513 = vmatpush.xpose.msk.msra.mxu1 %vm384_vm1, %v2594_v48  ;;  %6548 = vmatpush.xpose.msk.msra.mxu3 %vm384_vm1, %v8806_v0  ;;  %v6482_v48 = vld [vmem:[%s7469_s7 + $0x139] sm:$0xff] }
 0x23e   : > { %6497 = vmatpush.xpose.msk.msra.mxu0 %vm384_vm1, %v2577_v51  ;;  %6532 = vmatpush.xpose.msk.msra.mxu2 %vm384_vm1, %v8814_v9  ;;  %v6464_v51 = vld [vmem:[%s7469_s7 + $0x61] sm:$0xff] }
 0x23f   : > { %6514 = vmatpush.xpose.msk.msra.mxu1 %vm384_vm1, %v2593_v52  ;;  %6549 = vmatpush.xpose.msk.msra.mxu3 %vm384_vm1, %v8816_v10  ;;  %v6480_v52 = vld [vmem:[%s7469_s7 + $0x121] sm:$0xff] }
 0x242   : > { %6498 = vmatpush.xpose.msk.msra.mxu0 %vm384_vm1, %v2576_v23  ;;  %6533 = vmatpush.xpose.msk.msra.mxu2 %vm384_vm1, %v8824_v31  ;;  %v6462_v23 = vld [vmem:[%s7469_s7 + $0x49] sm:$0xff] }
 0x243   : > { %6515 = vmatpush.xpose.msk.msra.mxu1 %vm384_vm1, %v2592_v24  ;;  %6550 = vmatpush.xpose.msk.msra.mxu3 %vm384_vm1, %v8826_v32  ;;  %v6478_v24 = vld [vmem:[%s7469_s7 + $0x109] sm:$0xff] }
 0x246   : > { %6499 = vmatpush.xpose.msk.msra.mxu0 %vm384_vm1, %v2575_v15  ;;  %6534 = vmatpush.xpose.msk.msra.mxu2 %vm384_vm1, %v8834_v45  ;;  %v6460_v15 = vld [vmem:[%s7469_s7 + $0x31] sm:$0xff] }
 0x247   : > { %6516 = vmatpush.xpose.msk.msra.mxu1 %vm384_vm1, %v2591_v16  ;;  %6551 = vmatpush.xpose.msk.msra.mxu3 %vm384_vm1, %v8836_v46  ;;  %v6476_v16 = vld [vmem:[%s7469_s7 + $0xf1] sm:$0xff] }
 0x24a   : > { %6500 = vmatpush.xpose.msk.msra.mxu0 %vm384_vm1, %v2574_v21  ;;  %6535 = vmatpush.xpose.msk.msra.mxu2 %vm384_vm1, %v8844_v29 }
 0x24b   : > { %6517 = vmatpush.xpose.msk.msra.mxu1 %vm384_vm1, %v2590_v22  ;;  %6552 = vmatpush.xpose.msk.msra.mxu3 %vm384_vm1, %v8846_v30 }
 0x24e   : > { %6501 = vmatpush.xpose.msk.msra.mxu0 %vm384_vm1, %v2573_v33  ;;  %6536 = vmatpush.xpose.msk.msra.mxu2 %vm384_vm1, %v8854_v39  ;;  %v3155_v33 = vld [vmem:[#allocation2 + $0xca] sm:$0xff] }
 0x24f   : > { %6518 = vmatpush.xpose.msk.msra.mxu1 %vm384_vm1, %v2589_v34  ;;  %6553 = vmatpush.xpose.msk.msra.mxu3 %vm384_vm1, %v8856_v40  ;;  %v3171_v34 = vld [vmem:[#allocation2 + $0x18a] sm:$0xff] }
 0x252   : > { %6502 = vmatpush.xpose.msk.msra.mxu0 %vm384_vm1, %v2572_v47  ;;  %6537 = vmatpush.xpose.msk.msra.mxu2 %vm384_vm1, %v8864_v41  ;;  %v6560_v47 = vld [vmem:[%s10555_s0 + $0xb0] sm:$0xff] }
 0x253   : > { %6519 = vmatpush.xpose.msk.msra.mxu1 %vm384_vm1, %v2588_v37  ;;  %6554 = vmatpush.xpose.msk.msra.mxu3 %vm384_vm1, %v8866_v42  ;;  %v6595_v37 = vld [vmem:[%s10555_s0 + $0xf8] sm:$0xff] }
 0x256   : > { %6503 = vmatpush.xpose.msk.msra.mxu0 %vm384_vm1, %v2571_v49  ;;  %6538 = vmatpush.xpose.msk.msra.mxu2 %vm384_vm1, %v8874_v53 }
 0x257   : > { %6520 = vmatpush.xpose.msk.msra.mxu1 %vm384_vm1, %v2587_v50  ;;  %6555 = vmatpush.xpose.msk.msra.mxu3 %vm384_vm1, %v8876_v54 }
 0x25a   : > { %6504 = vmatpush.xpose.msk.msra.mxu0 %vm384_vm1, %v2570_v55  ;;  %6539 = vmatpush.xpose.msk.msra.mxu2 %vm384_vm1, %v8884_v61 }
 0x25b   : > { %6521 = vmatpush.xpose.msk.msra.mxu1 %vm384_vm1, %v2586_v56  ;;  %6556 = vmatpush.xpose.msk.msra.mxu3 %vm384_vm1, %v8886_v62 }
 0x25e   : > { %6505 = vmatpush.xpose.msk.msra.mxu0 %vm384_vm1, %v2569_v3  ;;  %6540 = vmatpush.xpose.msk.msra.mxu2 %vm384_vm1, %v8894_v1  ;;  %v3153_v3 = vld [vmem:[#allocation2 + $0xb2] sm:$0xff] }
 0x25f   : > { %6522 = vmatpush.xpose.msk.msra.mxu1 %vm384_vm1, %v2585_v4  ;;  %6557 = vmatpush.xpose.msk.msra.mxu3 %vm384_vm1, %v8896_v2  ;;  %v3169_v4 = vld [vmem:[#allocation2 + $0x172] sm:$0xff] }
 0x262   : > { %6506 = vmatpush.xpose.msk.msra.mxu0 %vm384_vm1, %v2568_v5  ;;  %6541 = vmatpush.xpose.msk.msra.mxu2 %vm384_vm1, %v8904_v13  ;;  %v9042_v21 = vpop.f32.mrf.mxu0 }
 0x263   : > { %6523 = vmatpush.xpose.msk.msra.mxu1 %vm384_vm1, %v2584_v6  ;;  %6558 = vmatpush.xpose.msk.msra.mxu3 %vm384_vm1, %v8906_v14 }
 0x265   : > { %6507 = vmatmul.msk.f32.vlgmr.msra.gmra.mxu0 %vm384_vm1, %v6490_v19  ;;  %6542 = vmatmul.msk.f32.vlgmr.msra.gmra.mxu2 %vm384_vm1, %v6525_v20  ;;  %v9044_v22 = vpop.f32.mrf.mxu1 }
 0x266   : > { %6561 = vmatpush.xpose.msk.msrb.mxu0 %vm384_vm1, %v8736_v57  ;;  %6596 = vmatpush.xpose.msk.msrb.mxu2 %vm384_vm1, %v6473_v35  ;;  %v6488_v57 = vld [vmem:[%s7469_s7 + $0x181] sm:$0xff] }
 0x267   : > { %6578 = vmatpush.xpose.msk.msrb.mxu1 %vm384_vm1, %v8738_v58  ;;  %6613 = vmatpush.xpose.msk.msrb.mxu3 %vm384_vm1, %v6489_v36  ;;  %v6471_v58 = vld [vmem:[%s7469_s7 + $0xb1] sm:$0xff] }
 0x268   : > { %6524 = vmatmul.msk.f32.vlgmr.msra.gmra.mxu1 %vm384_vm1, %v6490_v19  ;;  %6559 = vmatmul.msk.f32.vlgmr.msra.gmra.mxu3 %vm384_vm1, %v6525_v20  ;;  %v9072_v49 = vpop.f32.mrf.mxu2  ;;  %v3151_v19 = vld [vmem:[#allocation2 + $0x9a] sm:$0xff] }
 0x269   : > { %v3167_v20 = vld [vmem:[#allocation2 + $0x15a] sm:$0xff] }
 0x26a   : > { %6562 = vmatpush.xpose.msk.msrb.mxu0 %vm384_vm1, %v8756_v7  ;;  %6597 = vmatpush.xpose.msk.msrb.mxu2 %vm384_vm1, %v6472_v43  ;;  %v6470_v7 = vld [vmem:[%s7469_s7 + $0xa9] sm:$0xff] }
 0x26b   : > { %6579 = vmatpush.xpose.msk.msrb.mxu1 %vm384_vm1, %v8758_v8  ;;  %6614 = vmatpush.xpose.msk.msrb.mxu3 %vm384_vm1, %v6488_v57  ;;  %v6486_v8 = vld [vmem:[%s7469_s7 + $0x169] sm:$0xff]  ;;  %v9074_v50 = vpop.f32.mrf.mxu3 }
 0x26c   : > { %v9116_v43 = vld [vmem:[#allocation2 + $0x24a] sm:$0xff] }
 0x26d   : > { %v9118_v57 = vld [vmem:[#allocation2 + $0x30a] sm:$0xff] }
 0x26e   : > { %6563 = vmatpush.xpose.msk.msrb.mxu0 %vm384_vm1, %v8770_v17  ;;  %6598 = vmatpush.xpose.msk.msrb.mxu2 %vm384_vm1, %v6471_v58  ;;  %v6469_v17 = vld [vmem:[%s7469_s7 + $0x99] sm:$0xff] }
 0x26f   : > { %6580 = vmatpush.xpose.msk.msrb.mxu1 %vm384_vm1, %v8772_v18  ;;  %6615 = vmatpush.xpose.msk.msrb.mxu3 %vm384_vm1, %v6487_v44  ;;  %v6485_v18 = vld [vmem:[%s7469_s7 + $0x159] sm:$0xff] }
 0x270   : > { %v3150_v58 = vld [vmem:[#allocation2 + $0x92] sm:$0xff] }
 0x271   : > { %v3166_v44 = vld [vmem:[#allocation2 + $0x152] sm:$0xff] }
 0x272   : > { %6564 = vmatpush.xpose.msk.msrb.mxu0 %vm384_vm1, %v8780_v59  ;;  %6599 = vmatpush.xpose.msk.msrb.mxu2 %vm384_vm1, %v6470_v7  ;;  %v6468_v59 = vld [vmem:[%s7469_s7 + $0x91] sm:$0xff]  ;;  %v9126_v7 = vld [vmem:[#allocation2 + $0x242] sm:$0xff] }
 0x273   : > { %6581 = vmatpush.xpose.msk.msrb.mxu1 %vm384_vm1, %v8782_v60  ;;  %6616 = vmatpush.xpose.msk.msrb.mxu3 %vm384_vm1, %v6486_v8  ;;  %v6484_v60 = vld [vmem:[%s7469_s7 + $0x151] sm:$0xff]  ;;  %v9128_v8 = vld [vmem:[#allocation2 + $0x302] sm:$0xff] }
 0x276   : > { %6565 = vmatpush.xpose.msk.msrb.mxu0 %vm384_vm1, %v8794_v11  ;;  %6600 = vmatpush.xpose.msk.msrb.mxu2 %vm384_vm1, %v6469_v17  ;;  %v6467_v11 = vld [vmem:[%s7469_s7 + $0x81] sm:$0xff] }
 0x277   : > { %6582 = vmatpush.xpose.msk.msrb.mxu1 %vm384_vm1, %v8796_v12  ;;  %6617 = vmatpush.xpose.msk.msrb.mxu3 %vm384_vm1, %v6485_v18  ;;  %v6483_v12 = vld [vmem:[%s7469_s7 + $0x141] sm:$0xff] }
 0x278   : > { %v3149_v17 = vld [vmem:[#allocation2 + $0x82] sm:$0xff] }
 0x279   : > { %v3165_v18 = vld [vmem:[#allocation2 + $0x142] sm:$0xff] }
 0x27a   : > { %6566 = vmatpush.xpose.msk.msrb.mxu0 %vm384_vm1, %v8804_v63  ;;  %6601 = vmatpush.xpose.msk.msrb.mxu2 %vm384_vm1, %v6468_v59  ;;  %v6465_v63 = vld [vmem:[%s7469_s7 + $0x69] sm:$0xff]  ;;  %v9136_v59 = vld [vmem:[#allocation2 + $0x232] sm:$0xff] }
 0x27b   : > { %6583 = vmatpush.xpose.msk.msrb.mxu1 %vm384_vm1, %v8806_v0  ;;  %6618 = vmatpush.xpose.msk.msrb.mxu3 %vm384_vm1, %v6484_v60  ;;  %v6481_v0 = vld [vmem:[%s7469_s7 + $0x129] sm:$0xff]  ;;  %v9138_v60 = vld [vmem:[#allocation2 + $0x2f2] sm:$0xff] }
 0x27e   : > { %6567 = vmatpush.xpose.msk.msrb.mxu0 %vm384_vm1, %v8814_v9  ;;  %6602 = vmatpush.xpose.msk.msrb.mxu2 %vm384_vm1, %v6467_v11  ;;  %v6463_v9 = vld [vmem:[%s7469_s7 + $0x51] sm:$0xff]  ;;  %v3148_v11 = vld [vmem:[#allocation2 + $0x7a] sm:$0xff] }
 0x27f   : > { %6584 = vmatpush.xpose.msk.msrb.mxu1 %vm384_vm1, %v8816_v10  ;;  %6619 = vmatpush.xpose.msk.msrb.mxu3 %vm384_vm1, %v6483_v12  ;;  %v6479_v10 = vld [vmem:[%s7469_s7 + $0x111] sm:$0xff]  ;;  %v3164_v12 = vld [vmem:[#allocation2 + $0x13a] sm:$0xff] }
 0x282   : > { %6568 = vmatpush.xpose.msk.msrb.mxu0 %vm384_vm1, %v8824_v31  ;;  %6603 = vmatpush.xpose.msk.msrb.mxu2 %vm384_vm1, %v6466_v38  ;;  %v6461_v31 = vld [vmem:[%s7469_s7 + $0x39] sm:$0xff]  ;;  %v9146_v38 = vld [vmem:[#allocation2 + $0x22a] sm:$0xff] }
 0x283   : > { %6585 = vmatpush.xpose.msk.msrb.mxu1 %vm384_vm1, %v8826_v32  ;;  %6620 = vmatpush.xpose.msk.msrb.mxu3 %vm384_vm1, %v6482_v48  ;;  %v6477_v32 = vld [vmem:[%s7469_s7 + $0xf9] sm:$0xff]  ;;  %v9148_v48 = vld [vmem:[#allocation2 + $0x2ea] sm:$0xff] }
 0x286   : > { %6569 = vmatpush.xpose.msk.msrb.mxu0 %vm384_vm1, %v8834_v45  ;;  %6604 = vmatpush.xpose.msk.msrb.mxu2 %vm384_vm1, %v6465_v63  ;;  %v6459_v45 = vld [vmem:[%s7469_s7 + $0x21] sm:$0xff]  ;;  %v3147_v63 = vld [vmem:[#allocation2 + $0x6a] sm:$0xff] }
 0x287   : > { %6586 = vmatpush.xpose.msk.msrb.mxu1 %vm384_vm1, %v8836_v46  ;;  %6621 = vmatpush.xpose.msk.msrb.mxu3 %vm384_vm1, %v6481_v0  ;;  %v6475_v46 = vld [vmem:[%s7469_s7 + $0xe1] sm:$0xff]  ;;  %v3163_v0 = vld [vmem:[#allocation2 + $0x12a] sm:$0xff] }
 0x28a   : > { %6570 = vmatpush.xpose.msk.msrb.mxu0 %vm384_vm1, %v8844_v29  ;;  %6605 = vmatpush.xpose.msk.msrb.mxu2 %vm384_vm1, %v6464_v51  ;;  %v6458_v29 = vld [vmem:[%s7469_s7 + $0x19] sm:$0xff] }
 0x28b   : > { %6587 = vmatpush.xpose.msk.msrb.mxu1 %vm384_vm1, %v8846_v30  ;;  %6622 = vmatpush.xpose.msk.msrb.mxu3 %vm384_vm1, %v6480_v52  ;;  %v6474_v30 = vld [vmem:[%s7469_s7 + $0xd9] sm:$0xff] }
 0x28c   : > { %v9156_v51 = vld [vmem:[#allocation2 + $0x21a] sm:$0xff] }
 0x28d   : > { %v9158_v52 = vld [vmem:[#allocation2 + $0x2da] sm:$0xff] }
 0x28e   : > { %6571 = vmatpush.xpose.msk.msrb.mxu0 %vm384_vm1, %v8854_v39  ;;  %6606 = vmatpush.xpose.msk.msrb.mxu2 %vm384_vm1, %v6463_v9  ;;  %v9054_v39 = vld [vmem:[#allocation2 + $0x27a] sm:$0xff]  ;;  %v3146_v9 = vld [vmem:[#allocation2 + $0x62] sm:$0xff] }
 0x28f   : > { %6588 = vmatpush.xpose.msk.msrb.mxu1 %vm384_vm1, %v8856_v40  ;;  %6623 = vmatpush.xpose.msk.msrb.mxu3 %vm384_vm1, %v6479_v10  ;;  %v9056_v40 = vld [vmem:[#allocation2 + $0x33a] sm:$0xff]  ;;  %v3162_v10 = vld [vmem:[#allocation2 + $0x122] sm:$0xff] }
 0x292   : > { %6572 = vmatpush.xpose.msk.msrb.mxu0 %vm384_vm1, %v8864_v41  ;;  %6607 = vmatpush.xpose.msk.msrb.mxu2 %vm384_vm1, %v6462_v23  ;;  %v3154_v41 = vld [vmem:[#allocation2 + $0xc2] sm:$0xff]  ;;  %v9166_v23 = vld [vmem:[#allocation2 + $0x212] sm:$0xff] }
 0x293   : > { %6589 = vmatpush.xpose.msk.msrb.mxu1 %vm384_vm1, %v8866_v42  ;;  %6624 = vmatpush.xpose.msk.msrb.mxu3 %vm384_vm1, %v6478_v24  ;;  %v3170_v42 = vld [vmem:[#allocation2 + $0x182] sm:$0xff]  ;;  %v9168_v24 = vld [vmem:[#allocation2 + $0x2d2] sm:$0xff] }
 0x296   : > { %6573 = vmatpush.xpose.msk.msrb.mxu0 %vm384_vm1, %v8874_v53  ;;  %6608 = vmatpush.xpose.msk.msrb.mxu2 %vm384_vm1, %v6461_v31  ;;  %v9078_v53 = vld [vmem:[#allocation2 + $0x272] sm:$0xff] }
 0x297   : > { %6590 = vmatpush.xpose.msk.msrb.mxu1 %vm384_vm1, %v8876_v54  ;;  %6625 = vmatpush.xpose.msk.msrb.mxu3 %vm384_vm1, %v6477_v32  ;;  %v9080_v54 = vld [vmem:[#allocation2 + $0x332] sm:$0xff] }
 0x298   : > { %v3145_v31 = vld [vmem:[#allocation2 + $0x52] sm:$0xff] }
 0x299   : > { %v3161_v32 = vld [vmem:[#allocation2 + $0x112] sm:$0xff] }
 0x29a   : > { %6574 = vmatpush.xpose.msk.msrb.mxu0 %vm384_vm1, %v8884_v61  ;;  %6609 = vmatpush.xpose.msk.msrb.mxu2 %vm384_vm1, %v6460_v15  ;;  %v9176_v15 = vld [vmem:[#allocation2 + $0x202] sm:$0xff] }
 0x29b   : > { %6591 = vmatpush.xpose.msk.msrb.mxu1 %vm384_vm1, %v8886_v62  ;;  %6626 = vmatpush.xpose.msk.msrb.mxu3 %vm384_vm1, %v6476_v16  ;;  %v9178_v16 = vld [vmem:[#allocation2 + $0x2c2] sm:$0xff] }
 0x29e   : > { %6575 = vmatpush.xpose.msk.msrb.mxu0 %vm384_vm1, %v8894_v1  ;;  %6610 = vmatpush.xpose.msk.msrb.mxu2 %vm384_vm1, %v6459_v45  ;;  %v9092_v1 = vld [vmem:[#allocation2 + $0x262] sm:$0xff]  ;;  %v3144_v45 = vld [vmem:[#allocation2 + $0x4a] sm:$0xff] }
 0x29f   : > { %6592 = vmatpush.xpose.msk.msrb.mxu1 %vm384_vm1, %v8896_v2  ;;  %6627 = vmatpush.xpose.msk.msrb.mxu3 %vm384_vm1, %v6475_v46  ;;  %v9094_v2 = vld [vmem:[#allocation2 + $0x322] sm:$0xff]  ;;  %v3160_v46 = vld [vmem:[#allocation2 + $0x10a] sm:$0xff] }
 0x2a2   : > { %6576 = vmatpush.xpose.msk.msrb.mxu0 %vm384_vm1, %v8904_v13  ;;  %6611 = vmatpush.xpose.msk.msrb.mxu2 %vm384_vm1, %v6458_v29  ;;  %v2400_v55 = vpop.f32.mrf.mxu0  ;;  %v9102_v13 = vld [vmem:[#allocation2 + $0x25a] sm:$0xff] }
 0x2a3   : > { %6593 = vmatpush.xpose.msk.msrb.mxu1 %vm384_vm1, %v8906_v14  ;;  %6628 = vmatpush.xpose.msk.msrb.mxu3 %vm384_vm1, %v6474_v30  ;;  %v2423_v61 = vadd.f32 %v2400_v55, %v8784_v27  ;;  %v3152_v27 = vld [vmem:[#allocation2 + $0xaa] sm:$0xff]  ;;  %v9104_v14 = vld [vmem:[#allocation2 + $0x31a] sm:$0xff]  ;;  %v9206_v55 = vld [vmem:[#allocation2 + $0x1e2] sm:$0xff] }
 0x2a4   : > { %v9186_v29 = vld [vmem:[#allocation2 + $0x1fa] sm:$0xff] }
 0x2a5   : > { %6577 = vmatmul.msk.f32.vlgmr.msrb.gmra.mxu0 %vm384_vm1, %v6560_v47  ;;  %6612 = vmatmul.msk.f32.vlgmr.msrb.gmra.mxu2 %vm384_vm1, %v6595_v37  ;;  %v2420_v56 = vpop.f32.mrf.mxu1  ;;  %v9188_v30 = vld [vmem:[#allocation2 + $0x2ba] sm:$0xff] }
 0x2a6   : > { %6663 = vmatpush.xpose.msk.msra.mxu0 %vm384_vm1, %v3155_v33  ;;  %6698 = vmatpush.xpose.msk.msra.mxu2 %vm384_vm1, %v9054_v39  ;;  %v2424_v62 = vadd.f32 %v2420_v56, %v8786_v28  ;;  %v3168_v28 = vld [vmem:[#allocation2 + $0x16a] sm:$0xff]  ;;  %v3143_v33 = vld [vmem:[#allocation2 + $0x3a] sm:$0xff]  ;;  %v9208_v56 = vld [vmem:[#allocation2 + $0x2a2] sm:$0xff] }
 0x2a7   : > { %6680 = vmatpush.xpose.msk.msra.mxu1 %vm384_vm1, %v3171_v34  ;;  %6715 = vmatpush.xpose.msk.msra.mxu3 %vm384_vm1, %v9056_v40  ;;  %v3159_v34 = vld [vmem:[#allocation2 + $0xfa] sm:$0xff] }
 0x2a8   : > { %6594 = vmatmul.msk.f32.vlgmr.msrb.gmra.mxu1 %vm384_vm1, %v6560_v47  ;;  %6629 = vmatmul.msk.f32.vlgmr.msrb.gmra.mxu3 %vm384_vm1, %v6595_v37  ;;  %v2543_v5 = vpop.f32.mrf.mxu2  ;;  %v9196_v47 = vld [vmem:[#allocation2 + $0x1ea] sm:$0xff] }
 0x2a9   : > { %v9106_v35 = vadd.f32 %v2543_v5, %v2423_v61  ;;  %v9198_v37 = vld [vmem:[#allocation2 + $0x2aa] sm:$0xff]  ;;  %v3141_v61 = vld [vmem:[#allocation2 + $0x22] sm:$0xff] }
 0x2aa   : > { %6664 = vmatpush.xpose.msk.msra.mxu0 %vm384_vm1, %v3154_v41  ;;  %6699 = vmatpush.xpose.msk.msra.mxu2 %vm384_vm1, %v9078_v53  ;;  %v3142_v41 = vld [vmem:[#allocation2 + $0x32] sm:$0xff]  ;;  %v9226_v5 = vld [vmem:[#allocation2 + $0x1ca] sm:$0xff] }
 0x2ab   : > { %6681 = vmatpush.xpose.msk.msra.mxu1 %vm384_vm1, %v3170_v42  ;;  %6716 = vmatpush.xpose.msk.msra.mxu3 %vm384_vm1, %v9080_v54  ;;  %v2563_v6 = vpop.f32.mrf.mxu3  ;;  %v3158_v42 = vld [vmem:[#allocation2 + $0xf2] sm:$0xff] }
 0x2ac   : > { %v9108_v36 = vadd.f32 %v2563_v6, %v2424_v62  ;;  %v3157_v62 = vld [vmem:[#allocation2 + $0xe2] sm:$0xff]  ;;  %v9228_v6 = vld [vmem:[#allocation2 + $0x28a] sm:$0xff] }
 0x2ae   : > { %6665 = vmatpush.xpose.msk.msra.mxu0 %vm384_vm1, %v3153_v3  ;;  %6700 = vmatpush.xpose.msk.msra.mxu2 %vm384_vm1, %v9092_v1  ;;  %v9216_v3 = vld [vmem:[#allocation2 + $0x1d2] sm:$0xff] }
 0x2af   : > { %6682 = vmatpush.xpose.msk.msra.mxu1 %vm384_vm1, %v3169_v4  ;;  %6717 = vmatpush.xpose.msk.msra.mxu3 %vm384_vm1, %v9094_v2  ;;  %v9218_v4 = vld [vmem:[#allocation2 + $0x292] sm:$0xff] }
 0x2b2   : > { %6666 = vmatpush.xpose.msk.msra.mxu0 %vm384_vm1, %v3152_v27  ;;  %6701 = vmatpush.xpose.msk.msra.mxu2 %vm384_vm1, %v9102_v13  ;;  %v3140_v27 = vld [vmem:[#allocation2 + $0x1a] sm:$0xff] }
 0x2b3   : > { %6683 = vmatpush.xpose.msk.msra.mxu1 %vm384_vm1, %v3168_v28  ;;  %6718 = vmatpush.xpose.msk.msra.mxu3 %vm384_vm1, %v9104_v14  ;;  %v3156_v28 = vld [vmem:[#allocation2 + $0xda] sm:$0xff] }
 0x2b6   : > { %6667 = vmatpush.xpose.msk.msra.mxu0 %vm384_vm1, %v3151_v19  ;;  %6702 = vmatpush.xpose.msk.msra.mxu2 %vm384_vm1, %v9116_v43  ;;  %v6645_v19 = vld [vmem:[%s7469_s7 + $0xca] sm:$0xff] }
 0x2b7   : > { %6684 = vmatpush.xpose.msk.msra.mxu1 %vm384_vm1, %v3167_v20  ;;  %6719 = vmatpush.xpose.msk.msra.mxu3 %vm384_vm1, %v9118_v57  ;;  %v6661_v20 = vld [vmem:[%s7469_s7 + $0x18a] sm:$0xff] }
 0x2ba   : > { %6668 = vmatpush.xpose.msk.msra.mxu0 %vm384_vm1, %v3150_v58  ;;  %6703 = vmatpush.xpose.msk.msra.mxu2 %vm384_vm1, %v9126_v7  ;;  %v6662_v58 = vld [vmem:[%s10555_s0 + $0x28] sm:$0xff] }
 0x2bb   : > { %6685 = vmatpush.xpose.msk.msra.mxu1 %vm384_vm1, %v3166_v44  ;;  %6720 = vmatpush.xpose.msk.msra.mxu3 %vm384_vm1, %v9128_v8  ;;  %v6697_v44 = vld [vmem:[%s10555_s0 + $0x70] sm:$0xff] }
 0x2be   : > { %6669 = vmatpush.xpose.msk.msra.mxu0 %vm384_vm1, %v3149_v17  ;;  %6704 = vmatpush.xpose.msk.msra.mxu2 %vm384_vm1, %v9136_v59  ;;  %v6644_v17 = vld [vmem:[%s7469_s7 + $0xc2] sm:$0xff] }
 0x2bf   : > { %6686 = vmatpush.xpose.msk.msra.mxu1 %vm384_vm1, %v3165_v18  ;;  %6721 = vmatpush.xpose.msk.msra.mxu3 %vm384_vm1, %v9138_v60  ;;  %v6659_v18 = vld [vmem:[%s7469_s7 + $0x172] sm:$0xff] }
 0x2c2   : > { %6670 = vmatpush.xpose.msk.msra.mxu0 %vm384_vm1, %v3148_v11  ;;  %6705 = vmatpush.xpose.msk.msra.mxu2 %vm384_vm1, %v9146_v38  ;;  %v6636_v11 = vld [vmem:[%s7469_s7 + $0x62] sm:$0xff] }
 0x2c3   : > { %6687 = vmatpush.xpose.msk.msra.mxu1 %vm384_vm1, %v3164_v12  ;;  %6722 = vmatpush.xpose.msk.msra.mxu3 %vm384_vm1, %v9148_v48  ;;  %v6652_v12 = vld [vmem:[%s7469_s7 + $0x122] sm:$0xff] }
 0x2c6   : > { %6671 = vmatpush.xpose.msk.msra.mxu0 %vm384_vm1, %v3147_v63  ;;  %6706 = vmatpush.xpose.msk.msra.mxu2 %vm384_vm1, %v9156_v51  ;;  %v6634_v63 = vld [vmem:[%s7469_s7 + $0x4a] sm:$0xff] }
 0x2c7   : > { %6688 = vmatpush.xpose.msk.msra.mxu1 %vm384_vm1, %v3163_v0  ;;  %6723 = vmatpush.xpose.msk.msra.mxu3 %vm384_vm1, %v9158_v52  ;;  %v6650_v0 = vld [vmem:[%s7469_s7 + $0x10a] sm:$0xff] }
 0x2ca   : > { %6672 = vmatpush.xpose.msk.msra.mxu0 %vm384_vm1, %v3146_v9  ;;  %6707 = vmatpush.xpose.msk.msra.mxu2 %vm384_vm1, %v9166_v23  ;;  %v6632_v9 = vld [vmem:[%s7469_s7 + $0x32] sm:$0xff] }
 0x2cb   : > { %6689 = vmatpush.xpose.msk.msra.mxu1 %vm384_vm1, %v3162_v10  ;;  %6724 = vmatpush.xpose.msk.msra.mxu3 %vm384_vm1, %v9168_v24  ;;  %v6648_v10 = vld [vmem:[%s7469_s7 + $0xf2] sm:$0xff] }
 0x2ce   : > { %6673 = vmatpush.xpose.msk.msra.mxu0 %vm384_vm1, %v3145_v31  ;;  %6708 = vmatpush.xpose.msk.msra.mxu2 %vm384_vm1, %v9176_v15 }
 0x2cf   : > { %6690 = vmatpush.xpose.msk.msra.mxu1 %vm384_vm1, %v3161_v32  ;;  %6725 = vmatpush.xpose.msk.msra.mxu3 %vm384_vm1, %v9178_v16 }
 0x2d2   : > { %6674 = vmatpush.xpose.msk.msra.mxu0 %vm384_vm1, %v3144_v45  ;;  %6709 = vmatpush.xpose.msk.msra.mxu2 %vm384_vm1, %v9186_v29  ;;  %v3728_v45 = vld [vmem:[#allocation2 + $0xe0] sm:$0xff] }
 0x2d3   : > { %6691 = vmatpush.xpose.msk.msra.mxu1 %vm384_vm1, %v3160_v46  ;;  %6726 = vmatpush.xpose.msk.msra.mxu3 %vm384_vm1, %v9188_v30  ;;  %v3744_v46 = vld [vmem:[#allocation2 + $0x1a0] sm:$0xff] }
 0x2d6   : > { %6675 = vmatpush.xpose.msk.msra.mxu0 %vm384_vm1, %v3143_v33  ;;  %6710 = vmatpush.xpose.msk.msra.mxu2 %vm384_vm1, %v9196_v47  ;;  %v6732_v33 = vld [vmem:[%s10555_s0 + $0xb8] sm:$0xff] }
 0x2d7   : > { %6692 = vmatpush.xpose.msk.msra.mxu1 %vm384_vm1, %v3159_v34  ;;  %6727 = vmatpush.xpose.msk.msra.mxu3 %vm384_vm1, %v9198_v37  ;;  %v6767_v34 = vld [vmem:[%s10555_s0 + $0x100] sm:$0xff] }
 0x2da   : > { %6676 = vmatpush.xpose.msk.msra.mxu0 %vm384_vm1, %v3142_v41  ;;  %6711 = vmatpush.xpose.msk.msra.mxu2 %vm384_vm1, %v9206_v55 }
 0x2db   : > { %6693 = vmatpush.xpose.msk.msra.mxu1 %vm384_vm1, %v3158_v42  ;;  %6728 = vmatpush.xpose.msk.msra.mxu3 %vm384_vm1, %v9208_v56 }
 0x2de   : > { %6677 = vmatpush.xpose.msk.msra.mxu0 %vm384_vm1, %v3141_v61  ;;  %6712 = vmatpush.xpose.msk.msra.mxu2 %vm384_vm1, %v9216_v3 }
 0x2df   : > { %6694 = vmatpush.xpose.msk.msra.mxu1 %vm384_vm1, %v3157_v62  ;;  %6729 = vmatpush.xpose.msk.msra.mxu3 %vm384_vm1, %v9218_v4 }
 0x2e2   : > { %6678 = vmatpush.xpose.msk.msra.mxu0 %vm384_vm1, %v3140_v27  ;;  %6713 = vmatpush.xpose.msk.msra.mxu2 %vm384_vm1, %v9226_v5  ;;  %v9364_v31 = vpop.f32.mrf.mxu0  ;;  %v3726_v27 = vld [vmem:[#allocation2 + $0xc8] sm:$0xff] }
 0x2e3   : > { %6695 = vmatpush.xpose.msk.msra.mxu1 %vm384_vm1, %v3156_v28  ;;  %6730 = vmatpush.xpose.msk.msra.mxu3 %vm384_vm1, %v9228_v6  ;;  %v3742_v28 = vld [vmem:[#allocation2 + $0x188] sm:$0xff] }
 0x2e5   : > { %6679 = vmatmul.msk.f32.vlgmr.msra.gmra.mxu0 %vm384_vm1, %v6662_v58  ;;  %6714 = vmatmul.msk.f32.vlgmr.msra.gmra.mxu2 %vm384_vm1, %v6697_v44  ;;  %v9366_v32 = vpop.f32.mrf.mxu1 }
 0x2e6   : > { %6733 = vmatpush.xpose.msk.msrb.mxu0 %vm384_vm1, %v9054_v39  ;;  %6768 = vmatpush.xpose.msk.msrb.mxu2 %vm384_vm1, %v6645_v19  ;;  %v6660_v39 = vld [vmem:[%s7469_s7 + $0x182] sm:$0xff] }
 0x2e7   : > { %6750 = vmatpush.xpose.msk.msrb.mxu1 %vm384_vm1, %v9056_v40  ;;  %6785 = vmatpush.xpose.msk.msrb.mxu3 %vm384_vm1, %v6661_v20  ;;  %v6643_v40 = vld [vmem:[%s7469_s7 + $0xb2] sm:$0xff] }
 0x2e8   : > { %6696 = vmatmul.msk.f32.vlgmr.msra.gmra.mxu1 %vm384_vm1, %v6662_v58  ;;  %6731 = vmatmul.msk.f32.vlgmr.msra.gmra.mxu3 %vm384_vm1, %v6697_v44  ;;  %v9394_v41 = vpop.f32.mrf.mxu2  ;;  %v9424_v58 = vld [vmem:[#allocation2 + $0x270] sm:$0xff] }
 0x2e9   : > { %v9426_v44 = vld [vmem:[#allocation2 + $0x330] sm:$0xff] }
 0x2ea   : > { %6734 = vmatpush.xpose.msk.msrb.mxu0 %vm384_vm1, %v9078_v53  ;;  %6769 = vmatpush.xpose.msk.msrb.mxu2 %vm384_vm1, %v6644_v17  ;;  %v6642_v53 = vld [vmem:[%s7469_s7 + $0xaa] sm:$0xff] }
 0x2eb   : > { %6751 = vmatpush.xpose.msk.msrb.mxu1 %vm384_vm1, %v9080_v54  ;;  %6786 = vmatpush.xpose.msk.msrb.mxu3 %vm384_vm1, %v6660_v39  ;;  %v6658_v54 = vld [vmem:[%s7469_s7 + $0x16a] sm:$0xff]  ;;  %v9396_v42 = vpop.f32.mrf.mxu3 }
 0x2ee   : > { %6735 = vmatpush.xpose.msk.msrb.mxu0 %vm384_vm1, %v9092_v1  ;;  %6770 = vmatpush.xpose.msk.msrb.mxu2 %vm384_vm1, %v6643_v40  ;;  %v6641_v1 = vld [vmem:[%s7469_s7 + $0x9a] sm:$0xff]  ;;  %v3724_v40 = vld [vmem:[#allocation2 + $0xb0] sm:$0xff] }
 0x2ef   : > { %6752 = vmatpush.xpose.msk.msrb.mxu1 %vm384_vm1, %v9094_v2  ;;  %6787 = vmatpush.xpose.msk.msrb.mxu3 %vm384_vm1, %v6659_v18  ;;  %v6657_v2 = vld [vmem:[%s7469_s7 + $0x15a] sm:$0xff]  ;;  %v3740_v18 = vld [vmem:[#allocation2 + $0x170] sm:$0xff] }
 0x2f2   : > { %6736 = vmatpush.xpose.msk.msrb.mxu0 %vm384_vm1, %v9102_v13  ;;  %6771 = vmatpush.xpose.msk.msrb.mxu2 %vm384_vm1, %v6642_v53  ;;  %v6640_v13 = vld [vmem:[%s7469_s7 + $0x92] sm:$0xff]  ;;  %v9438_v53 = vld [vmem:[#allocation2 + $0x260] sm:$0xff] }
 0x2f3   : > { %6753 = vmatpush.xpose.msk.msrb.mxu1 %vm384_vm1, %v9104_v14  ;;  %6788 = vmatpush.xpose.msk.msrb.mxu3 %vm384_vm1, %v6658_v54  ;;  %v6656_v14 = vld [vmem:[%s7469_s7 + $0x152] sm:$0xff]  ;;  %v9440_v54 = vld [vmem:[#allocation2 + $0x320] sm:$0xff] }
 0x2f6   : > { %6737 = vmatpush.xpose.msk.msrb.mxu0 %vm384_vm1, %v9116_v43  ;;  %6772 = vmatpush.xpose.msk.msrb.mxu2 %vm384_vm1, %v6641_v1  ;;  %v6639_v43 = vld [vmem:[%s7469_s7 + $0x82] sm:$0xff] }
 0x2f7   : > { %6754 = vmatpush.xpose.msk.msrb.mxu1 %vm384_vm1, %v9118_v57  ;;  %6789 = vmatpush.xpose.msk.msrb.mxu3 %vm384_vm1, %v6657_v2  ;;  %v6655_v57 = vld [vmem:[%s7469_s7 + $0x142] sm:$0xff] }
 0x2f8   : > { %v3723_v1 = vld [vmem:[#allocation2 + $0xa8] sm:$0xff] }
 0x2f9   : > { %v3739_v2 = vld [vmem:[#allocation2 + $0x168] sm:$0xff] }
 0x2fa   : > { %6738 = vmatpush.xpose.msk.msrb.mxu0 %vm384_vm1, %v9126_v7  ;;  %6773 = vmatpush.xpose.msk.msrb.mxu2 %vm384_vm1, %v6640_v13  ;;  %v6638_v7 = vld [vmem:[%s7469_s7 + $0x7a] sm:$0xff] }
 0x2fb   : > { %6755 = vmatpush.xpose.msk.msrb.mxu1 %vm384_vm1, %v9128_v8  ;;  %6790 = vmatpush.xpose.msk.msrb.mxu3 %vm384_vm1, %v6656_v14  ;;  %v6654_v8 = vld [vmem:[%s7469_s7 + $0x13a] sm:$0xff] }
 0x2fc   : > { %v9448_v13 = vld [vmem:[#allocation2 + $0x258] sm:$0xff] }
 0x2fd   : > { %v9450_v14 = vld [vmem:[#allocation2 + $0x318] sm:$0xff] }
 0x2fe   : > { %6739 = vmatpush.xpose.msk.msrb.mxu0 %vm384_vm1, %v9136_v59  ;;  %6774 = vmatpush.xpose.msk.msrb.mxu2 %vm384_vm1, %v6639_v43  ;;  %v6637_v59 = vld [vmem:[%s7469_s7 + $0x6a] sm:$0xff]  ;;  %v3722_v43 = vld [vmem:[#allocation2 + $0x98] sm:$0xff] }
 0x2ff   : > { %6756 = vmatpush.xpose.msk.msrb.mxu1 %vm384_vm1, %v9138_v60  ;;  %6791 = vmatpush.xpose.msk.msrb.mxu3 %vm384_vm1, %v6655_v57  ;;  %v6653_v60 = vld [vmem:[%s7469_s7 + $0x12a] sm:$0xff]  ;;  %v3738_v57 = vld [vmem:[#allocation2 + $0x158] sm:$0xff] }
 0x302   : > { %6740 = vmatpush.xpose.msk.msrb.mxu0 %vm384_vm1, %v9146_v38  ;;  %6775 = vmatpush.xpose.msk.msrb.mxu2 %vm384_vm1, %v6638_v7  ;;  %v6635_v38 = vld [vmem:[%s7469_s7 + $0x52] sm:$0xff]  ;;  %v9458_v7 = vld [vmem:[#allocation2 + $0x248] sm:$0xff] }
 0x303   : > { %6757 = vmatpush.xpose.msk.msrb.mxu1 %vm384_vm1, %v9148_v48  ;;  %6792 = vmatpush.xpose.msk.msrb.mxu3 %vm384_vm1, %v6654_v8  ;;  %v6651_v48 = vld [vmem:[%s7469_s7 + $0x112] sm:$0xff]  ;;  %v9460_v8 = vld [vmem:[#allocation2 + $0x308] sm:$0xff] }
 0x306   : > { %6741 = vmatpush.xpose.msk.msrb.mxu0 %vm384_vm1, %v9156_v51  ;;  %6776 = vmatpush.xpose.msk.msrb.mxu2 %vm384_vm1, %v6637_v59  ;;  %v6633_v51 = vld [vmem:[%s7469_s7 + $0x3a] sm:$0xff]  ;;  %v3721_v59 = vld [vmem:[#allocation2 + $0x90] sm:$0xff] }
 0x307   : > { %6758 = vmatpush.xpose.msk.msrb.mxu1 %vm384_vm1, %v9158_v52  ;;  %6793 = vmatpush.xpose.msk.msrb.mxu3 %vm384_vm1, %v6653_v60  ;;  %v6649_v52 = vld [vmem:[%s7469_s7 + $0xfa] sm:$0xff]  ;;  %v3737_v60 = vld [vmem:[#allocation2 + $0x150] sm:$0xff] }
 0x30a   : > { %6742 = vmatpush.xpose.msk.msrb.mxu0 %vm384_vm1, %v9166_v23  ;;  %6777 = vmatpush.xpose.msk.msrb.mxu2 %vm384_vm1, %v6636_v11  ;;  %v6631_v23 = vld [vmem:[%s7469_s7 + $0x22] sm:$0xff] }
 0x30b   : > { %6759 = vmatpush.xpose.msk.msrb.mxu1 %vm384_vm1, %v9168_v24  ;;  %6794 = vmatpush.xpose.msk.msrb.mxu3 %vm384_vm1, %v6652_v12  ;;  %v6647_v24 = vld [vmem:[%s7469_s7 + $0xe2] sm:$0xff] }
 0x30c   : > { %v9468_v11 = vld [vmem:[#allocation2 + $0x240] sm:$0xff] }
 0x30d   : > { %v9470_v12 = vld [vmem:[#allocation2 + $0x300] sm:$0xff] }
 0x30e   : > { %6743 = vmatpush.xpose.msk.msrb.mxu0 %vm384_vm1, %v9176_v15  ;;  %6778 = vmatpush.xpose.msk.msrb.mxu2 %vm384_vm1, %v6635_v38  ;;  %v6630_v15 = vld [vmem:[%s7469_s7 + $0x1a] sm:$0xff] }
 0x30f   : > { %6760 = vmatpush.xpose.msk.msrb.mxu1 %vm384_vm1, %v9178_v16  ;;  %6795 = vmatpush.xpose.msk.msrb.mxu3 %vm384_vm1, %v6651_v48  ;;  %v6646_v16 = vld [vmem:[%s7469_s7 + $0xda] sm:$0xff] }
 0x310   : > { %v3720_v38 = vld [vmem:[#allocation2 + $0x80] sm:$0xff] }
 0x311   : > { %v3736_v48 = vld [vmem:[#allocation2 + $0x140] sm:$0xff] }
 0x312   : > { %6744 = vmatpush.xpose.msk.msrb.mxu0 %vm384_vm1, %v9186_v29  ;;  %6779 = vmatpush.xpose.msk.msrb.mxu2 %vm384_vm1, %v6634_v63  ;;  %v9376_v29 = vld [vmem:[#allocation2 + $0x290] sm:$0xff] }
 0x313   : > { %6761 = vmatpush.xpose.msk.msrb.mxu1 %vm384_vm1, %v9188_v30  ;;  %6796 = vmatpush.xpose.msk.msrb.mxu3 %vm384_vm1, %v6650_v0  ;;  %v9378_v30 = vld [vmem:[#allocation2 + $0x350] sm:$0xff] }
 0x314   : > { %v9478_v63 = vld [vmem:[#allocation2 + $0x230] sm:$0xff] }
 0x315   : > { %v9480_v0 = vld [vmem:[#allocation2 + $0x2f0] sm:$0xff] }
 0x316   : > { %6745 = vmatpush.xpose.msk.msrb.mxu0 %vm384_vm1, %v9196_v47  ;;  %6780 = vmatpush.xpose.msk.msrb.mxu2 %vm384_vm1, %v6633_v51  ;;  %v3727_v47 = vld [vmem:[#allocation2 + $0xd8] sm:$0xff] }
 0x317   : > { %6762 = vmatpush.xpose.msk.msrb.mxu1 %vm384_vm1, %v9198_v37  ;;  %6797 = vmatpush.xpose.msk.msrb.mxu3 %vm384_vm1, %v6649_v52  ;;  %v3743_v37 = vld [vmem:[#allocation2 + $0x198] sm:$0xff] }
 0x318   : > { %v3719_v51 = vld [vmem:[#allocation2 + $0x78] sm:$0xff] }
 0x319   : > { %v3735_v52 = vld [vmem:[#allocation2 + $0x138] sm:$0xff] }
 0x31a   : > { %6746 = vmatpush.xpose.msk.msrb.mxu0 %vm384_vm1, %v9206_v55  ;;  %6781 = vmatpush.xpose.msk.msrb.mxu2 %vm384_vm1, %v6632_v9  ;;  %v9400_v55 = vld [vmem:[#allocation2 + $0x288] sm:$0xff] }
 0x31b   : > { %6763 = vmatpush.xpose.msk.msrb.mxu1 %vm384_vm1, %v9208_v56  ;;  %6798 = vmatpush.xpose.msk.msrb.mxu3 %vm384_vm1, %v6648_v10  ;;  %v9402_v56 = vld [vmem:[#allocation2 + $0x348] sm:$0xff] }
 0x31c   : > { %v9488_v9 = vld [vmem:[#allocation2 + $0x228] sm:$0xff] }
 0x31d   : > { %v9490_v10 = vld [vmem:[#allocation2 + $0x2e8] sm:$0xff] }
 0x31e   : > { %6747 = vmatpush.xpose.msk.msrb.mxu0 %vm384_vm1, %v9216_v3  ;;  %6782 = vmatpush.xpose.msk.msrb.mxu2 %vm384_vm1, %v6631_v23  ;;  %v3718_v23 = vld [vmem:[#allocation2 + $0x68] sm:$0xff] }
 0x31f   : > { %6764 = vmatpush.xpose.msk.msrb.mxu1 %vm384_vm1, %v9218_v4  ;;  %6799 = vmatpush.xpose.msk.msrb.mxu3 %vm384_vm1, %v6647_v24  ;;  %v3734_v24 = vld [vmem:[#allocation2 + $0x128] sm:$0xff] }
 0x322   : > { %6748 = vmatpush.xpose.msk.msrb.mxu0 %vm384_vm1, %v9226_v5  ;;  %6783 = vmatpush.xpose.msk.msrb.mxu2 %vm384_vm1, %v6630_v15  ;;  %v2972_v61 = vpop.f32.mrf.mxu0  ;;  %v9414_v5 = vld [vmem:[#allocation2 + $0x278] sm:$0xff] }
 0x323   : > { %6765 = vmatpush.xpose.msk.msrb.mxu1 %vm384_vm1, %v9228_v6  ;;  %6800 = vmatpush.xpose.msk.msrb.mxu3 %vm384_vm1, %v6646_v16  ;;  %v2995_v3 = vadd.f32 %v2972_v61, %v9106_v35  ;;  %v9416_v6 = vld [vmem:[#allocation2 + $0x338] sm:$0xff]  ;;  %v3725_v35 = vld [vmem:[#allocation2 + $0xc0] sm:$0xff] }
 0x324   : > { %v9498_v15 = vld [vmem:[#allocation2 + $0x218] sm:$0xff]  ;;  %v9518_v61 = vld [vmem:[#allocation2 + $0x200] sm:$0xff] }
 0x325   : > { %6749 = vmatmul.msk.f32.vlgmr.msrb.gmra.mxu0 %vm384_vm1, %v6732_v33  ;;  %6784 = vmatmul.msk.f32.vlgmr.msrb.gmra.mxu2 %vm384_vm1, %v6767_v34  ;;  %v2992_v62 = vpop.f32.mrf.mxu1  ;;  %v9500_v16 = vld [vmem:[#allocation2 + $0x2d8] sm:$0xff] }
 0x326   : > { %6835 = vmatpush.xpose.msk.msra.mxu0 %vm384_vm1, %v3728_v45  ;;  %6870 = vmatpush.xpose.msk.msra.mxu2 %vm384_vm1, %v9376_v29  ;;  %v2996_v4 = vadd.f32 %v2992_v62, %v9108_v36  ;;  %v3741_v36 = vld [vmem:[#allocation2 + $0x180] sm:$0xff] }
 0x327   : > { %6852 = vmatpush.xpose.msk.msra.mxu1 %vm384_vm1, %v3744_v46  ;;  %6887 = vmatpush.xpose.msk.msra.mxu3 %vm384_vm1, %v9378_v30  ;;  %v3717_v45 = vld [vmem:[#allocation2 + $0x60] sm:$0xff] }
 0x328   : > { %6766 = vmatmul.msk.f32.vlgmr.msrb.gmra.mxu1 %vm384_vm1, %v6732_v33  ;;  %6801 = vmatmul.msk.f32.vlgmr.msrb.gmra.mxu3 %vm384_vm1, %v6767_v34  ;;  %v3115_v19 = vpop.f32.mrf.mxu2  ;;  %v3733_v46 = vld [vmem:[#allocation2 + $0x120] sm:$0xff]  ;;  %v9508_v33 = vld [vmem:[#allocation2 + $0x210] sm:$0xff] }
 0x329   : > { %v9428_v17 = vadd.f32 %v3115_v19, %v2995_v3  ;;  %v9510_v34 = vld [vmem:[#allocation2 + $0x2d0] sm:$0xff]  ;;  %v9520_v62 = vld [vmem:[#allocation2 + $0x2c0] sm:$0xff]  ;;  %v3715_v3 = vld [vmem:[#allocation2 + $0x48] sm:$0xff] }
 0x32a   : > { %6836 = vmatpush.xpose.msk.msra.mxu0 %vm384_vm1, %v3727_v47  ;;  %6871 = vmatpush.xpose.msk.msra.mxu2 %vm384_vm1, %v9400_v55  ;;  %v3716_v47 = vld [vmem:[#allocation2 + $0x50] sm:$0xff]  ;;  %v9538_v19 = vld [vmem:[#allocation2 + $0x1e8] sm:$0xff] }
 0x32b   : > { %6853 = vmatpush.xpose.msk.msra.mxu1 %vm384_vm1, %v3743_v37  ;;  %6888 = vmatpush.xpose.msk.msra.mxu3 %vm384_vm1, %v9402_v56  ;;  %v3135_v20 = vpop.f32.mrf.mxu3  ;;  %v3732_v37 = vld [vmem:[#allocation2 + $0x110] sm:$0xff] }
 0x32c   : > { %v9430_v39 = vadd.f32 %v3135_v20, %v2996_v4  ;;  %v3731_v4 = vld [vmem:[#allocation2 + $0x108] sm:$0xff] }
 0x32d   : > { %v9540_v20 = vld [vmem:[#allocation2 + $0x2a8] sm:$0xff] }
 0x32e   : > { %6837 = vmatpush.xpose.msk.msra.mxu0 %vm384_vm1, %v3726_v27  ;;  %6872 = vmatpush.xpose.msk.msra.mxu2 %vm384_vm1, %v9414_v5  ;;  %v9528_v27 = vld [vmem:[#allocation2 + $0x1f8] sm:$0xff] }
 0x32f   : > { %6854 = vmatpush.xpose.msk.msra.mxu1 %vm384_vm1, %v3742_v28  ;;  %6889 = vmatpush.xpose.msk.msra.mxu3 %vm384_vm1, %v9416_v6  ;;  %v9530_v28 = vld [vmem:[#allocation2 + $0x2b8] sm:$0xff] }
 0x332   : > { %6838 = vmatpush.xpose.msk.msra.mxu0 %vm384_vm1, %v3725_v35  ;;  %6873 = vmatpush.xpose.msk.msra.mxu2 %vm384_vm1, %v9424_v58  ;;  %v3714_v35 = vld [vmem:[#allocation2 + $0x38] sm:$0xff] }
 0x333   : > { %6855 = vmatpush.xpose.msk.msra.mxu1 %vm384_vm1, %v3741_v36  ;;  %6890 = vmatpush.xpose.msk.msra.mxu3 %vm384_vm1, %v9426_v44  ;;  %v3730_v36 = vld [vmem:[#allocation2 + $0xf8] sm:$0xff] }
 0x336   : > { %6839 = vmatpush.xpose.msk.msra.mxu0 %vm384_vm1, %v3724_v40  ;;  %6874 = vmatpush.xpose.msk.msra.mxu2 %vm384_vm1, %v9438_v53  ;;  %v3713_v40 = vld [vmem:[#allocation2 + $0x30] sm:$0xff] }
 0x337   : > { %6856 = vmatpush.xpose.msk.msra.mxu1 %vm384_vm1, %v3740_v18  ;;  %6891 = vmatpush.xpose.msk.msra.mxu3 %vm384_vm1, %v9440_v54  ;;  %v3729_v18 = vld [vmem:[#allocation2 + $0xf0] sm:$0xff] }
 0x33a   : > { %6840 = vmatpush.xpose.msk.msra.mxu0 %vm384_vm1, %v3723_v1  ;;  %6875 = vmatpush.xpose.msk.msra.mxu2 %vm384_vm1, %v9448_v13  ;;  %v9548_v1 = vld [vmem:[#allocation2 + $0x1e0] sm:$0xff] }
 0x33b   : > { %6857 = vmatpush.xpose.msk.msra.mxu1 %vm384_vm1, %v3739_v2  ;;  %6892 = vmatpush.xpose.msk.msra.mxu3 %vm384_vm1, %v9450_v14  ;;  %v9550_v2 = vld [vmem:[#allocation2 + $0x2a0] sm:$0xff] }
 0x33e   : > { %6841 = vmatpush.xpose.msk.msra.mxu0 %vm384_vm1, %v3722_v43  ;;  %6876 = vmatpush.xpose.msk.msra.mxu2 %vm384_vm1, %v9458_v7  ;;  %v6817_v43 = vld [vmem:[%s7469_s7 + $0xe0] sm:$0xff] }
 0x33f   : > { %6858 = vmatpush.xpose.msk.msra.mxu1 %vm384_vm1, %v3738_v57  ;;  %6893 = vmatpush.xpose.msk.msra.mxu3 %vm384_vm1, %v9460_v8  ;;  %v6833_v57 = vld [vmem:[%s7469_s7 + $0x1a0] sm:$0xff] }
 0x342   : > { %6842 = vmatpush.xpose.msk.msra.mxu0 %vm384_vm1, %v3721_v59  ;;  %6877 = vmatpush.xpose.msk.msra.mxu2 %vm384_vm1, %v9468_v11  ;;  %v6834_v59 = vld [vmem:[%s10555_s0 + $0x30] sm:$0xff] }
 0x343   : > { %6859 = vmatpush.xpose.msk.msra.mxu1 %vm384_vm1, %v3737_v60  ;;  %6894 = vmatpush.xpose.msk.msra.mxu3 %vm384_vm1, %v9470_v12  ;;  %v6869_v60 = vld [vmem:[%s10555_s0 + $0x78] sm:$0xff] }
 0x346   : > { %6843 = vmatpush.xpose.msk.msra.mxu0 %vm384_vm1, %v3720_v38  ;;  %6878 = vmatpush.xpose.msk.msra.mxu2 %vm384_vm1, %v9478_v63  ;;  %v6816_v38 = vld [vmem:[%s7469_s7 + $0xd8] sm:$0xff] }
 0x347   : > { %6860 = vmatpush.xpose.msk.msra.mxu1 %vm384_vm1, %v3736_v48  ;;  %6895 = vmatpush.xpose.msk.msra.mxu3 %vm384_vm1, %v9480_v0  ;;  %v6831_v48 = vld [vmem:[%s7469_s7 + $0x188] sm:$0xff] }
 0x34a   : > { %6844 = vmatpush.xpose.msk.msra.mxu0 %vm384_vm1, %v3719_v51  ;;  %6879 = vmatpush.xpose.msk.msra.mxu2 %vm384_vm1, %v9488_v9  ;;  %v6806_v51 = vld [vmem:[%s7469_s7 + $0x60] sm:$0xff] }
 0x34b   : > { %6861 = vmatpush.xpose.msk.msra.mxu1 %vm384_vm1, %v3735_v52  ;;  %6896 = vmatpush.xpose.msk.msra.mxu3 %vm384_vm1, %v9490_v10  ;;  %v6822_v52 = vld [vmem:[%s7469_s7 + $0x120] sm:$0xff] }
 0x34e   : > { %6845 = vmatpush.xpose.msk.msra.mxu0 %vm384_vm1, %v3718_v23  ;;  %6880 = vmatpush.xpose.msk.msra.mxu2 %vm384_vm1, %v9498_v15  ;;  %v6804_v23 = vld [vmem:[%s7469_s7 + $0x48] sm:$0xff] }
 0x34f   : > { %6862 = vmatpush.xpose.msk.msra.mxu1 %vm384_vm1, %v3734_v24  ;;  %6897 = vmatpush.xpose.msk.msra.mxu3 %vm384_vm1, %v9500_v16  ;;  %v6820_v24 = vld [vmem:[%s7469_s7 + $0x108] sm:$0xff] }
 0x352   : > { %6846 = vmatpush.xpose.msk.msra.mxu0 %vm384_vm1, %v3717_v45  ;;  %6881 = vmatpush.xpose.msk.msra.mxu2 %vm384_vm1, %v9508_v33 }
 0x353   : > { %6863 = vmatpush.xpose.msk.msra.mxu1 %vm384_vm1, %v3733_v46  ;;  %6898 = vmatpush.xpose.msk.msra.mxu3 %vm384_vm1, %v9510_v34 }
 0x356   : > { %6847 = vmatpush.xpose.msk.msra.mxu0 %vm384_vm1, %v3716_v47  ;;  %6882 = vmatpush.xpose.msk.msra.mxu2 %vm384_vm1, %v9518_v61  ;;  %v4302_v47 = vld [vmem:[#allocation2 + $0xe1] sm:$0xff] }
 0x357   : > { %6864 = vmatpush.xpose.msk.msra.mxu1 %vm384_vm1, %v3732_v37  ;;  %6899 = vmatpush.xpose.msk.msra.mxu3 %vm384_vm1, %v9520_v62  ;;  %v4318_v37 = vld [vmem:[#allocation2 + $0x1a1] sm:$0xff] }
 0x35a   : > { %6848 = vmatpush.xpose.msk.msra.mxu0 %vm384_vm1, %v3715_v3  ;;  %6883 = vmatpush.xpose.msk.msra.mxu2 %vm384_vm1, %v9528_v27  ;;  %v6904_v3 = vld [vmem:[%s10555_s0 + $0xc0] sm:$0xff] }
 0x35b   : > { %6865 = vmatpush.xpose.msk.msra.mxu1 %vm384_vm1, %v3731_v4  ;;  %6900 = vmatpush.xpose.msk.msra.mxu3 %vm384_vm1, %v9530_v28  ;;  %v6939_v4 = vld [vmem:[%s10555_s0 + $0x108] sm:$0xff] }
 0x35e   : > { %6849 = vmatpush.xpose.msk.msra.mxu0 %vm384_vm1, %v3714_v35  ;;  %6884 = vmatpush.xpose.msk.msra.mxu2 %vm384_vm1, %v9538_v19 }
 0x35f   : > { %6866 = vmatpush.xpose.msk.msra.mxu1 %vm384_vm1, %v3730_v36  ;;  %6901 = vmatpush.xpose.msk.msra.mxu3 %vm384_vm1, %v9540_v20 }
 0x362   : > { %6850 = vmatpush.xpose.msk.msra.mxu0 %vm384_vm1, %v3713_v40  ;;  %6885 = vmatpush.xpose.msk.msra.mxu2 %vm384_vm1, %v9548_v1  ;;  %v9686_v45 = vpop.f32.mrf.mxu0 }
 0x363   : > { %6867 = vmatpush.xpose.msk.msra.mxu1 %vm384_vm1, %v3729_v18  ;;  %6902 = vmatpush.xpose.msk.msra.mxu3 %vm384_vm1, %v9550_v2 }
 0x365   : > { %6851 = vmatmul.msk.f32.vlgmr.msra.gmra.mxu0 %vm384_vm1, %v6834_v59  ;;  %6886 = vmatmul.msk.f32.vlgmr.msra.gmra.mxu2 %vm384_vm1, %v6869_v60  ;;  %v9688_v46 = vpop.f32.mrf.mxu1 }
 0x366   : > { %6905 = vmatpush.xpose.msk.msrb.mxu0 %vm384_vm1, %v9376_v29  ;;  %6940 = vmatpush.xpose.msk.msrb.mxu2 %vm384_vm1, %v6817_v43  ;;  %v6832_v29 = vld [vmem:[%s7469_s7 + $0x198] sm:$0xff]  ;;  %v4300_v43 = vld [vmem:[#allocation2 + $0xc9] sm:$0xff] }
 0x367   : > { %6922 = vmatpush.xpose.msk.msrb.mxu1 %vm384_vm1, %v9378_v30  ;;  %6957 = vmatpush.xpose.msk.msrb.mxu3 %vm384_vm1, %v6833_v57  ;;  %v6815_v30 = vld [vmem:[%s7469_s7 + $0xc8] sm:$0xff] }
 0x368   : > { %6868 = vmatmul.msk.f32.vlgmr.msra.gmra.mxu1 %vm384_vm1, %v6834_v59  ;;  %6903 = vmatmul.msk.f32.vlgmr.msra.gmra.mxu3 %vm384_vm1, %v6869_v60  ;;  %v9716_v35 = vpop.f32.mrf.mxu2  ;;  %v4316_v57 = vld [vmem:[#allocation2 + $0x189] sm:$0xff]  ;;  %v9736_v59 = vld [vmem:[#allocation2 + $0x279] sm:$0xff] }
 0x369   : > { %v9738_v60 = vld [vmem:[#allocation2 + $0x339] sm:$0xff] }
 0x36a   : > { %6906 = vmatpush.xpose.msk.msrb.mxu0 %vm384_vm1, %v9400_v55  ;;  %6941 = vmatpush.xpose.msk.msrb.mxu2 %vm384_vm1, %v6816_v38  ;;  %v6814_v55 = vld [vmem:[%s7469_s7 + $0xc0] sm:$0xff] }
 0x36b   : > { %6923 = vmatpush.xpose.msk.msrb.mxu1 %vm384_vm1, %v9402_v56  ;;  %6958 = vmatpush.xpose.msk.msrb.mxu3 %vm384_vm1, %v6832_v29  ;;  %v6830_v56 = vld [vmem:[%s7469_s7 + $0x180] sm:$0xff]  ;;  %v9718_v36 = vpop.f32.mrf.mxu3 }
 0x36e   : > { %6907 = vmatpush.xpose.msk.msrb.mxu0 %vm384_vm1, %v9414_v5  ;;  %6942 = vmatpush.xpose.msk.msrb.mxu2 %vm384_vm1, %v6815_v30  ;;  %v6813_v5 = vld [vmem:[%s7469_s7 + $0xb0] sm:$0xff] }
 0x36f   : > { %6924 = vmatpush.xpose.msk.msrb.mxu1 %vm384_vm1, %v9416_v6  ;;  %6959 = vmatpush.xpose.msk.msrb.mxu3 %vm384_vm1, %v6831_v48  ;;  %v6829_v6 = vld [vmem:[%s7469_s7 + $0x170] sm:$0xff] }
 0x370   : > { %v9746_v30 = vld [vmem:[#allocation2 + $0x271] sm:$0xff] }
 0x371   : > { %v9748_v48 = vld [vmem:[#allocation2 + $0x331] sm:$0xff] }
 0x372   : > { %6908 = vmatpush.xpose.msk.msrb.mxu0 %vm384_vm1, %v9424_v58  ;;  %6943 = vmatpush.xpose.msk.msrb.mxu2 %vm384_vm1, %v6814_v55  ;;  %v6812_v58 = vld [vmem:[%s7469_s7 + $0xa8] sm:$0xff] }
 0x373   : > { %6925 = vmatpush.xpose.msk.msrb.mxu1 %vm384_vm1, %v9426_v44  ;;  %6960 = vmatpush.xpose.msk.msrb.mxu3 %vm384_vm1, %v6830_v56  ;;  %v6828_v44 = vld [vmem:[%s7469_s7 + $0x168] sm:$0xff] }
 0x376   : > { %6909 = vmatpush.xpose.msk.msrb.mxu0 %vm384_vm1, %v9438_v53  ;;  %6944 = vmatpush.xpose.msk.msrb.mxu2 %vm384_vm1, %v6813_v5  ;;  %v6811_v53 = vld [vmem:[%s7469_s7 + $0x98] sm:$0xff] }
 0x377   : > { %6926 = vmatpush.xpose.msk.msrb.mxu1 %vm384_vm1, %v9440_v54  ;;  %6961 = vmatpush.xpose.msk.msrb.mxu3 %vm384_vm1, %v6829_v6  ;;  %v6827_v54 = vld [vmem:[%s7469_s7 + $0x158] sm:$0xff] }
 0x378   : > { %v4298_v5 = vld [vmem:[#allocation2 + $0xb1] sm:$0xff] }
 0x379   : > { %v4314_v6 = vld [vmem:[#allocation2 + $0x171] sm:$0xff] }
 0x37a   : > { %6910 = vmatpush.xpose.msk.msrb.mxu0 %vm384_vm1, %v9448_v13  ;;  %6945 = vmatpush.xpose.msk.msrb.mxu2 %vm384_vm1, %v6812_v58  ;;  %v6810_v13 = vld [vmem:[%s7469_s7 + $0x90] sm:$0xff]  ;;  %v9760_v58 = vld [vmem:[#allocation2 + $0x261] sm:$0xff] }
 0x37b   : > { %6927 = vmatpush.xpose.msk.msrb.mxu1 %vm384_vm1, %v9450_v14  ;;  %6962 = vmatpush.xpose.msk.msrb.mxu3 %vm384_vm1, %v6828_v44  ;;  %v6826_v14 = vld [vmem:[%s7469_s7 + $0x150] sm:$0xff]  ;;  %v9762_v44 = vld [vmem:[#allocation2 + $0x321] sm:$0xff] }
 0x37e   : > { %6911 = vmatpush.xpose.msk.msrb.mxu0 %vm384_vm1, %v9458_v7  ;;  %6946 = vmatpush.xpose.msk.msrb.mxu2 %vm384_vm1, %v6811_v53  ;;  %v6809_v7 = vld [vmem:[%s7469_s7 + $0x80] sm:$0xff]  ;;  %v4297_v53 = vld [vmem:[#allocation2 + $0xa9] sm:$0xff] }
 0x37f   : > { %6928 = vmatpush.xpose.msk.msrb.mxu1 %vm384_vm1, %v9460_v8  ;;  %6963 = vmatpush.xpose.msk.msrb.mxu3 %vm384_vm1, %v6827_v54  ;;  %v6825_v8 = vld [vmem:[%s7469_s7 + $0x140] sm:$0xff]  ;;  %v4313_v54 = vld [vmem:[#allocation2 + $0x169] sm:$0xff] }
 0x382   : > { %6912 = vmatpush.xpose.msk.msrb.mxu0 %vm384_vm1, %v9468_v11  ;;  %6947 = vmatpush.xpose.msk.msrb.mxu2 %vm384_vm1, %v6810_v13  ;;  %v6808_v11 = vld [vmem:[%s7469_s7 + $0x78] sm:$0xff] }
 0x383   : > { %6929 = vmatpush.xpose.msk.msrb.mxu1 %vm384_vm1, %v9470_v12  ;;  %6964 = vmatpush.xpose.msk.msrb.mxu3 %vm384_vm1, %v6826_v14  ;;  %v6824_v12 = vld [vmem:[%s7469_s7 + $0x138] sm:$0xff] }
 0x384   : > { %v9770_v13 = vld [vmem:[#allocation2 + $0x259] sm:$0xff] }
 0x385   : > { %v9772_v14 = vld [vmem:[#allocation2 + $0x319] sm:$0xff] }
 0x386   : > { %6913 = vmatpush.xpose.msk.msrb.mxu0 %vm384_vm1, %v9478_v63  ;;  %6948 = vmatpush.xpose.msk.msrb.mxu2 %vm384_vm1, %v6809_v7  ;;  %v6807_v63 = vld [vmem:[%s7469_s7 + $0x68] sm:$0xff]  ;;  %v4296_v7 = vld [vmem:[#allocation2 + $0x99] sm:$0xff] }
 0x387   : > { %6930 = vmatpush.xpose.msk.msrb.mxu1 %vm384_vm1, %v9480_v0  ;;  %6965 = vmatpush.xpose.msk.msrb.mxu3 %vm384_vm1, %v6825_v8  ;;  %v6823_v0 = vld [vmem:[%s7469_s7 + $0x128] sm:$0xff]  ;;  %v4312_v8 = vld [vmem:[#allocation2 + $0x159] sm:$0xff] }
 0x38a   : > { %6914 = vmatpush.xpose.msk.msrb.mxu0 %vm384_vm1, %v9488_v9  ;;  %6949 = vmatpush.xpose.msk.msrb.mxu2 %vm384_vm1, %v6808_v11  ;;  %v6805_v9 = vld [vmem:[%s7469_s7 + $0x50] sm:$0xff] }
 0x38b   : > { %6931 = vmatpush.xpose.msk.msrb.mxu1 %vm384_vm1, %v9490_v10  ;;  %6966 = vmatpush.xpose.msk.msrb.mxu3 %vm384_vm1, %v6824_v12  ;;  %v6821_v10 = vld [vmem:[%s7469_s7 + $0x110] sm:$0xff] }
 0x38c   : > { %v9780_v11 = vld [vmem:[#allocation2 + $0x249] sm:$0xff] }
 0x38d   : > { %v9782_v12 = vld [vmem:[#allocation2 + $0x309] sm:$0xff] }
 0x38e   : > { %6915 = vmatpush.xpose.msk.msrb.mxu0 %vm384_vm1, %v9498_v15  ;;  %6950 = vmatpush.xpose.msk.msrb.mxu2 %vm384_vm1, %v6807_v63  ;;  %v6803_v15 = vld [vmem:[%s7469_s7 + $0x38] sm:$0xff] }
 0x38f   : > { %6932 = vmatpush.xpose.msk.msrb.mxu1 %vm384_vm1, %v9500_v16  ;;  %6967 = vmatpush.xpose.msk.msrb.mxu3 %vm384_vm1, %v6823_v0  ;;  %v6819_v16 = vld [vmem:[%s7469_s7 + $0xf8] sm:$0xff] }
 0x390   : > { %v4295_v63 = vld [vmem:[#allocation2 + $0x91] sm:$0xff] }
 0x391   : > { %v4311_v0 = vld [vmem:[#allocation2 + $0x151] sm:$0xff] }
 0x392   : > { %6916 = vmatpush.xpose.msk.msrb.mxu0 %vm384_vm1, %v9508_v33  ;;  %6951 = vmatpush.xpose.msk.msrb.mxu2 %vm384_vm1, %v6806_v51  ;;  %v6802_v33 = vld [vmem:[%s7469_s7 + $0x30] sm:$0xff]  ;;  %v9790_v51 = vld [vmem:[#allocation2 + $0x241] sm:$0xff] }
 0x393   : > { %6933 = vmatpush.xpose.msk.msrb.mxu1 %vm384_vm1, %v9510_v34  ;;  %6968 = vmatpush.xpose.msk.msrb.mxu3 %vm384_vm1, %v6822_v52  ;;  %v6818_v34 = vld [vmem:[%s7469_s7 + $0xf0] sm:$0xff]  ;;  %v9792_v52 = vld [vmem:[#allocation2 + $0x301] sm:$0xff] }
 0x396   : > { %6917 = vmatpush.xpose.msk.msrb.mxu0 %vm384_vm1, %v9518_v61  ;;  %6952 = vmatpush.xpose.msk.msrb.mxu2 %vm384_vm1, %v6805_v9  ;;  %v9698_v61 = vld [vmem:[#allocation2 + $0x291] sm:$0xff]  ;;  %v4294_v9 = vld [vmem:[#allocation2 + $0x81] sm:$0xff] }
 0x397   : > { %6934 = vmatpush.xpose.msk.msrb.mxu1 %vm384_vm1, %v9520_v62  ;;  %6969 = vmatpush.xpose.msk.msrb.mxu3 %vm384_vm1, %v6821_v10  ;;  %v9700_v62 = vld [vmem:[#allocation2 + $0x351] sm:$0xff]  ;;  %v4310_v10 = vld [vmem:[#allocation2 + $0x141] sm:$0xff] }
 0x39a   : > { %6918 = vmatpush.xpose.msk.msrb.mxu0 %vm384_vm1, %v9528_v27  ;;  %6953 = vmatpush.xpose.msk.msrb.mxu2 %vm384_vm1, %v6804_v23  ;;  %v4301_v27 = vld [vmem:[#allocation2 + $0xd9] sm:$0xff]  ;;  %v9800_v23 = vld [vmem:[#allocation2 + $0x231] sm:$0xff] }
 0x39b   : > { %6935 = vmatpush.xpose.msk.msrb.mxu1 %vm384_vm1, %v9530_v28  ;;  %6970 = vmatpush.xpose.msk.msrb.mxu3 %vm384_vm1, %v6820_v24  ;;  %v4317_v28 = vld [vmem:[#allocation2 + $0x199] sm:$0xff]  ;;  %v9802_v24 = vld [vmem:[#allocation2 + $0x2f1] sm:$0xff] }
 0x39e   : > { %6919 = vmatpush.xpose.msk.msrb.mxu0 %vm384_vm1, %v9538_v19  ;;  %6954 = vmatpush.xpose.msk.msrb.mxu2 %vm384_vm1, %v6803_v15  ;;  %v9722_v19 = vld [vmem:[#allocation2 + $0x289] sm:$0xff]  ;;  %v4293_v15 = vld [vmem:[#allocation2 + $0x79] sm:$0xff] }
 0x39f   : > { %6936 = vmatpush.xpose.msk.msrb.mxu1 %vm384_vm1, %v9540_v20  ;;  %6971 = vmatpush.xpose.msk.msrb.mxu3 %vm384_vm1, %v6819_v16  ;;  %v9724_v20 = vld [vmem:[#allocation2 + $0x349] sm:$0xff]  ;;  %v4309_v16 = vld [vmem:[#allocation2 + $0x139] sm:$0xff] }
 0x3a2   : > { %6920 = vmatpush.xpose.msk.msrb.mxu0 %vm384_vm1, %v9548_v1  ;;  %6955 = vmatpush.xpose.msk.msrb.mxu2 %vm384_vm1, %v6802_v33  ;;  %v3544_v40 = vpop.f32.mrf.mxu0  ;;  %v9810_v33 = vld [vmem:[#allocation2 + $0x229] sm:$0xff] }
 0x3a3   : > { %6937 = vmatpush.xpose.msk.msrb.mxu1 %vm384_vm1, %v9550_v2  ;;  %6972 = vmatpush.xpose.msk.msrb.mxu3 %vm384_vm1, %v6818_v34  ;;  %v3567_v1 = vadd.f32 %v3544_v40, %v9428_v17  ;;  %v4299_v17 = vld [vmem:[#allocation2 + $0xc1] sm:$0xff]  ;;  %v9812_v34 = vld [vmem:[#allocation2 + $0x2e9] sm:$0xff]  ;;  %v9830_v40 = vld [vmem:[#allocation2 + $0x211] sm:$0xff] }
 0x3a5   : > { %6921 = vmatmul.msk.f32.vlgmr.msrb.gmra.mxu0 %vm384_vm1, %v6904_v3  ;;  %6956 = vmatmul.msk.f32.vlgmr.msrb.gmra.mxu2 %vm384_vm1, %v6939_v4  ;;  %v3564_v18 = vpop.f32.mrf.mxu1 }
 0x3a6   : > { %7007 = vmatpush.xpose.msk.msra.mxu0 %vm384_vm1, %v4302_v47  ;;  %7042 = vmatpush.xpose.msk.msra.mxu2 %vm384_vm1, %v9698_v61  ;;  %v3568_v2 = vadd.f32 %v3564_v18, %v9430_v39  ;;  %v4315_v39 = vld [vmem:[#allocation2 + $0x181] sm:$0xff]  ;;  %v4292_v47 = vld [vmem:[#allocation2 + $0x69] sm:$0xff]  ;;  %v9832_v18 = vld [vmem:[#allocation2 + $0x2d1] sm:$0xff] }
 0x3a7   : > { %7024 = vmatpush.xpose.msk.msra.mxu1 %vm384_vm1, %v4318_v37  ;;  %7059 = vmatpush.xpose.msk.msra.mxu3 %vm384_vm1, %v9700_v62  ;;  %v4308_v37 = vld [vmem:[#allocation2 + $0x129] sm:$0xff] }
 0x3a8   : > { %6938 = vmatmul.msk.f32.vlgmr.msrb.gmra.mxu1 %vm384_vm1, %v6904_v3  ;;  %6973 = vmatmul.msk.f32.vlgmr.msrb.gmra.mxu3 %vm384_vm1, %v6939_v4  ;;  %v3687_v38 = vpop.f32.mrf.mxu2  ;;  %v9820_v3 = vld [vmem:[#allocation2 + $0x219] sm:$0xff] }
 0x3a9   : > { %v9750_v55 = vadd.f32 %v3687_v38, %v3567_v1  ;;  %v9822_v4 = vld [vmem:[#allocation2 + $0x2d9] sm:$0xff]  ;;  %v4290_v1 = vld [vmem:[#allocation2 + $0x51] sm:$0xff] }
 0x3aa   : > { %7008 = vmatpush.xpose.msk.msra.mxu0 %vm384_vm1, %v4301_v27  ;;  %7043 = vmatpush.xpose.msk.msra.mxu2 %vm384_vm1, %v9722_v19  ;;  %v4291_v27 = vld [vmem:[#allocation2 + $0x61] sm:$0xff]  ;;  %v9850_v38 = vld [vmem:[#allocation2 + $0x1f9] sm:$0xff] }
 0x3ab   : > { %7025 = vmatpush.xpose.msk.msra.mxu1 %vm384_vm1, %v4317_v28  ;;  %7060 = vmatpush.xpose.msk.msra.mxu3 %vm384_vm1, %v9724_v20  ;;  %v3707_v29 = vpop.f32.mrf.mxu3  ;;  %v4307_v28 = vld [vmem:[#allocation2 + $0x121] sm:$0xff] }
 0x3ac   : > { %v9752_v56 = vadd.f32 %v3707_v29, %v3568_v2  ;;  %v4306_v2 = vld [vmem:[#allocation2 + $0x111] sm:$0xff]  ;;  %v9852_v29 = vld [vmem:[#allocation2 + $0x2b9] sm:$0xff] }
 0x3ae   : > { %7009 = vmatpush.xpose.msk.msra.mxu0 %vm384_vm1, %v4300_v43  ;;  %7044 = vmatpush.xpose.msk.msra.mxu2 %vm384_vm1, %v9736_v59  ;;  %v9840_v43 = vld [vmem:[#allocation2 + $0x201] sm:$0xff] }
 0x3af   : > { %7026 = vmatpush.xpose.msk.msra.mxu1 %vm384_vm1, %v4316_v57  ;;  %7061 = vmatpush.xpose.msk.msra.mxu3 %vm384_vm1, %v9738_v60  ;;  %v9842_v57 = vld [vmem:[#allocation2 + $0x2c1] sm:$0xff] }
 0x3b2   : > { %7010 = vmatpush.xpose.msk.msra.mxu0 %vm384_vm1, %v4299_v17  ;;  %7045 = vmatpush.xpose.msk.msra.mxu2 %vm384_vm1, %v9746_v30  ;;  %v4289_v17 = vld [vmem:[#allocation2 + $0x49] sm:$0xff] }
 0x3b3   : > { %7027 = vmatpush.xpose.msk.msra.mxu1 %vm384_vm1, %v4315_v39  ;;  %7062 = vmatpush.xpose.msk.msra.mxu3 %vm384_vm1, %v9748_v48  ;;  %v4305_v39 = vld [vmem:[#allocation2 + $0x109] sm:$0xff] }
 0x3b6   : > { %7011 = vmatpush.xpose.msk.msra.mxu0 %vm384_vm1, %v4298_v5  ;;  %7046 = vmatpush.xpose.msk.msra.mxu2 %vm384_vm1, %v9760_v58  ;;  %v4288_v5 = vld [vmem:[#allocation2 + $0x39] sm:$0xff] }
 0x3b7   : > { %7028 = vmatpush.xpose.msk.msra.mxu1 %vm384_vm1, %v4314_v6  ;;  %7063 = vmatpush.xpose.msk.msra.mxu3 %vm384_vm1, %v9762_v44  ;;  %v4304_v6 = vld [vmem:[#allocation2 + $0xf9] sm:$0xff] }
 0x3ba   : > { %7012 = vmatpush.xpose.msk.msra.mxu0 %vm384_vm1, %v4297_v53  ;;  %7047 = vmatpush.xpose.msk.msra.mxu2 %vm384_vm1, %v9770_v13  ;;  %v9860_v53 = vld [vmem:[#allocation2 + $0x1e9] sm:$0xff] }
 0x3bb   : > { %7029 = vmatpush.xpose.msk.msra.mxu1 %vm384_vm1, %v4313_v54  ;;  %7064 = vmatpush.xpose.msk.msra.mxu3 %vm384_vm1, %v9772_v14  ;;  %v9862_v54 = vld [vmem:[#allocation2 + $0x2a9] sm:$0xff] }
 0x3be   : > { %7013 = vmatpush.xpose.msk.msra.mxu0 %vm384_vm1, %v4296_v7  ;;  %7048 = vmatpush.xpose.msk.msra.mxu2 %vm384_vm1, %v9780_v11  ;;  %v4287_v7 = vld [vmem:[#allocation2 + $0x31] sm:$0xff] }
 0x3bf   : > { %7030 = vmatpush.xpose.msk.msra.mxu1 %vm384_vm1, %v4312_v8  ;;  %7065 = vmatpush.xpose.msk.msra.mxu3 %vm384_vm1, %v9782_v12  ;;  %v4303_v8 = vld [vmem:[#allocation2 + $0xf1] sm:$0xff] }
 0x3c2   : > { %7014 = vmatpush.xpose.msk.msra.mxu0 %vm384_vm1, %v4295_v63  ;;  %7049 = vmatpush.xpose.msk.msra.mxu2 %vm384_vm1, %v9790_v51  ;;  %v9870_v63 = vld [vmem:[#allocation2 + $0x1e1] sm:$0xff] }
 0x3c3   : > { %7031 = vmatpush.xpose.msk.msra.mxu1 %vm384_vm1, %v4311_v0  ;;  %7066 = vmatpush.xpose.msk.msra.mxu3 %vm384_vm1, %v9792_v52  ;;  %v9872_v0 = vld [vmem:[#allocation2 + $0x2a1] sm:$0xff] }
 0x3c6   : > { %7015 = vmatpush.xpose.msk.msra.mxu0 %vm384_vm1, %v4294_v9  ;;  %7050 = vmatpush.xpose.msk.msra.mxu2 %vm384_vm1, %v9800_v23  ;;  %v6989_v9 = vld [vmem:[%s7469_s7 + $0xe1] sm:$0xff] }
 0x3c7   : > { %7032 = vmatpush.xpose.msk.msra.mxu1 %vm384_vm1, %v4310_v10  ;;  %7067 = vmatpush.xpose.msk.msra.mxu3 %vm384_vm1, %v9802_v24  ;;  %v7005_v10 = vld [vmem:[%s7469_s7 + $0x1a1] sm:$0xff] }
 0x3ca   : > { %7016 = vmatpush.xpose.msk.msra.mxu0 %vm384_vm1, %v4293_v15  ;;  %7051 = vmatpush.xpose.msk.msra.mxu2 %vm384_vm1, %v9810_v33  ;;  %v7006_v15 = vld [vmem:[%s10555_s0 + $0x38] sm:$0xff] }
 0x3cb   : > { %7033 = vmatpush.xpose.msk.msra.mxu1 %vm384_vm1, %v4309_v16  ;;  %7068 = vmatpush.xpose.msk.msra.mxu3 %vm384_vm1, %v9812_v34  ;;  %v7041_v16 = vld [vmem:[%s10555_s0 + $0x80] sm:$0xff] }
 0x3ce   : > { %7017 = vmatpush.xpose.msk.msra.mxu0 %vm384_vm1, %v4292_v47  ;;  %7052 = vmatpush.xpose.msk.msra.mxu2 %vm384_vm1, %v9820_v3  ;;  %v6988_v47 = vld [vmem:[%s7469_s7 + $0xd9] sm:$0xff] }
 0x3cf   : > { %7034 = vmatpush.xpose.msk.msra.mxu1 %vm384_vm1, %v4308_v37  ;;  %7069 = vmatpush.xpose.msk.msra.mxu3 %vm384_vm1, %v9822_v4  ;;  %v7003_v37 = vld [vmem:[%s7469_s7 + $0x189] sm:$0xff] }
 0x3d2   : > { %7018 = vmatpush.xpose.msk.msra.mxu0 %vm384_vm1, %v4291_v27  ;;  %7053 = vmatpush.xpose.msk.msra.mxu2 %vm384_vm1, %v9830_v40  ;;  %v6976_v27 = vld [vmem:[%s7469_s7 + $0x49] sm:$0xff] }
 0x3d3   : > { %7035 = vmatpush.xpose.msk.msra.mxu1 %vm384_vm1, %v4307_v28  ;;  %7070 = vmatpush.xpose.msk.msra.mxu3 %vm384_vm1, %v9832_v18  ;;  %v6992_v28 = vld [vmem:[%s7469_s7 + $0x109] sm:$0xff] }
 0x3d6   : > { %7019 = vmatpush.xpose.msk.msra.mxu0 %vm384_vm1, %v4290_v1  ;;  %7054 = vmatpush.xpose.msk.msra.mxu2 %vm384_vm1, %v9840_v43 }
 0x3d7   : > { %7036 = vmatpush.xpose.msk.msra.mxu1 %vm384_vm1, %v4306_v2  ;;  %7071 = vmatpush.xpose.msk.msra.mxu3 %vm384_vm1, %v9842_v57 }
 0x3da   : > { %7020 = vmatpush.xpose.msk.msra.mxu0 %vm384_vm1, %v4289_v17  ;;  %7055 = vmatpush.xpose.msk.msra.mxu2 %vm384_vm1, %v9850_v38  ;;  %v4874_v17 = vld [vmem:[#allocation2 + $0xe2] sm:$0xff] }
 0x3db   : > { %7037 = vmatpush.xpose.msk.msra.mxu1 %vm384_vm1, %v4305_v39  ;;  %7072 = vmatpush.xpose.msk.msra.mxu3 %vm384_vm1, %v9852_v29  ;;  %v4890_v39 = vld [vmem:[#allocation2 + $0x1a2] sm:$0xff] }
 0x3de   : > { %7021 = vmatpush.xpose.msk.msra.mxu0 %vm384_vm1, %v4288_v5  ;;  %7056 = vmatpush.xpose.msk.msra.mxu2 %vm384_vm1, %v9860_v53  ;;  %v7076_v5 = vld [vmem:[%s10555_s0 + $0xc8] sm:$0xff] }
 0x3df   : > { %7038 = vmatpush.xpose.msk.msra.mxu1 %vm384_vm1, %v4304_v6  ;;  %7073 = vmatpush.xpose.msk.msra.mxu3 %vm384_vm1, %v9862_v54  ;;  %v7111_v6 = vld [vmem:[%s10555_s0 + $0x110] sm:$0xff] }
 0x3e2   : > { %7022 = vmatpush.xpose.msk.msra.mxu0 %vm384_vm1, %v4287_v7  ;;  %7057 = vmatpush.xpose.msk.msra.mxu2 %vm384_vm1, %v9870_v63  ;;  %v10008_v1 = vpop.f32.mrf.mxu0 }
 0x3e3   : > { %7039 = vmatpush.xpose.msk.msra.mxu1 %vm384_vm1, %v4303_v8  ;;  %7074 = vmatpush.xpose.msk.msra.mxu3 %vm384_vm1, %v9872_v0 }
 0x3e5   : > { %7023 = vmatmul.msk.f32.vlgmr.msra.gmra.mxu0 %vm384_vm1, %v7006_v15  ;;  %7058 = vmatmul.msk.f32.vlgmr.msra.gmra.mxu2 %vm384_vm1, %v7041_v16  ;;  %v10010_v2 = vpop.f32.mrf.mxu1 }
 0x3e6   : > { %7077 = vmatpush.xpose.msk.msrb.mxu0 %vm384_vm1, %v9698_v61  ;;  %7112 = vmatpush.xpose.msk.msrb.mxu2 %vm384_vm1, %v6989_v9  ;;  %v7004_v61 = vld [vmem:[%s7469_s7 + $0x199] sm:$0xff] }
 0x3e7   : > { %7094 = vmatpush.xpose.msk.msrb.mxu1 %vm384_vm1, %v9700_v62  ;;  %7129 = vmatpush.xpose.msk.msrb.mxu3 %vm384_vm1, %v7005_v10  ;;  %v6987_v62 = vld [vmem:[%s7469_s7 + $0xc9] sm:$0xff] }
 0x3e8   : > { %7040 = vmatmul.msk.f32.vlgmr.msra.gmra.mxu1 %vm384_vm1, %v7006_v15  ;;  %7075 = vmatmul.msk.f32.vlgmr.msra.gmra.mxu3 %vm384_vm1, %v7041_v16  ;;  %v10038_v7 = vpop.f32.mrf.mxu2 }
 0x3ea   : > { %7078 = vmatpush.xpose.msk.msrb.mxu0 %vm384_vm1, %v9722_v19  ;;  %7113 = vmatpush.xpose.msk.msrb.mxu2 %vm384_vm1, %v6988_v47  ;;  %v6986_v19 = vld [vmem:[%s7469_s7 + $0xc1] sm:$0xff]  ;;  %v4872_v47 = vld [vmem:[#allocation2 + $0xca] sm:$0xff] }
 0x3eb   : > { %7095 = vmatpush.xpose.msk.msrb.mxu1 %vm384_vm1, %v9724_v20  ;;  %7130 = vmatpush.xpose.msk.msrb.mxu3 %vm384_vm1, %v7004_v61  ;;  %v7002_v20 = vld [vmem:[%s7469_s7 + $0x181] sm:$0xff]  ;;  %v10040_v8 = vpop.f32.mrf.mxu3  ;;  %v4888_v61 = vld [vmem:[#allocation2 + $0x18a] sm:$0xff] }
 0x3ee   : > { %7079 = vmatpush.xpose.msk.msrb.mxu0 %vm384_vm1, %v9736_v59  ;;  %7114 = vmatpush.xpose.msk.msrb.mxu2 %vm384_vm1, %v6987_v62  ;;  %v6985_v59 = vld [vmem:[%s7469_s7 + $0xb1] sm:$0xff]  ;;  %v10058_v62 = vld [vmem:[#allocation2 + $0x27a] sm:$0xff] }
 0x3ef   : > { %7096 = vmatpush.xpose.msk.msrb.mxu1 %vm384_vm1, %v9738_v60  ;;  %7131 = vmatpush.xpose.msk.msrb.mxu3 %vm384_vm1, %v7003_v37  ;;  %v7001_v60 = vld [vmem:[%s7469_s7 + $0x171] sm:$0xff]  ;;  %v10060_v37 = vld [vmem:[#allocation2 + $0x33a] sm:$0xff] }
 0x3f2   : > { %7080 = vmatpush.xpose.msk.msrb.mxu0 %vm384_vm1, %v9746_v30  ;;  %7115 = vmatpush.xpose.msk.msrb.mxu2 %vm384_vm1, %v6986_v19  ;;  %v6984_v30 = vld [vmem:[%s7469_s7 + $0xa9] sm:$0xff] }
 0x3f3   : > { %7097 = vmatpush.xpose.msk.msrb.mxu1 %vm384_vm1, %v9748_v48  ;;  %7132 = vmatpush.xpose.msk.msrb.mxu3 %vm384_vm1, %v7002_v20  ;;  %v7000_v48 = vld [vmem:[%s7469_s7 + $0x169] sm:$0xff] }
 0x3f6   : > { %7081 = vmatpush.xpose.msk.msrb.mxu0 %vm384_vm1, %v9760_v58  ;;  %7116 = vmatpush.xpose.msk.msrb.mxu2 %vm384_vm1, %v6985_v59  ;;  %v6983_v58 = vld [vmem:[%s7469_s7 + $0x99] sm:$0xff] }
 0x3f7   : > { %7098 = vmatpush.xpose.msk.msrb.mxu1 %vm384_vm1, %v9762_v44  ;;  %7133 = vmatpush.xpose.msk.msrb.mxu3 %vm384_vm1, %v7001_v60  ;;  %v6999_v44 = vld [vmem:[%s7469_s7 + $0x159] sm:$0xff] }
 0x3f8   : > { %v10068_v59 = vld [vmem:[#allocation2 + $0x272] sm:$0xff] }
 0x3f9   : > { %v10070_v60 = vld [vmem:[#allocation2 + $0x332] sm:$0xff] }
 0x3fa   : > { %7082 = vmatpush.xpose.msk.msrb.mxu0 %vm384_vm1, %v9770_v13  ;;  %7117 = vmatpush.xpose.msk.msrb.mxu2 %vm384_vm1, %v6984_v30  ;;  %v6982_v13 = vld [vmem:[%s7469_s7 + $0x91] sm:$0xff] }
 0x3fb   : > { %7099 = vmatpush.xpose.msk.msrb.mxu1 %vm384_vm1, %v9772_v14  ;;  %7134 = vmatpush.xpose.msk.msrb.mxu3 %vm384_vm1, %v7000_v48  ;;  %v6998_v14 = vld [vmem:[%s7469_s7 + $0x151] sm:$0xff] }
 0x3fe   : > { %7083 = vmatpush.xpose.msk.msrb.mxu0 %vm384_vm1, %v9780_v11  ;;  %7118 = vmatpush.xpose.msk.msrb.mxu2 %vm384_vm1, %v6983_v58  ;;  %v6981_v11 = vld [vmem:[%s7469_s7 + $0x81] sm:$0xff]  ;;  %v4870_v58 = vld [vmem:[#allocation2 + $0xb2] sm:$0xff] }
 0x3ff   : > { %7100 = vmatpush.xpose.msk.msrb.mxu1 %vm384_vm1, %v9782_v12  ;;  %7135 = vmatpush.xpose.msk.msrb.mxu3 %vm384_vm1, %v6999_v44  ;;  %v6997_v12 = vld [vmem:[%s7469_s7 + $0x141] sm:$0xff]  ;;  %v4886_v44 = vld [vmem:[#allocation2 + $0x172] sm:$0xff] }
 0x402   : > { %7084 = vmatpush.xpose.msk.msrb.mxu0 %vm384_vm1, %v9790_v51  ;;  %7119 = vmatpush.xpose.msk.msrb.mxu2 %vm384_vm1, %v6982_v13  ;;  %v6980_v51 = vld [vmem:[%s7469_s7 + $0x79] sm:$0xff]  ;;  %v10082_v13 = vld [vmem:[#allocation2 + $0x262] sm:$0xff] }
 0x403   : > { %7101 = vmatpush.xpose.msk.msrb.mxu1 %vm384_vm1, %v9792_v52  ;;  %7136 = vmatpush.xpose.msk.msrb.mxu3 %vm384_vm1, %v6998_v14  ;;  %v6996_v52 = vld [vmem:[%s7469_s7 + $0x139] sm:$0xff]  ;;  %v10084_v14 = vld [vmem:[#allocation2 + $0x322] sm:$0xff] }
 0x406   : > { %7085 = vmatpush.xpose.msk.msrb.mxu0 %vm384_vm1, %v9800_v23  ;;  %7120 = vmatpush.xpose.msk.msrb.mxu2 %vm384_vm1, %v6981_v11  ;;  %v6979_v23 = vld [vmem:[%s7469_s7 + $0x69] sm:$0xff] }
 0x407   : > { %7102 = vmatpush.xpose.msk.msrb.mxu1 %vm384_vm1, %v9802_v24  ;;  %7137 = vmatpush.xpose.msk.msrb.mxu3 %vm384_vm1, %v6997_v12  ;;  %v6995_v24 = vld [vmem:[%s7469_s7 + $0x129] sm:$0xff] }
 0x408   : > { %v4869_v11 = vld [vmem:[#allocation2 + $0xaa] sm:$0xff] }
 0x409   : > { %v4885_v12 = vld [vmem:[#allocation2 + $0x16a] sm:$0xff] }
 0x40a   : > { %7086 = vmatpush.xpose.msk.msrb.mxu0 %vm384_vm1, %v9810_v33  ;;  %7121 = vmatpush.xpose.msk.msrb.mxu2 %vm384_vm1, %v6980_v51  ;;  %v6978_v33 = vld [vmem:[%s7469_s7 + $0x61] sm:$0xff] }
 0x40b   : > { %7103 = vmatpush.xpose.msk.msrb.mxu1 %vm384_vm1, %v9812_v34  ;;  %7138 = vmatpush.xpose.msk.msrb.mxu3 %vm384_vm1, %v6996_v52  ;;  %v6994_v34 = vld [vmem:[%s7469_s7 + $0x121] sm:$0xff] }
 0x40c   : > { %v10092_v51 = vld [vmem:[#allocation2 + $0x25a] sm:$0xff] }
 0x40d   : > { %v10094_v52 = vld [vmem:[#allocation2 + $0x31a] sm:$0xff] }
 0x40e   : > { %7087 = vmatpush.xpose.msk.msrb.mxu0 %vm384_vm1, %v9820_v3  ;;  %7122 = vmatpush.xpose.msk.msrb.mxu2 %vm384_vm1, %v6979_v23  ;;  %v6977_v3 = vld [vmem:[%s7469_s7 + $0x51] sm:$0xff]  ;;  %v4868_v23 = vld [vmem:[#allocation2 + $0x9a] sm:$0xff] }
 0x40f   : > { %7104 = vmatpush.xpose.msk.msrb.mxu1 %vm384_vm1, %v9822_v4  ;;  %7139 = vmatpush.xpose.msk.msrb.mxu3 %vm384_vm1, %v6995_v24  ;;  %v6993_v4 = vld [vmem:[%s7469_s7 + $0x111] sm:$0xff]  ;;  %v4884_v24 = vld [vmem:[#allocation2 + $0x15a] sm:$0xff] }
 0x412   : > { %7088 = vmatpush.xpose.msk.msrb.mxu0 %vm384_vm1, %v9830_v40  ;;  %7123 = vmatpush.xpose.msk.msrb.mxu2 %vm384_vm1, %v6978_v33  ;;  %v6975_v40 = vld [vmem:[%s7469_s7 + $0x39] sm:$0xff]  ;;  %v10102_v33 = vld [vmem:[#allocation2 + $0x24a] sm:$0xff] }
 0x413   : > { %7105 = vmatpush.xpose.msk.msrb.mxu1 %vm384_vm1, %v9832_v18  ;;  %7140 = vmatpush.xpose.msk.msrb.mxu3 %vm384_vm1, %v6994_v34  ;;  %v6991_v18 = vld [vmem:[%s7469_s7 + $0xf9] sm:$0xff]  ;;  %v10104_v34 = vld [vmem:[#allocation2 + $0x30a] sm:$0xff] }
 0x416   : > { %7089 = vmatpush.xpose.msk.msrb.mxu0 %vm384_vm1, %v9840_v43  ;;  %7124 = vmatpush.xpose.msk.msrb.mxu2 %vm384_vm1, %v6977_v3  ;;  %v6974_v43 = vld [vmem:[%s7469_s7 + $0x31] sm:$0xff] }
 0x417   : > { %7106 = vmatpush.xpose.msk.msrb.mxu1 %vm384_vm1, %v9842_v57  ;;  %7141 = vmatpush.xpose.msk.msrb.mxu3 %vm384_vm1, %v6993_v4  ;;  %v6990_v57 = vld [vmem:[%s7469_s7 + $0xf1] sm:$0xff] }
 0x418   : > { %v4867_v3 = vld [vmem:[#allocation2 + $0x92] sm:$0xff] }
 0x419   : > { %v4883_v4 = vld [vmem:[#allocation2 + $0x152] sm:$0xff] }
 0x41a   : > { %7090 = vmatpush.xpose.msk.msrb.mxu0 %vm384_vm1, %v9850_v38  ;;  %7125 = vmatpush.xpose.msk.msrb.mxu2 %vm384_vm1, %v6976_v27  ;;  %v10020_v38 = vld [vmem:[#allocation2 + $0x292] sm:$0xff]  ;;  %v10112_v27 = vld [vmem:[#allocation2 + $0x242] sm:$0xff] }
 0x41b   : > { %7107 = vmatpush.xpose.msk.msrb.mxu1 %vm384_vm1, %v9852_v29  ;;  %7142 = vmatpush.xpose.msk.msrb.mxu3 %vm384_vm1, %v6992_v28  ;;  %v10022_v29 = vld [vmem:[#allocation2 + $0x352] sm:$0xff]  ;;  %v10114_v28 = vld [vmem:[#allocation2 + $0x302] sm:$0xff] }
 0x41e   : > { %7091 = vmatpush.xpose.msk.msrb.mxu0 %vm384_vm1, %v9860_v53  ;;  %7126 = vmatpush.xpose.msk.msrb.mxu2 %vm384_vm1, %v6975_v40  ;;  %v4873_v53 = vld [vmem:[#allocation2 + $0xda] sm:$0xff]  ;;  %v4866_v40 = vld [vmem:[#allocation2 + $0x82] sm:$0xff] }
 0x41f   : > { %7108 = vmatpush.xpose.msk.msrb.mxu1 %vm384_vm1, %v9862_v54  ;;  %7143 = vmatpush.xpose.msk.msrb.mxu3 %vm384_vm1, %v6991_v18  ;;  %v4889_v54 = vld [vmem:[#allocation2 + $0x19a] sm:$0xff]  ;;  %v4882_v18 = vld [vmem:[#allocation2 + $0x142] sm:$0xff] }
 0x422   : > { %7092 = vmatpush.xpose.msk.msrb.mxu0 %vm384_vm1, %v9870_v63  ;;  %7127 = vmatpush.xpose.msk.msrb.mxu2 %vm384_vm1, %v6974_v43  ;;  %v10044_v63 = vld [vmem:[#allocation2 + $0x28a] sm:$0xff]  ;;  %v4119_v9 = vpop.f32.mrf.mxu0  ;;  %v10122_v43 = vld [vmem:[#allocation2 + $0x232] sm:$0xff] }
 0x423   : > { %7109 = vmatpush.xpose.msk.msrb.mxu1 %vm384_vm1, %v9872_v0  ;;  %7144 = vmatpush.xpose.msk.msrb.mxu3 %vm384_vm1, %v6990_v57  ;;  %v10046_v0 = vld [vmem:[#allocation2 + $0x34a] sm:$0xff]  ;;  %v4142_v15 = vadd.f32 %v4119_v9, %v9750_v55  ;;  %v4871_v55 = vld [vmem:[#allocation2 + $0xc2] sm:$0xff]  ;;  %v10124_v57 = vld [vmem:[#allocation2 + $0x2f2] sm:$0xff] }
 0x424   : > { %v10142_v9 = vld [vmem:[#allocation2 + $0x21a] sm:$0xff] }
 0x425   : > { %7093 = vmatmul.msk.f32.vlgmr.msrb.gmra.mxu0 %vm384_vm1, %v7076_v5  ;;  %7128 = vmatmul.msk.f32.vlgmr.msrb.gmra.mxu2 %vm384_vm1, %v7111_v6  ;;  %v4139_v10 = vpop.f32.mrf.mxu1 }
 0x426   : > { %7179 = vmatpush.xpose.msk.msra.mxu0 %vm384_vm1, %v4874_v17  ;;  %7214 = vmatpush.xpose.msk.msra.mxu2 %vm384_vm1, %v10020_v38  ;;  %v4143_v16 = vadd.f32 %v4139_v10, %v9752_v56  ;;  %v4887_v56 = vld [vmem:[#allocation2 + $0x182] sm:$0xff]  ;;  %v4865_v17 = vld [vmem:[#allocation2 + $0x7a] sm:$0xff] }
 0x427   : > { %7196 = vmatpush.xpose.msk.msra.mxu1 %vm384_vm1, %v4890_v39  ;;  %7231 = vmatpush.xpose.msk.msra.mxu3 %vm384_vm1, %v10022_v29  ;;  %v4881_v39 = vld [vmem:[#allocation2 + $0x13a] sm:$0xff] }
 0x428   : > { %7110 = vmatmul.msk.f32.vlgmr.msrb.gmra.mxu1 %vm384_vm1, %v7076_v5  ;;  %7145 = vmatmul.msk.f32.vlgmr.msrb.gmra.mxu3 %vm384_vm1, %v7111_v6  ;;  %v4262_v19 = vpop.f32.mrf.mxu2  ;;  %v10132_v5 = vld [vmem:[#allocation2 + $0x22a] sm:$0xff]  ;;  %v10144_v10 = vld [vmem:[#allocation2 + $0x2da] sm:$0xff] }
 0x429   : > { %v10072_v30 = vadd.f32 %v4262_v19, %v4142_v15  ;;  %v10134_v6 = vld [vmem:[#allocation2 + $0x2ea] sm:$0xff]  ;;  %v4863_v15 = vld [vmem:[#allocation2 + $0x62] sm:$0xff] }
 0x42a   : > { %7180 = vmatpush.xpose.msk.msra.mxu0 %vm384_vm1, %v4873_v53  ;;  %7215 = vmatpush.xpose.msk.msra.mxu2 %vm384_vm1, %v10044_v63  ;;  %v4864_v53 = vld [vmem:[#allocation2 + $0x6a] sm:$0xff]  ;;  %v10162_v19 = vld [vmem:[#allocation2 + $0x202] sm:$0xff] }
 0x42b   : > { %7197 = vmatpush.xpose.msk.msra.mxu1 %vm384_vm1, %v4889_v54  ;;  %7232 = vmatpush.xpose.msk.msra.mxu3 %vm384_vm1, %v10046_v0  ;;  %v4282_v20 = vpop.f32.mrf.mxu3  ;;  %v4880_v54 = vld [vmem:[#allocation2 + $0x12a] sm:$0xff] }
 0x42c   : > { %v10074_v48 = vadd.f32 %v4282_v20, %v4143_v16  ;;  %v4879_v16 = vld [vmem:[#allocation2 + $0x122] sm:$0xff] }
 0x42d   : > { %v10164_v20 = vld [vmem:[#allocation2 + $0x2c2] sm:$0xff] }
 0x42e   : > { %7181 = vmatpush.xpose.msk.msra.mxu0 %vm384_vm1, %v4872_v47  ;;  %7216 = vmatpush.xpose.msk.msra.mxu2 %vm384_vm1, %v10058_v62  ;;  %v10152_v47 = vld [vmem:[#allocation2 + $0x212] sm:$0xff] }
 0x42f   : > { %7198 = vmatpush.xpose.msk.msra.mxu1 %vm384_vm1, %v4888_v61  ;;  %7233 = vmatpush.xpose.msk.msra.mxu3 %vm384_vm1, %v10060_v37  ;;  %v10154_v61 = vld [vmem:[#allocation2 + $0x2d2] sm:$0xff] }
 0x432   : > { %7182 = vmatpush.xpose.msk.msra.mxu0 %vm384_vm1, %v4871_v55  ;;  %7217 = vmatpush.xpose.msk.msra.mxu2 %vm384_vm1, %v10068_v59  ;;  %v4862_v55 = vld [vmem:[#allocation2 + $0x52] sm:$0xff] }
 0x433   : > { %7199 = vmatpush.xpose.msk.msra.mxu1 %vm384_vm1, %v4887_v56  ;;  %7234 = vmatpush.xpose.msk.msra.mxu3 %vm384_vm1, %v10070_v60  ;;  %v4878_v56 = vld [vmem:[#allocation2 + $0x112] sm:$0xff] }
 0x436   : > { %7183 = vmatpush.xpose.msk.msra.mxu0 %vm384_vm1, %v4870_v58  ;;  %7218 = vmatpush.xpose.msk.msra.mxu2 %vm384_vm1, %v10082_v13  ;;  %v4861_v58 = vld [vmem:[#allocation2 + $0x4a] sm:$0xff] }
 0x437   : > { %7200 = vmatpush.xpose.msk.msra.mxu1 %vm384_vm1, %v4886_v44  ;;  %7235 = vmatpush.xpose.msk.msra.mxu3 %vm384_vm1, %v10084_v14  ;;  %v4877_v44 = vld [vmem:[#allocation2 + $0x10a] sm:$0xff] }
 0x43a   : > { %7184 = vmatpush.xpose.msk.msra.mxu0 %vm384_vm1, %v4869_v11  ;;  %7219 = vmatpush.xpose.msk.msra.mxu2 %vm384_vm1, %v10092_v51  ;;  %v10172_v11 = vld [vmem:[#allocation2 + $0x1fa] sm:$0xff] }
 0x43b   : > { %7201 = vmatpush.xpose.msk.msra.mxu1 %vm384_vm1, %v4885_v12  ;;  %7236 = vmatpush.xpose.msk.msra.mxu3 %vm384_vm1, %v10094_v52  ;;  %v10174_v12 = vld [vmem:[#allocation2 + $0x2ba] sm:$0xff] }
 0x43e   : > { %7185 = vmatpush.xpose.msk.msra.mxu0 %vm384_vm1, %v4868_v23  ;;  %7220 = vmatpush.xpose.msk.msra.mxu2 %vm384_vm1, %v10102_v33  ;;  %v4860_v23 = vld [vmem:[#allocation2 + $0x3a] sm:$0xff] }
 0x43f   : > { %7202 = vmatpush.xpose.msk.msra.mxu1 %vm384_vm1, %v4884_v24  ;;  %7237 = vmatpush.xpose.msk.msra.mxu3 %vm384_vm1, %v10104_v34  ;;  %v4876_v24 = vld [vmem:[#allocation2 + $0xfa] sm:$0xff] }
 0x442   : > { %7186 = vmatpush.xpose.msk.msra.mxu0 %vm384_vm1, %v4867_v3  ;;  %7221 = vmatpush.xpose.msk.msra.mxu2 %vm384_vm1, %v10112_v27  ;;  %v10182_v3 = vld [vmem:[#allocation2 + $0x1ea] sm:$0xff] }
 0x443   : > { %7203 = vmatpush.xpose.msk.msra.mxu1 %vm384_vm1, %v4883_v4  ;;  %7238 = vmatpush.xpose.msk.msra.mxu3 %vm384_vm1, %v10114_v28  ;;  %v10184_v4 = vld [vmem:[#allocation2 + $0x2aa] sm:$0xff] }
 0x446   : > { %7187 = vmatpush.xpose.msk.msra.mxu0 %vm384_vm1, %v4866_v40  ;;  %7222 = vmatpush.xpose.msk.msra.mxu2 %vm384_vm1, %v10122_v43  ;;  %v4859_v40 = vld [vmem:[#allocation2 + $0x32] sm:$0xff] }
 0x447   : > { %7204 = vmatpush.xpose.msk.msra.mxu1 %vm384_vm1, %v4882_v18  ;;  %7239 = vmatpush.xpose.msk.msra.mxu3 %vm384_vm1, %v10124_v57  ;;  %v4875_v18 = vld [vmem:[#allocation2 + $0xf2] sm:$0xff] }
 0x44a   : > { %7188 = vmatpush.xpose.msk.msra.mxu0 %vm384_vm1, %v4865_v17  ;;  %7223 = vmatpush.xpose.msk.msra.mxu2 %vm384_vm1, %v10132_v5  ;;  %v10192_v17 = vld [vmem:[#allocation2 + $0x1e2] sm:$0xff] }
 0x44b   : > { %7205 = vmatpush.xpose.msk.msra.mxu1 %vm384_vm1, %v4881_v39  ;;  %7240 = vmatpush.xpose.msk.msra.mxu3 %vm384_vm1, %v10134_v6  ;;  %v10194_v39 = vld [vmem:[#allocation2 + $0x2a2] sm:$0xff] }
 0x44e   : > { %7189 = vmatpush.xpose.msk.msra.mxu0 %vm384_vm1, %v4864_v53  ;;  %7224 = vmatpush.xpose.msk.msra.mxu2 %vm384_vm1, %v10142_v9  ;;  %v7161_v53 = vld [vmem:[%s7469_s7 + $0xe2] sm:$0xff] }
 0x44f   : > { %7206 = vmatpush.xpose.msk.msra.mxu1 %vm384_vm1, %v4880_v54  ;;  %7241 = vmatpush.xpose.msk.msra.mxu3 %vm384_vm1, %v10144_v10  ;;  %v7177_v54 = vld [vmem:[%s7469_s7 + $0x1a2] sm:$0xff] }
 0x452   : > { %7190 = vmatpush.xpose.msk.msra.mxu0 %vm384_vm1, %v4863_v15  ;;  %7225 = vmatpush.xpose.msk.msra.mxu2 %vm384_vm1, %v10152_v47  ;;  %v7178_v15 = vld [vmem:[%s10555_s0 + $0x40] sm:$0xff] }
 0x453   : > { %7207 = vmatpush.xpose.msk.msra.mxu1 %vm384_vm1, %v4879_v16  ;;  %7242 = vmatpush.xpose.msk.msra.mxu3 %vm384_vm1, %v10154_v61  ;;  %v7213_v16 = vld [vmem:[%s10555_s0 + $0x88] sm:$0xff] }
 0x456   : > { %7191 = vmatpush.xpose.msk.msra.mxu0 %vm384_vm1, %v4862_v55  ;;  %7226 = vmatpush.xpose.msk.msra.mxu2 %vm384_vm1, %v10162_v19  ;;  %v7160_v55 = vld [vmem:[%s7469_s7 + $0xda] sm:$0xff] }
 0x457   : > { %7208 = vmatpush.xpose.msk.msra.mxu1 %vm384_vm1, %v4878_v56  ;;  %7243 = vmatpush.xpose.msk.msra.mxu3 %vm384_vm1, %v10164_v20  ;;  %v7175_v56 = vld [vmem:[%s7469_s7 + $0x18a] sm:$0xff] }
 0x45a   : > { %7192 = vmatpush.xpose.msk.msra.mxu0 %vm384_vm1, %v4861_v58  ;;  %7227 = vmatpush.xpose.msk.msra.mxu2 %vm384_vm1, %v10172_v11 }
 0x45b   : > { %7209 = vmatpush.xpose.msk.msra.mxu1 %vm384_vm1, %v4877_v44  ;;  %7244 = vmatpush.xpose.msk.msra.mxu3 %vm384_vm1, %v10174_v12 }
 0x45e   : > { %7193 = vmatpush.xpose.msk.msra.mxu0 %vm384_vm1, %v4860_v23  ;;  %7228 = vmatpush.xpose.msk.msra.mxu2 %vm384_vm1, %v10182_v3  ;;  %v7248_v23 = vld [vmem:[%s10555_s0 + $0xd0] sm:$0xff] }
 0x45f   : > { %7210 = vmatpush.xpose.msk.msra.mxu1 %vm384_vm1, %v4876_v24  ;;  %7245 = vmatpush.xpose.msk.msra.mxu3 %vm384_vm1, %v10184_v4  ;;  %v7283_v24 = vld [vmem:[%s10555_s0 + $0x118] sm:$0xff] }
 0x462   : > { %7194 = vmatpush.xpose.msk.msra.mxu0 %vm384_vm1, %v4859_v40  ;;  %7229 = vmatpush.xpose.msk.msra.mxu2 %vm384_vm1, %v10192_v17  ;;  %v4501_v58 = vpop.f32.mrf.mxu0 }
 0x463   : > { %7211 = vmatpush.xpose.msk.msra.mxu1 %vm384_vm1, %v4875_v18  ;;  %7246 = vmatpush.xpose.msk.msra.mxu3 %vm384_vm1, %v10194_v39 }
 0x465   : > { %7195 = vmatmul.msk.f32.vlgmr.msra.gmra.mxu0 %vm384_vm1, %v7178_v15  ;;  %7230 = vmatmul.msk.f32.vlgmr.msra.gmra.mxu2 %vm384_vm1, %v7213_v16  ;;  %v4521_v44 = vpop.f32.mrf.mxu1 }
 0x466   : > { %7249 = vmatpush.xpose.msk.msrb.mxu0 %vm384_vm1, %v10020_v38  ;;  %7284 = vmatpush.xpose.msk.msrb.mxu2 %vm384_vm1, %v7161_v53  ;;  %v7176_v38 = vld [vmem:[%s7469_s7 + $0x19a] sm:$0xff] }
 0x467   : > { %7266 = vmatpush.xpose.msk.msrb.mxu1 %vm384_vm1, %v10022_v29  ;;  %7301 = vmatpush.xpose.msk.msrb.mxu3 %vm384_vm1, %v7177_v54  ;;  %v7159_v29 = vld [vmem:[%s7469_s7 + $0xca] sm:$0xff] }
 0x468   : > { %7212 = vmatmul.msk.f32.vlgmr.msra.gmra.mxu1 %vm384_vm1, %v7178_v15  ;;  %7247 = vmatmul.msk.f32.vlgmr.msra.gmra.mxu3 %vm384_vm1, %v7213_v16 }
 0x46a   : > { %7250 = vmatpush.xpose.msk.msrb.mxu0 %vm384_vm1, %v10044_v63  ;;  %7285 = vmatpush.xpose.msk.msrb.mxu2 %vm384_vm1, %v7160_v55  ;;  %v7158_v63 = vld [vmem:[%s7469_s7 + $0xc2] sm:$0xff]  ;;  %v2233_v55 = vadd.f32 %v9042_v21, %v8632_v25 }
 0x46b   : > { %7267 = vmatpush.xpose.msk.msrb.mxu1 %vm384_vm1, %v10046_v0  ;;  %7302 = vmatpush.xpose.msk.msrb.mxu3 %vm384_vm1, %v7176_v38  ;;  %v7174_v0 = vld [vmem:[%s7469_s7 + $0x182] sm:$0xff]  ;;  %v2234_v38 = vadd.f32 %v9044_v22, %v8634_v26 }
 0x46e   : > { %7251 = vmatpush.xpose.msk.msrb.mxu0 %vm384_vm1, %v10058_v62  ;;  %7286 = vmatpush.xpose.msk.msrb.mxu2 %vm384_vm1, %v7159_v29  ;;  %v7157_v62 = vld [vmem:[%s7469_s7 + $0xb2] sm:$0xff]  ;;  %v2376_v29 = vadd.f32 %v9072_v49, %v2233_v55 }
 0x46f   : > { %7268 = vmatpush.xpose.msk.msrb.mxu1 %vm384_vm1, %v10060_v37  ;;  %7303 = vmatpush.xpose.msk.msrb.mxu3 %vm384_vm1, %v7175_v56  ;;  %v7173_v37 = vld [vmem:[%s7469_s7 + $0x172] sm:$0xff]  ;;  %v2377_v56 = vadd.f32 %v9074_v50, %v2234_v38 }
 0x472   : > { %7252 = vmatpush.xpose.msk.msrb.mxu0 %vm384_vm1, %v10068_v59  ;;  %7287 = vmatpush.xpose.msk.msrb.mxu2 %vm384_vm1, %v7158_v63  ;;  %v7156_v59 = vld [vmem:[%s7469_s7 + $0xaa] sm:$0xff]  ;;  %v2805_v63 = vadd.f32 %v9364_v31, %v2376_v29 }
 0x473   : > { %7269 = vmatpush.xpose.msk.msrb.mxu1 %vm384_vm1, %v10070_v60  ;;  %7304 = vmatpush.xpose.msk.msrb.mxu3 %vm384_vm1, %v7174_v0  ;;  %v7172_v60 = vld [vmem:[%s7469_s7 + $0x16a] sm:$0xff] }
 0x476   : > { %7253 = vmatpush.xpose.msk.msrb.mxu0 %vm384_vm1, %v10082_v13  ;;  %7288 = vmatpush.xpose.msk.msrb.mxu2 %vm384_vm1, %v7157_v62  ;;  %v7155_v13 = vld [vmem:[%s7469_s7 + $0x9a] sm:$0xff] }
 0x477   : > { %7270 = vmatpush.xpose.msk.msrb.mxu1 %vm384_vm1, %v10084_v14  ;;  %7305 = vmatpush.xpose.msk.msrb.mxu3 %vm384_vm1, %v7173_v37  ;;  %v7171_v14 = vld [vmem:[%s7469_s7 + $0x15a] sm:$0xff] }
 0x47a   : > { %7254 = vmatpush.xpose.msk.msrb.mxu0 %vm384_vm1, %v10092_v51  ;;  %7289 = vmatpush.xpose.msk.msrb.mxu2 %vm384_vm1, %v7156_v59  ;;  %v7154_v51 = vld [vmem:[%s7469_s7 + $0x92] sm:$0xff] }
 0x47b   : > { %7271 = vmatpush.xpose.msk.msrb.mxu1 %vm384_vm1, %v10094_v52  ;;  %7306 = vmatpush.xpose.msk.msrb.mxu3 %vm384_vm1, %v7172_v60  ;;  %v7170_v52 = vld [vmem:[%s7469_s7 + $0x152] sm:$0xff] }
 0x47e   : > { %7255 = vmatpush.xpose.msk.msrb.mxu0 %vm384_vm1, %v10102_v33  ;;  %7290 = vmatpush.xpose.msk.msrb.mxu2 %vm384_vm1, %v7155_v13  ;;  %v7153_v33 = vld [vmem:[%s7469_s7 + $0x82] sm:$0xff] }
 0x47f   : > { %7272 = vmatpush.xpose.msk.msrb.mxu1 %vm384_vm1, %v10104_v34  ;;  %7307 = vmatpush.xpose.msk.msrb.mxu3 %vm384_vm1, %v7171_v14  ;;  %v7169_v34 = vld [vmem:[%s7469_s7 + $0x142] sm:$0xff] }
 0x482   : > { %7256 = vmatpush.xpose.msk.msrb.mxu0 %vm384_vm1, %v10112_v27  ;;  %7291 = vmatpush.xpose.msk.msrb.mxu2 %vm384_vm1, %v7154_v51  ;;  %v7152_v27 = vld [vmem:[%s7469_s7 + $0x7a] sm:$0xff] }
 0x483   : > { %7273 = vmatpush.xpose.msk.msrb.mxu1 %vm384_vm1, %v10114_v28  ;;  %7308 = vmatpush.xpose.msk.msrb.mxu3 %vm384_vm1, %v7170_v52  ;;  %v7168_v28 = vld [vmem:[%s7469_s7 + $0x13a] sm:$0xff] }
 0x486   : > { %7257 = vmatpush.xpose.msk.msrb.mxu0 %vm384_vm1, %v10122_v43  ;;  %7292 = vmatpush.xpose.msk.msrb.mxu2 %vm384_vm1, %v7153_v33  ;;  %v7151_v43 = vld [vmem:[%s7469_s7 + $0x6a] sm:$0xff] }
 0x487   : > { %7274 = vmatpush.xpose.msk.msrb.mxu1 %vm384_vm1, %v10124_v57  ;;  %7309 = vmatpush.xpose.msk.msrb.mxu3 %vm384_vm1, %v7169_v34  ;;  %v7167_v57 = vld [vmem:[%s7469_s7 + $0x12a] sm:$0xff] }
 0x48a   : > { %7258 = vmatpush.xpose.msk.msrb.mxu0 %vm384_vm1, %v10132_v5  ;;  %7293 = vmatpush.xpose.msk.msrb.mxu2 %vm384_vm1, %v7152_v27  ;;  %v7150_v5 = vld [vmem:[%s7469_s7 + $0x62] sm:$0xff] }
 0x48b   : > { %7275 = vmatpush.xpose.msk.msrb.mxu1 %vm384_vm1, %v10134_v6  ;;  %7310 = vmatpush.xpose.msk.msrb.mxu3 %vm384_vm1, %v7168_v28  ;;  %v7166_v6 = vld [vmem:[%s7469_s7 + $0x122] sm:$0xff] }
 0x48e   : > { %7259 = vmatpush.xpose.msk.msrb.mxu0 %vm384_vm1, %v10142_v9  ;;  %7294 = vmatpush.xpose.msk.msrb.mxu2 %vm384_vm1, %v7151_v43  ;;  %v7149_v9 = vld [vmem:[%s7469_s7 + $0x52] sm:$0xff] }
 0x48f   : > { %7276 = vmatpush.xpose.msk.msrb.mxu1 %vm384_vm1, %v10144_v10  ;;  %7311 = vmatpush.xpose.msk.msrb.mxu3 %vm384_vm1, %v7167_v57  ;;  %v7165_v10 = vld [vmem:[%s7469_s7 + $0x112] sm:$0xff] }
 0x492   : > { %7260 = vmatpush.xpose.msk.msrb.mxu0 %vm384_vm1, %v10152_v47  ;;  %7295 = vmatpush.xpose.msk.msrb.mxu2 %vm384_vm1, %v7150_v5  ;;  %v7148_v47 = vld [vmem:[%s7469_s7 + $0x4a] sm:$0xff] }
 0x493   : > { %7277 = vmatpush.xpose.msk.msrb.mxu1 %vm384_vm1, %v10154_v61  ;;  %7312 = vmatpush.xpose.msk.msrb.mxu3 %vm384_vm1, %v7166_v6  ;;  %v7164_v61 = vld [vmem:[%s7469_s7 + $0x10a] sm:$0xff] }
 0x496   : > { %7261 = vmatpush.xpose.msk.msrb.mxu0 %vm384_vm1, %v10162_v19  ;;  %7296 = vmatpush.xpose.msk.msrb.mxu2 %vm384_vm1, %v7149_v9  ;;  %v7147_v19 = vld [vmem:[%s7469_s7 + $0x3a] sm:$0xff] }
 0x497   : > { %7278 = vmatpush.xpose.msk.msrb.mxu1 %vm384_vm1, %v10164_v20  ;;  %7313 = vmatpush.xpose.msk.msrb.mxu3 %vm384_vm1, %v7165_v10  ;;  %v7163_v20 = vld [vmem:[%s7469_s7 + $0xfa] sm:$0xff] }
 0x49a   : > { %7262 = vmatpush.xpose.msk.msrb.mxu0 %vm384_vm1, %v10172_v11  ;;  %7297 = vmatpush.xpose.msk.msrb.mxu2 %vm384_vm1, %v7148_v47  ;;  %v7146_v11 = vld [vmem:[%s7469_s7 + $0x32] sm:$0xff] }
 0x49b   : > { %7279 = vmatpush.xpose.msk.msrb.mxu1 %vm384_vm1, %v10174_v12  ;;  %7314 = vmatpush.xpose.msk.msrb.mxu3 %vm384_vm1, %v7164_v61  ;;  %v7162_v12 = vld [vmem:[%s7469_s7 + $0xf2] sm:$0xff] }
 0x49e   : > { %7263 = vmatpush.xpose.msk.msrb.mxu0 %vm384_vm1, %v10182_v3  ;;  %7298 = vmatpush.xpose.msk.msrb.mxu2 %vm384_vm1, %v7147_v19  ;;  %v4644_v3 = vpop.f32.mrf.mxu2  ;;  %v5436_v19 = vld [vmem:[%s7474_s10] sm:$0xff] }
 0x49f   : > { %7280 = vmatpush.xpose.msk.msrb.mxu1 %vm384_vm1, %v10184_v4  ;;  %7315 = vmatpush.xpose.msk.msrb.mxu3 %vm384_vm1, %v7163_v20  ;;  %v4664_v4 = vpop.f32.mrf.mxu3 }
 0x4a2   : > { %7264 = vmatpush.xpose.msk.msrb.mxu0 %vm384_vm1, %v10192_v17  ;;  %7299 = vmatpush.xpose.msk.msrb.mxu2 %vm384_vm1, %v7146_v11  ;;  %v4691_v40 = vpop.f32.mrf.mxu0 }
 0x4a3   : > { %7281 = vmatpush.xpose.msk.msrb.mxu1 %vm384_vm1, %v10194_v39  ;;  %7316 = vmatpush.xpose.msk.msrb.mxu3 %vm384_vm1, %v7162_v12  ;;  %v4714_v17 = vadd.f32 %v4691_v40, %v10072_v30  ;;  %v2806_v30 = vadd.f32 %v9366_v32, %v2377_v56 }
 0x4a5   : > { %7265 = vmatmul.msk.f32.vlgmr.msrb.gmra.mxu0 %vm384_vm1, %v7248_v23  ;;  %7300 = vmatmul.msk.f32.vlgmr.msrb.gmra.mxu2 %vm384_vm1, %v7283_v24  ;;  %v4711_v18 = vpop.f32.mrf.mxu1  ;;  %v2949_v0 = vadd.f32 %v9396_v42, %v2806_v30 }
 0x4a6   : > { %7282 = vmatmul.msk.f32.vlgmr.msrb.gmra.mxu1 %vm384_vm1, %v7248_v23  ;;  %7317 = vmatmul.msk.f32.vlgmr.msrb.gmra.mxu3 %vm384_vm1, %v7283_v24  ;;  %v4715_v39 = vadd.f32 %v4711_v18, %v10074_v48  ;;  %v2948_v48 = vadd.f32 %v9394_v41, %v2805_v63 }
 0x4a7   : > { %v3378_v37 = vadd.f32 %v9688_v46, %v2949_v0 }
 0x4a8   : > { %v4834_v53 = vpop.f32.mrf.mxu2  ;;  %v3377_v62 = vadd.f32 %v9686_v45, %v2948_v48 }
 0x4a9   : > { %v4857_v15 = vadd.f32 %v4834_v53, %v4714_v17  ;;  %v3521_v26 = vadd.f32 %v9718_v36, %v3378_v37 }
 0x4aa   : > { %v3520_v25 = vadd.f32 %v9716_v35, %v3377_v62 }
 0x4ab   : > { %v4854_v54 = vpop.f32.mrf.mxu3  ;;  %v3953_v22 = vadd.f32 %v10010_v2, %v3521_v26 }
 0x4ac   : > { %v4858_v16 = vadd.f32 %v4854_v54, %v4715_v39  ;;  %v3952_v21 = vadd.f32 %v10008_v1, %v3520_v25 }
 0x4ad   : > { %v4096_v50 = vadd.f32 %v10040_v8, %v3953_v22 }
 0x4ae   : > { %v4095_v49 = vadd.f32 %v10038_v7, %v3952_v21 }
 0x4af   : > { %v4525_v32 = vadd.f32 %v4521_v44, %v4096_v50  ;;  %v5447_v44 = vld [vmem:[%s7479_s13] sm:$0xff] }
 0x4b0   : > { %v4524_v31 = vadd.f32 %v4501_v58, %v4095_v49 }
 0x4b1   : > { %v4668_v46 = vadd.f32 %v4664_v4, %v4525_v32 }
 0x4b2   : > { %v4667_v45 = vadd.f32 %v4644_v3, %v4524_v31 }
 0x4e2   : > { %v5073_v41 = vpop.f32.mrf.mxu0 }
 0x4e3   : > { %v5096_v59 = vadd.f32 %v5073_v41, %v4667_v45 }
 0x4e5   : > { %v5093_v42 = vpop.f32.mrf.mxu1 }
 0x4e6   : > { %v5097_v35 = vadd.f32 %v5093_v42, %v4668_v46 }
 0x4e8   : > { %v5216_v60 = vpop.f32.mrf.mxu2 }
 0x4e9   : > { %v5239_v13 = vadd.f32 %v5216_v60, %v5096_v59 }
 0x4eb   : > { %v5236_v36 = vpop.f32.mrf.mxu3  ;;  %5431 = vst [vmem:[%s7484_s25] sm:$0xff] %v5239_v13  ;;  %v5448_v14 = vmul.f32 %v5239_v13, %v5239_v13 }
 0x4ec   : > { %v5240_v1 = vadd.f32 %v5236_v36, %v5097_v35 }
 0x4ee   : > { %v5437_v2 = vadd.f32 %v5240_v1, %v5239_v13  ;;  %v5449_v7 = vmul.f32 %v5240_v1, %v5240_v1  ;;  %5432 = vst [vmem:[%s7484_s25 + $0x8] sm:$0xff] %v5240_v1 }
 0x4f0   : > { %5438 = vadd.xlane.f32.xlu0 %v5437_v2  ;;  %v5450_v8 = vadd.f32 %v5449_v7, %v5448_v14 }
 0x4f2   : > { %5451 = vadd.xlane.f32.xlu1 %v5450_v8 }
 0x522   : > { %v5263_v51 = vpop.f32.mrf.mxu0 }
 0x523   : > { %v5283_v52 = vpop.f32.mrf.mxu1  ;;  %v5286_v33 = vadd.f32 %v5263_v51, %v4857_v15 }
 0x524   : > { %v5287_v34 = vadd.f32 %v5283_v52, %v4858_v16 }
 0x528   : > { %v5406_v27 = vpop.f32.mrf.mxu2 }
 0x529   : > { %v5426_v28 = vpop.f32.mrf.mxu3  ;;  %v5429_v43 = vadd.f32 %v5406_v27, %v5286_v33 }
 0x52a   : > { %v5430_v57 = vadd.f32 %v5426_v28, %v5287_v34 }
 0x52b   : > { %7318 = vst [vmem:[%s7484_s25 + $0x10] sm:$0xff] %v5429_v43  ;;  %v5453_v6 = vmul.f32 %v5429_v43, %v5429_v43 }
 0x52c   : > { %v5440_v5 = vadd.f32 %v5430_v57, %v5429_v43  ;;  %v5454_v9 = vmul.f32 %v5430_v57, %v5430_v57  ;;  %7319 = vst [vmem:[%s7484_s25 + $0x18] sm:$0xff] %v5430_v57 }
 0x52e   : > { %5441 = vadd.xlane.f32.xlu0 %v5440_v5  ;;  %v5455_v10 = vadd.f32 %v5454_v9, %v5453_v6 }
 0x530   : > { %5456 = vadd.xlane.f32.xlu1 %v5455_v10 }
 0x563   : > { %v5439_v47 = vpop.xlane.xlu0 %5438 }
 0x565   : > { %v5452_v61 = vpop.xlane.xlu1 %5451 }
 0x5a1   : > { %v5442_v20 = vpop.xlane.xlu0 %5441 }
 0x5a2   : > { %v5443_v58 = vadd.f32 %v5442_v20, %v5439_v47 }
 0x5a3   : > { %v5457_v11 = vpop.xlane.xlu1 %5456 }
 0x5a4   : > { %v5444_v12 = vadd.f32 %v5443_v58, %v5436_v19  ;;  %v5458_v23 = vadd.f32 %v5457_v11, %v5452_v61 }
 0x5a6   : > { %5446 = vst.msk [vmem:[%s7474_s10] sm:$0xff] %vm5445_vm2, %v5444_v12  ;;  %v5459_v24 = vadd.f32 %v5458_v23, %v5447_v44 }
 0x5a8   : > { %5460 = vst.msk [vmem:[%s7479_s13] sm:$0xff] %vm5445_vm2, %v5459_v24 }
 0x5a9 PF: > { %v5462_v3 = vld [vmem:[#allocation2 + $0x1b0] sm:$0xff]  ;;  %vm5516_vm3 = vcmask 31744   ;;  %v5463_v4 = vld [vmem:[#allocation2 + $0x1b8] sm:$0xff]  ;;  %v5464_v40 = vld [vmem:[#allocation2 + $0x1c0] sm:$0x3]  ;;  %vm5519_vm4 = vcmask 25600  }
 0x5aa   : > { %5517 = vst.msk [vmem:[#allocation2] sm:$0xff] %vm5516_vm3, %v5462_v3  ;;  %v5465_v18 = vld [vmem:[#allocation2 + $0x1c8] sm:$0xff]  ;;  %v5466_v17 = vld [vmem:[#allocation2 + $0x1d0] sm:$0xff]  ;;  %v5467_v39 = vld [vmem:[#allocation2 + $0x1d8] sm:$0x3] }
 0x5ab   : > { %5518 = vst.msk [vmem:[#allocation2 + $0x8] sm:$0xff] %vm5516_vm3, %v5463_v4  ;;  %v5468_v53 = vld [vmem:[#allocation2 + $0x1e0] sm:$0xff]  ;;  %v5469_v54 = vld [vmem:[#allocation2 + $0x1e8] sm:$0xff]  ;;  %v5470_v15 = vld [vmem:[#allocation2 + $0x1f0] sm:$0x3] }
 0x5ac   : > { %5520 = vst.msk [vmem:[#allocation2 + $0x10] sm:$0x3] %vm5519_vm4, %v5464_v40  ;;  %v5471_v16 = vld [vmem:[#allocation2 + $0x1f8] sm:$0xff]  ;;  %v5472_v55 = vld [vmem:[#allocation2 + $0x200] sm:$0xff]  ;;  %v5473_v38 = vld [vmem:[#allocation2 + $0x208] sm:$0x3] }
 0x5ad   : > { %5521 = vst.msk [vmem:[#allocation2 + $0x18] sm:$0xff] %vm5516_vm3, %v5465_v18  ;;  %v5474_v29 = vld [vmem:[#allocation2 + $0x210] sm:$0xff]  ;;  %v5475_v56 = vld [vmem:[#allocation2 + $0x218] sm:$0xff]  ;;  %v5476_v63 = vld [vmem:[#allocation2 + $0x220] sm:$0x3] }
 0x5ae   : > { %5522 = vst.msk [vmem:[#allocation2 + $0x20] sm:$0xff] %vm5516_vm3, %v5466_v17  ;;  %v5477_v30 = vld [vmem:[#allocation2 + $0x228] sm:$0xff]  ;;  %v5478_v48 = vld [vmem:[#allocation2 + $0x230] sm:$0xff]  ;;  %v5479_v0 = vld [vmem:[#allocation2 + $0x238] sm:$0x3] }
 0x5af   : > { %5523 = vst.msk [vmem:[#allocation2 + $0x28] sm:$0x3] %vm5519_vm4, %v5467_v39  ;;  %v5480_v62 = vld [vmem:[#allocation2 + $0x240] sm:$0xff]  ;;  %v5481_v37 = vld [vmem:[#allocation2 + $0x248] sm:$0xff]  ;;  %v5482_v25 = vld [vmem:[#allocation2 + $0x250] sm:$0x3] }
 0x5b0   : > { %5524 = vst.msk [vmem:[#allocation2 + $0x30] sm:$0xff] %vm5516_vm3, %v5468_v53  ;;  %v5483_v26 = vld [vmem:[#allocation2 + $0x258] sm:$0xff]  ;;  %v5484_v21 = vld [vmem:[#allocation2 + $0x260] sm:$0xff]  ;;  %v5485_v22 = vld [vmem:[#allocation2 + $0x268] sm:$0x3] }
 0x5b1   : > { %5525 = vst.msk [vmem:[#allocation2 + $0x38] sm:$0xff] %vm5516_vm3, %v5469_v54  ;;  %v5486_v49 = vld [vmem:[#allocation2 + $0x270] sm:$0xff]  ;;  %v5487_v50 = vld [vmem:[#allocation2 + $0x278] sm:$0xff]  ;;  %v5488_v31 = vld [vmem:[#allocation2 + $0x280] sm:$0x3] }
 0x5b2   : > { %5526 = vst.msk [vmem:[#allocation2 + $0x40] sm:$0x3] %vm5519_vm4, %v5470_v15  ;;  %v5489_v32 = vld [vmem:[#allocation2 + $0x288] sm:$0xff]  ;;  %v5490_v41 = vld [vmem:[#allocation2 + $0x290] sm:$0xff]  ;;  %v5491_v42 = vld [vmem:[#allocation2 + $0x298] sm:$0x3] }
 0x5b3   : > { %5527 = vst.msk [vmem:[#allocation2 + $0x48] sm:$0xff] %vm5516_vm3, %v5471_v16  ;;  %v5492_v45 = vld [vmem:[#allocation2 + $0x2a0] sm:$0xff]  ;;  %v5493_v46 = vld [vmem:[#allocation2 + $0x2a8] sm:$0xff]  ;;  %v5494_v59 = vld [vmem:[#allocation2 + $0x2b0] sm:$0x3] }
 0x5b4   : > { %5528 = vst.msk [vmem:[#allocation2 + $0x50] sm:$0xff] %vm5516_vm3, %v5472_v55  ;;  %v5495_v35 = vld [vmem:[#allocation2 + $0x2b8] sm:$0xff]  ;;  %v5496_v60 = vld [vmem:[#allocation2 + $0x2c0] sm:$0xff]  ;;  %v5497_v36 = vld [vmem:[#allocation2 + $0x2c8] sm:$0x3] }
 0x5b5   : > { %5529 = vst.msk [vmem:[#allocation2 + $0x58] sm:$0x3] %vm5519_vm4, %v5473_v38  ;;  %v5498_v13 = vld [vmem:[#allocation2 + $0x2d0] sm:$0xff]  ;;  %v5499_v1 = vld [vmem:[#allocation2 + $0x2d8] sm:$0xff]  ;;  %v5500_v2 = vld [vmem:[#allocation2 + $0x2e0] sm:$0x3] }
 0x5b6   : > { %5530 = vst.msk [vmem:[#allocation2 + $0x60] sm:$0xff] %vm5516_vm3, %v5474_v29  ;;  %v5501_v14 = vld [vmem:[#allocation2 + $0x2e8] sm:$0xff]  ;;  %v5502_v7 = vld [vmem:[#allocation2 + $0x2f0] sm:$0xff]  ;;  %v5503_v8 = vld [vmem:[#allocation2 + $0x2f8] sm:$0x3] }
 0x5b7   : > { %5531 = vst.msk [vmem:[#allocation2 + $0x68] sm:$0xff] %vm5516_vm3, %v5475_v56  ;;  %v5504_v51 = vld [vmem:[#allocation2 + $0x300] sm:$0xff]  ;;  %v5505_v52 = vld [vmem:[#allocation2 + $0x308] sm:$0xff]  ;;  %v5506_v33 = vld [vmem:[#allocation2 + $0x310] sm:$0x3] }
 0x5b8   : > { %5532 = vst.msk [vmem:[#allocation2 + $0x70] sm:$0x3] %vm5519_vm4, %v5476_v63  ;;  %v5507_v34 = vld [vmem:[#allocation2 + $0x318] sm:$0xff]  ;;  %v5508_v27 = vld [vmem:[#allocation2 + $0x320] sm:$0xff]  ;;  %v5509_v28 = vld [vmem:[#allocation2 + $0x328] sm:$0x3] }
 0x5b9   : > { %5533 = vst.msk [vmem:[#allocation2 + $0x78] sm:$0xff] %vm5516_vm3, %v5477_v30  ;;  %v5510_v43 = vld [vmem:[#allocation2 + $0x330] sm:$0xff]  ;;  %v5511_v57 = vld [vmem:[#allocation2 + $0x338] sm:$0xff]  ;;  %v5512_v5 = vld [vmem:[#allocation2 + $0x340] sm:$0x3] }
 0x5ba   : > { %5534 = vst.msk [vmem:[#allocation2 + $0x80] sm:$0xff] %vm5516_vm3, %v5478_v48  ;;  %v5513_v6 = vld [vmem:[#allocation2 + $0x348] sm:$0xff]  ;;  %v5514_v9 = vld [vmem:[#allocation2 + $0x350] sm:$0xff]  ;;  %v5515_v10 = vld [vmem:[#allocation2 + $0x358] sm:$0x3] }
 0x5bb   : > { %5535 = vst.msk [vmem:[#allocation2 + $0x88] sm:$0x3] %vm5519_vm4, %v5479_v0  ;;  %v5572_v47 = vld [vmem:[%s7469_s7] sm:$0xff]  ;;  %v5573_v61 = vld [vmem:[%s7469_s7 + $0x8] sm:$0xff]  ;;  %v5574_v19 = vld [vmem:[%s7469_s7 + $0x10] sm:$0x3] }
 0x5bc   : > { %5536 = vst.msk [vmem:[#allocation2 + $0x90] sm:$0xff] %vm5516_vm3, %v5480_v62  ;;  %v5575_v20 = vld [vmem:[%s7469_s7 + $0x18] sm:$0xff]  ;;  %v5576_v58 = vld [vmem:[%s7469_s7 + $0x20] sm:$0xff]  ;;  %v5577_v44 = vld [vmem:[%s7469_s7 + $0x28] sm:$0x3] }
 0x5bd   : > { %5537 = vst.msk [vmem:[#allocation2 + $0x98] sm:$0xff] %vm5516_vm3, %v5481_v37  ;;  %v5578_v11 = vld [vmem:[%s7469_s7 + $0x30] sm:$0xff]  ;;  %v5579_v12 = vld [vmem:[%s7469_s7 + $0x38] sm:$0xff]  ;;  %v5580_v23 = vld [vmem:[%s7469_s7 + $0x40] sm:$0x3] }
 0x5be   : > { %5538 = vst.msk [vmem:[#allocation2 + $0xa0] sm:$0x3] %vm5519_vm4, %v5482_v25  ;;  %v5581_v24 = vld [vmem:[%s7469_s7 + $0x48] sm:$0xff]  ;;  %v5582_v3 = vld [vmem:[%s7469_s7 + $0x50] sm:$0xff]  ;;  %v5583_v4 = vld [vmem:[%s7469_s7 + $0x58] sm:$0x3] }
 0x5bf   : > { %5539 = vst.msk [vmem:[#allocation2 + $0xa8] sm:$0xff] %vm5516_vm3, %v5483_v26  ;;  %v5584_v40 = vld [vmem:[%s7469_s7 + $0x60] sm:$0xff]  ;;  %v5585_v18 = vld [vmem:[%s7469_s7 + $0x68] sm:$0xff]  ;;  %v5586_v17 = vld [vmem:[%s7469_s7 + $0x70] sm:$0x3] }
 0x5c0   : > { %5540 = vst.msk [vmem:[#allocation2 + $0xb0] sm:$0xff] %vm5516_vm3, %v5484_v21  ;;  %v5587_v39 = vld [vmem:[%s7469_s7 + $0x78] sm:$0xff]  ;;  %v5588_v53 = vld [vmem:[%s7469_s7 + $0x80] sm:$0xff]  ;;  %v5589_v54 = vld [vmem:[%s7469_s7 + $0x88] sm:$0x3] }
 0x5c1   : > { %5541 = vst.msk [vmem:[#allocation2 + $0xb8] sm:$0x3] %vm5519_vm4, %v5485_v22  ;;  %v5590_v15 = vld [vmem:[%s7469_s7 + $0x90] sm:$0xff]  ;;  %v5591_v16 = vld [vmem:[%s7469_s7 + $0x98] sm:$0xff]  ;;  %v5592_v55 = vld [vmem:[%s7469_s7 + $0xa0] sm:$0x3] }
 0x5c2   : > { %5542 = vst.msk [vmem:[#allocation2 + $0xc0] sm:$0xff] %vm5516_vm3, %v5486_v49  ;;  %v5593_v38 = vld [vmem:[%s7469_s7 + $0xa8] sm:$0xff]  ;;  %v5594_v29 = vld [vmem:[%s7469_s7 + $0xb0] sm:$0xff]  ;;  %v5595_v56 = vld [vmem:[%s7469_s7 + $0xb8] sm:$0x3] }
 0x5c3   : > { %5543 = vst.msk [vmem:[#allocation2 + $0xc8] sm:$0xff] %vm5516_vm3, %v5487_v50  ;;  %v5596_v63 = vld [vmem:[%s7469_s7 + $0xc0] sm:$0xff]  ;;  %v5597_v30 = vld [vmem:[%s7469_s7 + $0xc8] sm:$0xff]  ;;  %v5598_v48 = vld [vmem:[%s7469_s7 + $0xd0] sm:$0x3] }
 0x5c4   : > { %5544 = vst.msk [vmem:[#allocation2 + $0xd0] sm:$0x3] %vm5519_vm4, %v5488_v31  ;;  %v5599_v0 = vld [vmem:[%s7469_s7 + $0xd8] sm:$0xff]  ;;  %v5600_v62 = vld [vmem:[%s7469_s7 + $0xe0] sm:$0xff]  ;;  %v5601_v37 = vld [vmem:[%s7469_s7 + $0xe8] sm:$0x3] }
 0x5c5   : > { %5545 = vst.msk [vmem:[#allocation2 + $0xd8] sm:$0xff] %vm5516_vm3, %v5489_v32  ;;  %v5602_v25 = vld [vmem:[%s7469_s7 + $0xf0] sm:$0xff]  ;;  %v5603_v26 = vld [vmem:[%s7469_s7 + $0xf8] sm:$0xff]  ;;  %v5604_v21 = vld [vmem:[%s7469_s7 + $0x100] sm:$0x3] }
 0x5c6   : > { %5546 = vst.msk [vmem:[#allocation2 + $0xe0] sm:$0xff] %vm5516_vm3, %v5490_v41  ;;  %v5605_v22 = vld [vmem:[%s7469_s7 + $0x108] sm:$0xff]  ;;  %v5606_v49 = vld [vmem:[%s7469_s7 + $0x110] sm:$0xff]  ;;  %v5607_v50 = vld [vmem:[%s7469_s7 + $0x118] sm:$0x3] }
 0x5c7   : > { %5547 = vst.msk [vmem:[#allocation2 + $0xe8] sm:$0x3] %vm5519_vm4, %v5491_v42  ;;  %v5608_v31 = vld [vmem:[%s7469_s7 + $0x120] sm:$0xff]  ;;  %v5609_v32 = vld [vmem:[%s7469_s7 + $0x128] sm:$0xff]  ;;  %v5610_v41 = vld [vmem:[%s7469_s7 + $0x130] sm:$0x3] }
 0x5c8   : > { %5548 = vst.msk [vmem:[#allocation2 + $0xf0] sm:$0xff] %vm5516_vm3, %v5492_v45  ;;  %v5611_v42 = vld [vmem:[%s7469_s7 + $0x138] sm:$0xff]  ;;  %v5612_v45 = vld [vmem:[%s7469_s7 + $0x140] sm:$0xff] }
 0x5c9   : > { %5549 = vst.msk [vmem:[#allocation2 + $0xf8] sm:$0xff] %vm5516_vm3, %v5493_v46  ;;  %v5613_v46 = vld [vmem:[%s7469_s7 + $0x148] sm:$0x3] }
 0x5ca   : > { %5550 = vst.msk [vmem:[#allocation2 + $0x100] sm:$0x3] %vm5519_vm4, %v5494_v59  ;;  %v5614_v59 = vld [vmem:[%s7469_s7 + $0x150] sm:$0xff] }
 0x5cb   : > { %5551 = vst.msk [vmem:[#allocation2 + $0x108] sm:$0xff] %vm5516_vm3, %v5495_v35  ;;  %v5615_v35 = vld [vmem:[%s7469_s7 + $0x158] sm:$0xff] }
 0x5cc   : > { %5552 = vst.msk [vmem:[#allocation2 + $0x110] sm:$0xff] %vm5516_vm3, %v5496_v60  ;;  %v5616_v60 = vld [vmem:[%s7469_s7 + $0x160] sm:$0x3] }
 0x5cd   : > { %5553 = vst.msk [vmem:[#allocation2 + $0x118] sm:$0x3] %vm5519_vm4, %v5497_v36  ;;  %v5617_v36 = vld [vmem:[%s7469_s7 + $0x168] sm:$0xff] }
 0x5ce   : > { %5554 = vst.msk [vmem:[#allocation2 + $0x120] sm:$0xff] %vm5516_vm3, %v5498_v13  ;;  %v5618_v13 = vld [vmem:[%s7469_s7 + $0x170] sm:$0xff] }
 0x5cf   : > { %5555 = vst.msk [vmem:[#allocation2 + $0x128] sm:$0xff] %vm5516_vm3, %v5499_v1  ;;  %v5619_v1 = vld [vmem:[%s7469_s7 + $0x178] sm:$0x3] }
 0x5d0   : > { %5556 = vst.msk [vmem:[#allocation2 + $0x130] sm:$0x3] %vm5519_vm4, %v5500_v2  ;;  %v5620_v2 = vld [vmem:[%s7469_s7 + $0x180] sm:$0xff] }
 0x5d1   : > { %5557 = vst.msk [vmem:[#allocation2 + $0x138] sm:$0xff] %vm5516_vm3, %v5501_v14  ;;  %v5621_v14 = vld [vmem:[%s7469_s7 + $0x188] sm:$0xff] }
 0x5d2   : > { %5558 = vst.msk [vmem:[#allocation2 + $0x140] sm:$0xff] %vm5516_vm3, %v5502_v7  ;;  %v5622_v7 = vld [vmem:[%s7469_s7 + $0x190] sm:$0x3] }
 0x5d3   : > { %5559 = vst.msk [vmem:[#allocation2 + $0x148] sm:$0x3] %vm5519_vm4, %v5503_v8  ;;  %v5623_v8 = vld [vmem:[%s7469_s7 + $0x198] sm:$0xff] }
 0x5d4   : > { %5560 = vst.msk [vmem:[#allocation2 + $0x150] sm:$0xff] %vm5516_vm3, %v5504_v51  ;;  %v5624_v51 = vld [vmem:[%s7469_s7 + $0x1a0] sm:$0xff] }
 0x5d5   : > { %5561 = vst.msk [vmem:[#allocation2 + $0x158] sm:$0xff] %vm5516_vm3, %v5505_v52  ;;  %v5625_v52 = vld [vmem:[%s7469_s7 + $0x1a8] sm:$0x3] }
 0x5d6   : > { %5562 = vst.msk [vmem:[#allocation2 + $0x160] sm:$0x3] %vm5519_vm4, %v5506_v33 }
 0x5d7   : > { %5563 = vst.msk [vmem:[#allocation2 + $0x168] sm:$0xff] %vm5516_vm3, %v5507_v34 }
 0x5d8   : > { %5564 = vst.msk [vmem:[#allocation2 + $0x170] sm:$0xff] %vm5516_vm3, %v5508_v27 }
 0x5d9   : > { %5565 = vst.msk [vmem:[#allocation2 + $0x178] sm:$0x3] %vm5519_vm4, %v5509_v28 }
 0x5da   : > { %5566 = vst.msk [vmem:[#allocation2 + $0x180] sm:$0xff] %vm5516_vm3, %v5510_v43 }
 0x5db   : > { %5567 = vst.msk [vmem:[#allocation2 + $0x188] sm:$0xff] %vm5516_vm3, %v5511_v57 }
 0x5dc   : > { %5568 = vst.msk [vmem:[#allocation2 + $0x190] sm:$0x3] %vm5519_vm4, %v5512_v5 }
 0x5dd   : > { %5569 = vst.msk [vmem:[#allocation2 + $0x198] sm:$0xff] %vm5516_vm3, %v5513_v6 }
 0x5de   : > { %5570 = vst.msk [vmem:[#allocation2 + $0x1a0] sm:$0xff] %vm5516_vm3, %v5514_v9 }
 0x5df   : > { %5571 = vst.msk [vmem:[#allocation2 + $0x1a8] sm:$0x3] %vm5519_vm4, %v5515_v10 }
 0x5e0   : > { %5626 = vst.msk [vmem:[#allocation2 + $0x1b0] sm:$0xff] %vm5516_vm3, %v5572_v47 }
 0x5e1   : > { %5627 = vst.msk [vmem:[#allocation2 + $0x1b8] sm:$0xff] %vm5516_vm3, %v5573_v61 }
 0x5e2   : > { %5628 = vst.msk [vmem:[#allocation2 + $0x1c0] sm:$0x3] %vm5519_vm4, %v5574_v19 }
 0x5e3   : > { %5629 = vst.msk [vmem:[#allocation2 + $0x1c8] sm:$0xff] %vm5516_vm3, %v5575_v20 }
 0x5e4   : > { %5630 = vst.msk [vmem:[#allocation2 + $0x1d0] sm:$0xff] %vm5516_vm3, %v5576_v58 }
 0x5e5   : > { %5631 = vst.msk [vmem:[#allocation2 + $0x1d8] sm:$0x3] %vm5519_vm4, %v5577_v44 }
 0x5e6   : > { %5632 = vst.msk [vmem:[#allocation2 + $0x1e0] sm:$0xff] %vm5516_vm3, %v5578_v11 }
 0x5e7   : > { %5633 = vst.msk [vmem:[#allocation2 + $0x1e8] sm:$0xff] %vm5516_vm3, %v5579_v12 }
 0x5e8   : > { %5634 = vst.msk [vmem:[#allocation2 + $0x1f0] sm:$0x3] %vm5519_vm4, %v5580_v23 }
 0x5e9   : > { %5635 = vst.msk [vmem:[#allocation2 + $0x1f8] sm:$0xff] %vm5516_vm3, %v5581_v24 }
 0x5ea   : > { %5636 = vst.msk [vmem:[#allocation2 + $0x200] sm:$0xff] %vm5516_vm3, %v5582_v3 }
 0x5eb   : > { %5637 = vst.msk [vmem:[#allocation2 + $0x208] sm:$0x3] %vm5519_vm4, %v5583_v4 }
 0x5ec   : > { %5638 = vst.msk [vmem:[#allocation2 + $0x210] sm:$0xff] %vm5516_vm3, %v5584_v40 }
 0x5ed   : > { %5639 = vst.msk [vmem:[#allocation2 + $0x218] sm:$0xff] %vm5516_vm3, %v5585_v18 }
 0x5ee   : > { %5640 = vst.msk [vmem:[#allocation2 + $0x220] sm:$0x3] %vm5519_vm4, %v5586_v17 }
 0x5ef   : > { %5641 = vst.msk [vmem:[#allocation2 + $0x228] sm:$0xff] %vm5516_vm3, %v5587_v39 }
 0x5f0   : > { %5642 = vst.msk [vmem:[#allocation2 + $0x230] sm:$0xff] %vm5516_vm3, %v5588_v53 }
 0x5f1   : > { %5643 = vst.msk [vmem:[#allocation2 + $0x238] sm:$0x3] %vm5519_vm4, %v5589_v54 }
 0x5f2   : > { %5644 = vst.msk [vmem:[#allocation2 + $0x240] sm:$0xff] %vm5516_vm3, %v5590_v15 }
 0x5f3   : > { %5645 = vst.msk [vmem:[#allocation2 + $0x248] sm:$0xff] %vm5516_vm3, %v5591_v16 }
 0x5f4   : > { %5646 = vst.msk [vmem:[#allocation2 + $0x250] sm:$0x3] %vm5519_vm4, %v5592_v55 }
 0x5f5   : > { %5647 = vst.msk [vmem:[#allocation2 + $0x258] sm:$0xff] %vm5516_vm3, %v5593_v38 }
 0x5f6   : > { %5648 = vst.msk [vmem:[#allocation2 + $0x260] sm:$0xff] %vm5516_vm3, %v5594_v29 }
 0x5f7   : > { %5649 = vst.msk [vmem:[#allocation2 + $0x268] sm:$0x3] %vm5519_vm4, %v5595_v56 }
 0x5f8   : > { %5650 = vst.msk [vmem:[#allocation2 + $0x270] sm:$0xff] %vm5516_vm3, %v5596_v63 }
 0x5f9   : > { %5651 = vst.msk [vmem:[#allocation2 + $0x278] sm:$0xff] %vm5516_vm3, %v5597_v30 }
 0x5fa   : > { %5652 = vst.msk [vmem:[#allocation2 + $0x280] sm:$0x3] %vm5519_vm4, %v5598_v48 }
 0x5fb   : > { %5653 = vst.msk [vmem:[#allocation2 + $0x288] sm:$0xff] %vm5516_vm3, %v5599_v0 }
 0x5fc   : > { %5654 = vst.msk [vmem:[#allocation2 + $0x290] sm:$0xff] %vm5516_vm3, %v5600_v62 }
 0x5fd   : > { %5655 = vst.msk [vmem:[#allocation2 + $0x298] sm:$0x3] %vm5519_vm4, %v5601_v37 }
 0x5fe   : > { %5656 = vst.msk [vmem:[#allocation2 + $0x2a0] sm:$0xff] %vm5516_vm3, %v5602_v25 }
 0x5ff   : > { %5657 = vst.msk [vmem:[#allocation2 + $0x2a8] sm:$0xff] %vm5516_vm3, %v5603_v26 }
 0x600   : > { %5658 = vst.msk [vmem:[#allocation2 + $0x2b0] sm:$0x3] %vm5519_vm4, %v5604_v21 }
 0x601   : > { %5659 = vst.msk [vmem:[#allocation2 + $0x2b8] sm:$0xff] %vm5516_vm3, %v5605_v22 }
 0x602   : > { %5660 = vst.msk [vmem:[#allocation2 + $0x2c0] sm:$0xff] %vm5516_vm3, %v5606_v49 }
 0x603   : > { %5661 = vst.msk [vmem:[#allocation2 + $0x2c8] sm:$0x3] %vm5519_vm4, %v5607_v50 }
 0x604   : > { %5662 = vst.msk [vmem:[#allocation2 + $0x2d0] sm:$0xff] %vm5516_vm3, %v5608_v31 }
 0x605   : > { %5663 = vst.msk [vmem:[#allocation2 + $0x2d8] sm:$0xff] %vm5516_vm3, %v5609_v32 }
 0x606   : > { %5664 = vst.msk [vmem:[#allocation2 + $0x2e0] sm:$0x3] %vm5519_vm4, %v5610_v41 }
 0x607   : > { %5665 = vst.msk [vmem:[#allocation2 + $0x2e8] sm:$0xff] %vm5516_vm3, %v5611_v42 }
 0x608   : > { %5666 = vst.msk [vmem:[#allocation2 + $0x2f0] sm:$0xff] %vm5516_vm3, %v5612_v45 }
 0x609   : > { %5667 = vst.msk [vmem:[#allocation2 + $0x2f8] sm:$0x3] %vm5519_vm4, %v5613_v46 }
 0x60a   : > { %5668 = vst.msk [vmem:[#allocation2 + $0x300] sm:$0xff] %vm5516_vm3, %v5614_v59 }
 0x60b   : > { %5669 = vst.msk [vmem:[#allocation2 + $0x308] sm:$0xff] %vm5516_vm3, %v5615_v35 }
 0x60c   : > { %5670 = vst.msk [vmem:[#allocation2 + $0x310] sm:$0x3] %vm5519_vm4, %v5616_v60 }
 0x60d   : > { %5671 = vst.msk [vmem:[#allocation2 + $0x318] sm:$0xff] %vm5516_vm3, %v5617_v36 }
 0x60e   : > { %5672 = vst.msk [vmem:[#allocation2 + $0x320] sm:$0xff] %vm5516_vm3, %v5618_v13 }
 0x60f   : > { %5673 = vst.msk [vmem:[#allocation2 + $0x328] sm:$0x3] %vm5519_vm4, %v5619_v1 }
 0x610   : > { %5674 = vst.msk [vmem:[#allocation2 + $0x330] sm:$0xff] %vm5516_vm3, %v5620_v2 }
 0x611   : > { %5675 = vst.msk [vmem:[#allocation2 + $0x338] sm:$0xff] %vm5516_vm3, %v5621_v14 }
 0x612   : > { %5676 = vst.msk [vmem:[#allocation2 + $0x340] sm:$0x3] %vm5519_vm4, %v5622_v7 }
 0x613   : > { %5677 = vst.msk [vmem:[#allocation2 + $0x348] sm:$0xff] %vm5516_vm3, %v5623_v8 }
 0x614   : > { %5678 = vst.msk [vmem:[#allocation2 + $0x350] sm:$0xff] %vm5516_vm3, %v5624_v51 }
 0x615   : > { %5679 = vst.msk [vmem:[#allocation2 + $0x358] sm:$0x3] %vm5519_vm4, %v5625_v52 }
 0x616 PF: > { %s15_s19 = sadd.s32 1, %s7403_s19   ;;  %s10560_s15 = smov %s7395_s17 }
 0x617   : > { %p12_p11 = scmp.ge.s32.totalorder %s15_s19, 22   ;;  %s10561_s16 = smov %s7399_s18 }
 0x618   : > { %s10562_s17 = smov %s10565_s20  ;;  %s10563_s18 = smov %s10569_s21 }
 0x619   :  { %14 = sbr.rel (!%p12_p11) target bundleno = 3 (0x3), region = 134 }

</bundles_post_ra>
